<compile_context>
chip_gen: v6e
topology: v6e:2x2x1
jax: 0.10.0
libtpu: 0.0.40
codegen_flags: <defaults>
</compile_context>

<pallas_src>
import jax
import jax.numpy as jnp
from jax.experimental import pallas as pl
from jax.experimental.pallas import tpu as pltpu

I_SIZE = 16            # input_size == seq_len (head_payload=False)
T_STEPS = I_SIZE       # sequence length
HIDDEN = 64            # real hidden size (no lane padding)
G4 = 4 * HIDDEN        # 256 = lane-dense gate width
NUM_CLASS = 10
NCP = 128              # lane-padded classifier output width (lane-dense store)


def _sigmoid(x):
    # sigmoid(x) == 0.5 * tanh(0.5 * x) + 0.5  -> single EUP op (exact identity).
    return 0.5 * jnp.tanh(0.5 * x) + 0.5


# ---------------------------------------------------------------------------
# Kernel
# ---------------------------------------------------------------------------
def lstm_kernel(x_ref, wih0_ref, b0_ref, whh0_ref, wih1_ref, whh1_ref, b1_ref,
                wc_ref, bc_ref, out_ref, xw_ref):
    BP = x_ref.shape[0] // T_STEPS          # padded batch (multiple of 8)

    # (1) Hoisted layer-0 input projection + fused biases for ALL timesteps:
    #     one (T*BP, I) @ (I, 4H) matmul off the per-step critical path.
    xw_ref[...] = (jnp.dot(x_ref[...].astype(jnp.bfloat16), wih0_ref[...],
                           preferred_element_type=jnp.float32)
                   + b0_ref[...])

    # Hoist the layer-1 bias broadcast out of the unrolled loop.
    b1 = jnp.broadcast_to(b1_ref[...], (BP, G4))

    h0 = jnp.zeros((BP, HIDDEN), jnp.float32)
    c0 = jnp.zeros((BP, HIDDEN), jnp.float32)
    h1 = jnp.zeros((BP, HIDDEN), jnp.float32)
    c1 = jnp.zeros((BP, HIDDEN), jnp.float32)

    def cell(g, c):
        # PyTorch gate order [i, f, g, o]; 64-lane slices cost only idle VPU/XLU slots.
        i_g = _sigmoid(g[:, 0 * HIDDEN:1 * HIDDEN])
        f_g = _sigmoid(g[:, 1 * HIDDEN:2 * HIDDEN])
        g_g = jnp.tanh(g[:, 2 * HIDDEN:3 * HIDDEN])
        o_g = _sigmoid(g[:, 3 * HIDDEN:4 * HIDDEN])
        c_new = f_g * c + i_g * g_g
        h_new = o_g * jnp.tanh(c_new)
        return h_new, c_new

    # (2) Fully-unrolled static time loop (T = 16).  LHS cast to bf16 at the dot
    #     sites (f32 MXU accumulation); cell state / elementwise math stay f32.
    for t in range(T_STEPS):
        xw_t = xw_ref[pl.ds(t * BP, BP), :]            # static, sublane-aligned slice
        # layer 0: only the recurrent matmul remains on the critical path.
        g0 = jnp.dot(h0.astype(jnp.bfloat16), whh0_ref[...],
                     preferred_element_type=jnp.float32) + xw_t
        h0, c0 = cell(g0, c0)
        # layer 1: split-K (two matmuls) instead of concat([h0, h1]) @ fused RHS.
        g1 = (jnp.dot(h0.astype(jnp.bfloat16), wih1_ref[...],
                      preferred_element_type=jnp.float32)
              + jnp.dot(h1.astype(jnp.bfloat16), whh1_ref[...],
                        preferred_element_type=jnp.float32)
              + b1)
        h1, c1 = cell(g1, c1)
    # TODO(synk): nn.LSTM(dropout=0.5) between layers is training-mode only;
    # eval-mode (no-dropout) semantics are implemented here.

    # Classifier on the final top-layer hidden state (one-time, kept f32),
    # lane-dense (BP, 128) store.
    out_ref[...] = (jnp.dot(h1, wc_ref[...], preferred_element_type=jnp.float32)
                    + bc_ref[...])


# ---------------------------------------------------------------------------
# Parameter init (PyTorch-native shapes) and packing for the kernel
# ---------------------------------------------------------------------------
def init_params(key):
    kH = 1.0 / jnp.sqrt(jnp.float32(HIDDEN))
    keys = jax.random.split(key, 10)

    def u(k, shape, bound):
        return jax.random.uniform(k, shape, jnp.float32, -bound, bound)

    return dict(
        w_ih_l0=u(keys[0], (4 * HIDDEN, I_SIZE), kH),
        w_hh_l0=u(keys[1], (4 * HIDDEN, HIDDEN), kH),
        b_ih_l0=u(keys[2], (4 * HIDDEN,), kH),
        b_hh_l0=u(keys[3], (4 * HIDDEN,), kH),
        w_ih_l1=u(keys[4], (4 * HIDDEN, HIDDEN), kH),
        w_hh_l1=u(keys[5], (4 * HIDDEN, HIDDEN), kH),
        b_ih_l1=u(keys[6], (4 * HIDDEN,), kH),
        b_hh_l1=u(keys[7], (4 * HIDDEN,), kH),
        w_cls=u(keys[8], (NUM_CLASS, HIDDEN), kH),
        b_cls=u(keys[9], (NUM_CLASS,), kH),
    )


def pack_params(p):
    """PyTorch gate-stacked weights -> transposed, lane-dense, bf16 RHS matrices."""
    bf = lambda a: a.astype(jnp.bfloat16)
    wih0_p = bf(p["w_ih_l0"].T)                                       # (16, 256) bf16
    whh0_p = bf(p["w_hh_l0"].T)                                       # (64, 256) bf16
    b0_p = (p["b_ih_l0"] + p["b_hh_l0"]).reshape(1, G4).astype(jnp.float32)
    wih1_p = bf(p["w_ih_l1"].T)                                       # (64, 256) bf16
    whh1_p = bf(p["w_hh_l1"].T)                                       # (64, 256) bf16
    b1_p = (p["b_ih_l1"] + p["b_hh_l1"]).reshape(1, G4).astype(jnp.float32)
    wc_p = jnp.zeros((HIDDEN, NCP), jnp.float32).at[:, :NUM_CLASS].set(p["w_cls"].T)
    bc_p = jnp.zeros((1, NCP), jnp.float32).at[0, :NUM_CLASS].set(p["b_cls"])
    return (wih0_p, b0_p, whh0_p, wih1_p, whh1_p, b1_p, wc_p, bc_p)


# ---------------------------------------------------------------------------
# Wrapper
# ---------------------------------------------------------------------------
def lstm_forward(input_data, packed_params):
    B = input_data.shape[0]
    BP = max(8, ((B + 7) // 8) * 8)                       # sublane-padded batch
    # matches input_data.view(B, i_size, i_size); batch_first -> (B, T, I)
    x = input_data.reshape(B, T_STEPS, I_SIZE).astype(jnp.float32)
    x_tm = jnp.transpose(x, (1, 0, 2))                    # (T, B, I) time-major
    x_pad = jnp.zeros((T_STEPS, BP, I_SIZE), jnp.float32).at[:, :B, :].set(x_tm)
    x_flat = x_pad.reshape(T_STEPS * BP, I_SIZE)          # (T*BP, I)

    wih0_p, b0_p, whh0_p, wih1_p, whh1_p, b1_p, wc_p, bc_p = packed_params

    out = pl.pallas_call(
        lstm_kernel,
        out_shape=jax.ShapeDtypeStruct((BP, NCP), jnp.float32),
        scratch_shapes=[
            pltpu.VMEM((T_STEPS * BP, G4), jnp.float32),  # hoisted x-projection
        ],
    )(x_flat, wih0_p, b0_p, whh0_p, wih1_p, whh1_p, b1_p, wc_p, bc_p)
    return out[:B, :NUM_CLASS]


# ---------------------------------------------------------------------------
# Pure-JAX reference (PyTorch semantics, eval mode, f32)
# ---------------------------------------------------------------------------
def lstm_reference(x, p):
    B, H = x.shape[0], HIDDEN

    def layer(inp, wih, whh, bih, bhh):
        h = jnp.zeros((B, H), jnp.float32)
        c = jnp.zeros((B, H), jnp.float32)
        outs = []
        for t in range(inp.shape[1]):
            g = inp[:, t, :] @ wih.T + h @ whh.T + bih + bhh
            i = jax.nn.sigmoid(g[:, 0:H])
            f = jax.nn.sigmoid(g[:, H:2 * H])
            gg = jnp.tanh(g[:, 2 * H:3 * H])
            o = jax.nn.sigmoid(g[:, 3 * H:4 * H])
            c = f * c + i * gg
            h = o * jnp.tanh(c)
            outs.append(h)
        return jnp.stack(outs, axis=1)

    y = layer(x, p["w_ih_l0"], p["w_hh_l0"], p["b_ih_l0"], p["b_hh_l0"])
    y = layer(y, p["w_ih_l1"], p["w_hh_l1"], p["b_ih_l1"], p["b_hh_l1"])
    return y[:, -1, :] @ p["w_cls"].T + p["b_cls"]


if __name__ == "__main__":
    key = jax.random.PRNGKey(0)
    k_in, k_par = jax.random.split(key)
    # image-like input; forward() views it as (B, 16, 16)
    x = jax.random.normal(k_in, (2, 1, 16, 16), jnp.float32)
    params = init_params(k_par)
    packed = pack_params(params)

    out = lstm_forward(x, packed)
    out = jax.block_until_ready(out)
    assert out.shape == (2, NUM_CLASS) and out.dtype == jnp.float32

    ref = lstm_reference(x.reshape(2, T_STEPS, I_SIZE).astype(jnp.float32), params)
    # bf16 matmuls (f32 accumulation): relaxed tolerance vs. the f32 reference.
    assert jnp.allclose(out, ref, atol=3e-2, rtol=3e-2)
    print("KERNEL_OK")
</pallas_src>

<mosaic_0001>
module attributes {stable_mosaic.version = 11 : i64} {
  func.func @lstm_kernel(%arg0: memref<128x16xf32, #tpu.memory_space<vmem>>, %arg1: memref<16x256xbf16, #tpu.memory_space<vmem>>, %arg2: memref<1x256xf32, #tpu.memory_space<vmem>>, %arg3: memref<64x256xbf16, #tpu.memory_space<vmem>>, %arg4: memref<64x256xbf16, #tpu.memory_space<vmem>>, %arg5: memref<64x256xbf16, #tpu.memory_space<vmem>>, %arg6: memref<1x256xf32, #tpu.memory_space<vmem>>, %arg7: memref<64x128xf32, #tpu.memory_space<vmem>>, %arg8: memref<1x128xf32, #tpu.memory_space<vmem>>, %arg9: memref<8x128xf32, #tpu.memory_space<vmem>>, %arg10: memref<128x256xf32, #tpu.memory_space<vmem>>) attributes {dimension_semantics = [], scalar_prefetch = 0 : i64, scratch_operands = 1 : i64, tpu.core_type = #tpu.core_type<tc>} {
    %c0 = arith.constant 0 : index
    %c0_0 = arith.constant 0 : index
    %0 = vector.load %arg0[%c0, %c0_0] : memref<128x16xf32, #tpu.memory_space<vmem>>, vector<128x16xf32>
    %1 = arith.truncf %0 : vector<128x16xf32> to vector<128x16xbf16>
    %c0_1 = arith.constant 0 : index
    %c0_2 = arith.constant 0 : index
    %2 = vector.load %arg1[%c0_1, %c0_2] : memref<16x256xbf16, #tpu.memory_space<vmem>>, vector<16x256xbf16>
    %cst = arith.constant dense<0.000000e+00> : vector<128x256xf32>
    %3 = tpu.matmul %1, %2, %cst {dimension_numbers = #tpu.dot_dimension_numbers<[1], [0], [0], [1], [0, 0, 1, 1], [], []>} : vector<128x16xbf16>, vector<16x256xbf16>, vector<128x256xf32> -> vector<128x256xf32>
    %c0_3 = arith.constant 0 : index
    %c0_4 = arith.constant 0 : index
    %4 = vector.load %arg2[%c0_3, %c0_4] : memref<1x256xf32, #tpu.memory_space<vmem>>, vector<1x256xf32>
    %5 = vector.broadcast %4 : vector<1x256xf32> to vector<128x256xf32>
    %6 = arith.addf %3, %5 : vector<128x256xf32>
    %c0_5 = arith.constant 0 : index
    %c0_6 = arith.constant 0 : index
    %7 = vector.load %arg10[%c0_5, %c0_6] : memref<128x256xf32, #tpu.memory_space<vmem>>, vector<128x256xf32>
    tpu.vector_store %arg10[%c0_5, %c0_6], %6 {strides = array<i32>} : memref<128x256xf32, #tpu.memory_space<vmem>>, vector<128x256xf32>,
    %c0_7 = arith.constant 0 : index
    %c0_8 = arith.constant 0 : index
    %8 = vector.load %arg6[%c0_7, %c0_8] : memref<1x256xf32, #tpu.memory_space<vmem>>, vector<1x256xf32>
    %9 = vector.shape_cast %8 : vector<1x256xf32> to vector<1x256xf32>
    %10 = vector.broadcast %9 : vector<1x256xf32> to vector<8x256xf32>
    %cst_9 = arith.constant 0.000000e+00 : f32
    %11 = vector.broadcast %cst_9 : f32 to vector<8x64xf32>
    %cst_10 = arith.constant 0.000000e+00 : f32
    %12 = vector.broadcast %cst_10 : f32 to vector<8x64xf32>
    %cst_11 = arith.constant 0.000000e+00 : f32
    %13 = vector.broadcast %cst_11 : f32 to vector<8x64xf32>
    %cst_12 = arith.constant 0.000000e+00 : f32
    %14 = vector.broadcast %cst_12 : f32 to vector<8x64xf32>
    %c0_13 = arith.constant 0 : index
    %c0_14 = arith.constant 0 : index
    %15 = vector.load %arg10[%c0_13, %c0_14] : memref<128x256xf32, #tpu.memory_space<vmem>>, vector<8x256xf32>
    %16 = arith.truncf %11 : vector<8x64xf32> to vector<8x64xbf16>
    %c0_15 = arith.constant 0 : index
    %c0_16 = arith.constant 0 : index
    %17 = vector.load %arg3[%c0_15, %c0_16] : memref<64x256xbf16, #tpu.memory_space<vmem>>, vector<64x256xbf16>
    %cst_17 = arith.constant dense<0.000000e+00> : vector<8x256xf32>
    %18 = tpu.matmul %16, %17, %cst_17 {dimension_numbers = #tpu.dot_dimension_numbers<[1], [0], [0], [1], [0, 0, 1, 1], [], []>} : vector<8x64xbf16>, vector<64x256xbf16>, vector<8x256xf32> -> vector<8x256xf32>
    %19 = arith.addf %18, %15 : vector<8x256xf32>
    %20 = vector.extract_strided_slice %19 {offsets = [0, 0], sizes = [8, 64], strides = [1, 1]} : vector<8x256xf32> to vector<8x64xf32>
    %cst_18 = arith.constant 5.000000e-01 : f32
    %21 = vector.broadcast %cst_18 : f32 to vector<8x64xf32>
    %22 = arith.mulf %21, %20 : vector<8x64xf32>
    %23 = math.tanh %22 : vector<8x64xf32>
    %cst_19 = arith.constant 5.000000e-01 : f32
    %24 = vector.broadcast %cst_19 : f32 to vector<8x64xf32>
    %25 = arith.mulf %24, %23 : vector<8x64xf32>
    %cst_20 = arith.constant 5.000000e-01 : f32
    %26 = vector.broadcast %cst_20 : f32 to vector<8x64xf32>
    %27 = arith.addf %25, %26 : vector<8x64xf32>
    %28 = vector.extract_strided_slice %19 {offsets = [0, 64], sizes = [8, 64], strides = [1, 1]} : vector<8x256xf32> to vector<8x64xf32>
    %cst_21 = arith.constant 5.000000e-01 : f32
    %29 = vector.broadcast %cst_21 : f32 to vector<8x64xf32>
    %30 = arith.mulf %29, %28 : vector<8x64xf32>
    %31 = math.tanh %30 : vector<8x64xf32>
    %cst_22 = arith.constant 5.000000e-01 : f32
    %32 = vector.broadcast %cst_22 : f32 to vector<8x64xf32>
    %33 = arith.mulf %32, %31 : vector<8x64xf32>
    %cst_23 = arith.constant 5.000000e-01 : f32
    %34 = vector.broadcast %cst_23 : f32 to vector<8x64xf32>
    %35 = arith.addf %33, %34 : vector<8x64xf32>
    %36 = vector.extract_strided_slice %19 {offsets = [0, 128], sizes = [8, 64], strides = [1, 1]} : vector<8x256xf32> to vector<8x64xf32>
    %37 = math.tanh %36 : vector<8x64xf32>
    %38 = vector.extract_strided_slice %19 {offsets = [0, 192], sizes = [8, 64], strides = [1, 1]} : vector<8x256xf32> to vector<8x64xf32>
    %cst_24 = arith.constant 5.000000e-01 : f32
    %39 = vector.broadcast %cst_24 : f32 to vector<8x64xf32>
    %40 = arith.mulf %39, %38 : vector<8x64xf32>
    %41 = math.tanh %40 : vector<8x64xf32>
    %cst_25 = arith.constant 5.000000e-01 : f32
    %42 = vector.broadcast %cst_25 : f32 to vector<8x64xf32>
    %43 = arith.mulf %42, %41 : vector<8x64xf32>
    %cst_26 = arith.constant 5.000000e-01 : f32
    %44 = vector.broadcast %cst_26 : f32 to vector<8x64xf32>
    %45 = arith.addf %43, %44 : vector<8x64xf32>
    %46 = arith.mulf %35, %12 : vector<8x64xf32>
    %47 = arith.mulf %27, %37 : vector<8x64xf32>
    %48 = arith.addf %46, %47 : vector<8x64xf32>
    %49 = math.tanh %48 : vector<8x64xf32>
    %50 = arith.mulf %45, %49 : vector<8x64xf32>
    %51 = arith.truncf %50 : vector<8x64xf32> to vector<8x64xbf16>
    %c0_27 = arith.constant 0 : index
    %c0_28 = arith.constant 0 : index
    %52 = vector.load %arg4[%c0_27, %c0_28] : memref<64x256xbf16, #tpu.memory_space<vmem>>, vector<64x256xbf16>
    %cst_29 = arith.constant dense<0.000000e+00> : vector<8x256xf32>
    %53 = tpu.matmul %51, %52, %cst_29 {dimension_numbers = #tpu.dot_dimension_numbers<[1], [0], [0], [1], [0, 0, 1, 1], [], []>} : vector<8x64xbf16>, vector<64x256xbf16>, vector<8x256xf32> -> vector<8x256xf32>
    %54 = arith.truncf %13 : vector<8x64xf32> to vector<8x64xbf16>
    %c0_30 = arith.constant 0 : index
    %c0_31 = arith.constant 0 : index
    %55 = vector.load %arg5[%c0_30, %c0_31] : memref<64x256xbf16, #tpu.memory_space<vmem>>, vector<64x256xbf16>
    %cst_32 = arith.constant dense<0.000000e+00> : vector<8x256xf32>
    %56 = tpu.matmul %54, %55, %cst_32 {dimension_numbers = #tpu.dot_dimension_numbers<[1], [0], [0], [1], [0, 0, 1, 1], [], []>} : vector<8x64xbf16>, vector<64x256xbf16>, vector<8x256xf32> -> vector<8x256xf32>
    %57 = arith.addf %53, %56 : vector<8x256xf32>
    %58 = arith.addf %57, %10 : vector<8x256xf32>
    %59 = vector.extract_strided_slice %58 {offsets = [0, 0], sizes = [8, 64], strides = [1, 1]} : vector<8x256xf32> to vector<8x64xf32>
    %cst_33 = arith.constant 5.000000e-01 : f32
    %60 = vector.broadcast %cst_33 : f32 to vector<8x64xf32>
    %61 = arith.mulf %60, %59 : vector<8x64xf32>
    %62 = math.tanh %61 : vector<8x64xf32>
    %cst_34 = arith.constant 5.000000e-01 : f32
    %63 = vector.broadcast %cst_34 : f32 to vector<8x64xf32>
    %64 = arith.mulf %63, %62 : vector<8x64xf32>
    %cst_35 = arith.constant 5.000000e-01 : f32
    %65 = vector.broadcast %cst_35 : f32 to vector<8x64xf32>
    %66 = arith.addf %64, %65 : vector<8x64xf32>
    %67 = vector.extract_strided_slice %58 {offsets = [0, 64], sizes = [8, 64], strides = [1, 1]} : vector<8x256xf32> to vector<8x64xf32>
    %cst_36 = arith.constant 5.000000e-01 : f32
    %68 = vector.broadcast %cst_36 : f32 to vector<8x64xf32>
    %69 = arith.mulf %68, %67 : vector<8x64xf32>
    %70 = math.tanh %69 : vector<8x64xf32>
    %cst_37 = arith.constant 5.000000e-01 : f32
    %71 = vector.broadcast %cst_37 : f32 to vector<8x64xf32>
    %72 = arith.mulf %71, %70 : vector<8x64xf32>
    %cst_38 = arith.constant 5.000000e-01 : f32
    %73 = vector.broadcast %cst_38 : f32 to vector<8x64xf32>
    %74 = arith.addf %72, %73 : vector<8x64xf32>
    %75 = vector.extract_strided_slice %58 {offsets = [0, 128], sizes = [8, 64], strides = [1, 1]} : vector<8x256xf32> to vector<8x64xf32>
    %76 = math.tanh %75 : vector<8x64xf32>
    %77 = vector.extract_strided_slice %58 {offsets = [0, 192], sizes = [8, 64], strides = [1, 1]} : vector<8x256xf32> to vector<8x64xf32>
    %cst_39 = arith.constant 5.000000e-01 : f32
    %78 = vector.broadcast %cst_39 : f32 to vector<8x64xf32>
    %79 = arith.mulf %78, %77 : vector<8x64xf32>
    %80 = math.tanh %79 : vector<8x64xf32>
    %cst_40 = arith.constant 5.000000e-01 : f32
    %81 = vector.broadcast %cst_40 : f32 to vector<8x64xf32>
    %82 = arith.mulf %81, %80 : vector<8x64xf32>
    %cst_41 = arith.constant 5.000000e-01 : f32
    %83 = vector.broadcast %cst_41 : f32 to vector<8x64xf32>
    %84 = arith.addf %82, %83 : vector<8x64xf32>
    %85 = arith.mulf %74, %14 : vector<8x64xf32>
    %86 = arith.mulf %66, %76 : vector<8x64xf32>
    %87 = arith.addf %85, %86 : vector<8x64xf32>
    %88 = math.tanh %87 : vector<8x64xf32>
    %89 = arith.mulf %84, %88 : vector<8x64xf32>
    %c8 = arith.constant 8 : index
    %c0_42 = arith.constant 0 : index
    %90 = vector.load %arg10[%c8, %c0_42] : memref<128x256xf32, #tpu.memory_space<vmem>>, vector<8x256xf32>
    %91 = arith.truncf %50 : vector<8x64xf32> to vector<8x64xbf16>
    %c0_43 = arith.constant 0 : index
    %c0_44 = arith.constant 0 : index
    %92 = vector.load %arg3[%c0_43, %c0_44] : memref<64x256xbf16, #tpu.memory_space<vmem>>, vector<64x256xbf16>
    %cst_45 = arith.constant dense<0.000000e+00> : vector<8x256xf32>
    %93 = tpu.matmul %91, %92, %cst_45 {dimension_numbers = #tpu.dot_dimension_numbers<[1], [0], [0], [1], [0, 0, 1, 1], [], []>} : vector<8x64xbf16>, vector<64x256xbf16>, vector<8x256xf32> -> vector<8x256xf32>
    %94 = arith.addf %93, %90 : vector<8x256xf32>
    %95 = vector.extract_strided_slice %94 {offsets = [0, 0], sizes = [8, 64], strides = [1, 1]} : vector<8x256xf32> to vector<8x64xf32>
    %cst_46 = arith.constant 5.000000e-01 : f32
    %96 = vector.broadcast %cst_46 : f32 to vector<8x64xf32>
    %97 = arith.mulf %96, %95 : vector<8x64xf32>
    %98 = math.tanh %97 : vector<8x64xf32>
    %cst_47 = arith.constant 5.000000e-01 : f32
    %99 = vector.broadcast %cst_47 : f32 to vector<8x64xf32>
    %100 = arith.mulf %99, %98 : vector<8x64xf32>
    %cst_48 = arith.constant 5.000000e-01 : f32
    %101 = vector.broadcast %cst_48 : f32 to vector<8x64xf32>
    %102 = arith.addf %100, %101 : vector<8x64xf32>
    %103 = vector.extract_strided_slice %94 {offsets = [0, 64], sizes = [8, 64], strides = [1, 1]} : vector<8x256xf32> to vector<8x64xf32>
    %cst_49 = arith.constant 5.000000e-01 : f32
    %104 = vector.broadcast %cst_49 : f32 to vector<8x64xf32>
    %105 = arith.mulf %104, %103 : vector<8x64xf32>
    %106 = math.tanh %105 : vector<8x64xf32>
    %cst_50 = arith.constant 5.000000e-01 : f32
    %107 = vector.broadcast %cst_50 : f32 to vector<8x64xf32>
    %108 = arith.mulf %107, %106 : vector<8x64xf32>
    %cst_51 = arith.constant 5.000000e-01 : f32
    %109 = vector.broadcast %cst_51 : f32 to vector<8x64xf32>
    %110 = arith.addf %108, %109 : vector<8x64xf32>
    %111 = vector.extract_strided_slice %94 {offsets = [0, 128], sizes = [8, 64], strides = [1, 1]} : vector<8x256xf32> to vector<8x64xf32>
    %112 = math.tanh %111 : vector<8x64xf32>
    %113 = vector.extract_strided_slice %94 {offsets = [0, 192], sizes = [8, 64], strides = [1, 1]} : vector<8x256xf32> to vector<8x64xf32>
    %cst_52 = arith.constant 5.000000e-01 : f32
    %114 = vector.broadcast %cst_52 : f32 to vector<8x64xf32>
    %115 = arith.mulf %114, %113 : vector<8x64xf32>
    %116 = math.tanh %115 : vector<8x64xf32>
    %cst_53 = arith.constant 5.000000e-01 : f32
    %117 = vector.broadcast %cst_53 : f32 to vector<8x64xf32>
    %118 = arith.mulf %117, %116 : vector<8x64xf32>
    %cst_54 = arith.constant 5.000000e-01 : f32
    %119 = vector.broadcast %cst_54 : f32 to vector<8x64xf32>
    %120 = arith.addf %118, %119 : vector<8x64xf32>
    %121 = arith.mulf %110, %48 : vector<8x64xf32>
    %122 = arith.mulf %102, %112 : vector<8x64xf32>
    %123 = arith.addf %121, %122 : vector<8x64xf32>
    %124 = math.tanh %123 : vector<8x64xf32>
    %125 = arith.mulf %120, %124 : vector<8x64xf32>
    %126 = arith.truncf %125 : vector<8x64xf32> to vector<8x64xbf16>
    %c0_55 = arith.constant 0 : index
    %c0_56 = arith.constant 0 : index
    %127 = vector.load %arg4[%c0_55, %c0_56] : memref<64x256xbf16, #tpu.memory_space<vmem>>, vector<64x256xbf16>
    %cst_57 = arith.constant dense<0.000000e+00> : vector<8x256xf32>
    %128 = tpu.matmul %126, %127, %cst_57 {dimension_numbers = #tpu.dot_dimension_numbers<[1], [0], [0], [1], [0, 0, 1, 1], [], []>} : vector<8x64xbf16>, vector<64x256xbf16>, vector<8x256xf32> -> vector<8x256xf32>
    %129 = arith.truncf %89 : vector<8x64xf32> to vector<8x64xbf16>
    %c0_58 = arith.constant 0 : index
    %c0_59 = arith.constant 0 : index
    %130 = vector.load %arg5[%c0_58, %c0_59] : memref<64x256xbf16, #tpu.memory_space<vmem>>, vector<64x256xbf16>
    %cst_60 = arith.constant dense<0.000000e+00> : vector<8x256xf32>
    %131 = tpu.matmul %129, %130, %cst_60 {dimension_numbers = #tpu.dot_dimension_numbers<[1], [0], [0], [1], [0, 0, 1, 1], [], []>} : vector<8x64xbf16>, vector<64x256xbf16>, vector<8x256xf32> -> vector<8x256xf32>
    %132 = arith.addf %128, %131 : vector<8x256xf32>
    %133 = arith.addf %132, %10 : vector<8x256xf32>
    %134 = vector.extract_strided_slice %133 {offsets = [0, 0], sizes = [8, 64], strides = [1, 1]} : vector<8x256xf32> to vector<8x64xf32>
    %cst_61 = arith.constant 5.000000e-01 : f32
    %135 = vector.broadcast %cst_61 : f32 to vector<8x64xf32>
    %136 = arith.mulf %135, %134 : vector<8x64xf32>
    %137 = math.tanh %136 : vector<8x64xf32>
    %cst_62 = arith.constant 5.000000e-01 : f32
    %138 = vector.broadcast %cst_62 : f32 to vector<8x64xf32>
    %139 = arith.mulf %138, %137 : vector<8x64xf32>
    %cst_63 = arith.constant 5.000000e-01 : f32
    %140 = vector.broadcast %cst_63 : f32 to vector<8x64xf32>
    %141 = arith.addf %139, %140 : vector<8x64xf32>
    %142 = vector.extract_strided_slice %133 {offsets = [0, 64], sizes = [8, 64], strides = [1, 1]} : vector<8x256xf32> to vector<8x64xf32>
    %cst_64 = arith.constant 5.000000e-01 : f32
    %143 = vector.broadcast %cst_64 : f32 to vector<8x64xf32>
    %144 = arith.mulf %143, %142 : vector<8x64xf32>
    %145 = math.tanh %144 : vector<8x64xf32>
    %cst_65 = arith.constant 5.000000e-01 : f32
    %146 = vector.broadcast %cst_65 : f32 to vector<8x64xf32>
    %147 = arith.mulf %146, %145 : vector<8x64xf32>
    %cst_66 = arith.constant 5.000000e-01 : f32
    %148 = vector.broadcast %cst_66 : f32 to vector<8x64xf32>
    %149 = arith.addf %147, %148 : vector<8x64xf32>
    %150 = vector.extract_strided_slice %133 {offsets = [0, 128], sizes = [8, 64], strides = [1, 1]} : vector<8x256xf32> to vector<8x64xf32>
    %151 = math.tanh %150 : vector<8x64xf32>
    %152 = vector.extract_strided_slice %133 {offsets = [0, 192], sizes = [8, 64], strides = [1, 1]} : vector<8x256xf32> to vector<8x64xf32>
    %cst_67 = arith.constant 5.000000e-01 : f32
    %153 = vector.broadcast %cst_67 : f32 to vector<8x64xf32>
    %154 = arith.mulf %153, %152 : vector<8x64xf32>
    %155 = math.tanh %154 : vector<8x64xf32>
    %cst_68 = arith.constant 5.000000e-01 : f32
    %156 = vector.broadcast %cst_68 : f32 to vector<8x64xf32>
    %157 = arith.mulf %156, %155 : vector<8x64xf32>
    %cst_69 = arith.constant 5.000000e-01 : f32
    %158 = vector.broadcast %cst_69 : f32 to vector<8x64xf32>
    %159 = arith.addf %157, %158 : vector<8x64xf32>
    %160 = arith.mulf %149, %87 : vector<8x64xf32>
    %161 = arith.mulf %141, %151 : vector<8x64xf32>
    %162 = arith.addf %160, %161 : vector<8x64xf32>
    %163 = math.tanh %162 : vector<8x64xf32>
    %164 = arith.mulf %159, %163 : vector<8x64xf32>
    %c16 = arith.constant 16 : index
    %c0_70 = arith.constant 0 : index
    %165 = vector.load %arg10[%c16, %c0_70] : memref<128x256xf32, #tpu.memory_space<vmem>>, vector<8x256xf32>
    %166 = arith.truncf %125 : vector<8x64xf32> to vector<8x64xbf16>
    %c0_71 = arith.constant 0 : index
    %c0_72 = arith.constant 0 : index
    %167 = vector.load %arg3[%c0_71, %c0_72] : memref<64x256xbf16, #tpu.memory_space<vmem>>, vector<64x256xbf16>
    %cst_73 = arith.constant dense<0.000000e+00> : vector<8x256xf32>
    %168 = tpu.matmul %166, %167, %cst_73 {dimension_numbers = #tpu.dot_dimension_numbers<[1], [0], [0], [1], [0, 0, 1, 1], [], []>} : vector<8x64xbf16>, vector<64x256xbf16>, vector<8x256xf32> -> vector<8x256xf32>
    %169 = arith.addf %168, %165 : vector<8x256xf32>
    %170 = vector.extract_strided_slice %169 {offsets = [0, 0], sizes = [8, 64], strides = [1, 1]} : vector<8x256xf32> to vector<8x64xf32>
    %cst_74 = arith.constant 5.000000e-01 : f32
    %171 = vector.broadcast %cst_74 : f32 to vector<8x64xf32>
    %172 = arith.mulf %171, %170 : vector<8x64xf32>
    %173 = math.tanh %172 : vector<8x64xf32>
    %cst_75 = arith.constant 5.000000e-01 : f32
    %174 = vector.broadcast %cst_75 : f32 to vector<8x64xf32>
    %175 = arith.mulf %174, %173 : vector<8x64xf32>
    %cst_76 = arith.constant 5.000000e-01 : f32
    %176 = vector.broadcast %cst_76 : f32 to vector<8x64xf32>
    %177 = arith.addf %175, %176 : vector<8x64xf32>
    %178 = vector.extract_strided_slice %169 {offsets = [0, 64], sizes = [8, 64], strides = [1, 1]} : vector<8x256xf32> to vector<8x64xf32>
    %cst_77 = arith.constant 5.000000e-01 : f32
    %179 = vector.broadcast %cst_77 : f32 to vector<8x64xf32>
    %180 = arith.mulf %179, %178 : vector<8x64xf32>
    %181 = math.tanh %180 : vector<8x64xf32>
    %cst_78 = arith.constant 5.000000e-01 : f32
    %182 = vector.broadcast %cst_78 : f32 to vector<8x64xf32>
    %183 = arith.mulf %182, %181 : vector<8x64xf32>
    %cst_79 = arith.constant 5.000000e-01 : f32
    %184 = vector.broadcast %cst_79 : f32 to vector<8x64xf32>
    %185 = arith.addf %183, %184 : vector<8x64xf32>
    %186 = vector.extract_strided_slice %169 {offsets = [0, 128], sizes = [8, 64], strides = [1, 1]} : vector<8x256xf32> to vector<8x64xf32>
    %187 = math.tanh %186 : vector<8x64xf32>
    %188 = vector.extract_strided_slice %169 {offsets = [0, 192], sizes = [8, 64], strides = [1, 1]} : vector<8x256xf32> to vector<8x64xf32>
    %cst_80 = arith.constant 5.000000e-01 : f32
    %189 = vector.broadcast %cst_80 : f32 to vector<8x64xf32>
    %190 = arith.mulf %189, %188 : vector<8x64xf32>
    %191 = math.tanh %190 : vector<8x64xf32>
    %cst_81 = arith.constant 5.000000e-01 : f32
    %192 = vector.broadcast %cst_81 : f32 to vector<8x64xf32>
    %193 = arith.mulf %192, %191 : vector<8x64xf32>
    %cst_82 = arith.constant 5.000000e-01 : f32
    %194 = vector.broadcast %cst_82 : f32 to vector<8x64xf32>
    %195 = arith.addf %193, %194 : vector<8x64xf32>
    %196 = arith.mulf %185, %123 : vector<8x64xf32>
    %197 = arith.mulf %177, %187 : vector<8x64xf32>
    %198 = arith.addf %196, %197 : vector<8x64xf32>
    %199 = math.tanh %198 : vector<8x64xf32>
    %200 = arith.mulf %195, %199 : vector<8x64xf32>
    %201 = arith.truncf %200 : vector<8x64xf32> to vector<8x64xbf16>
    %c0_83 = arith.constant 0 : index
    %c0_84 = arith.constant 0 : index
    %202 = vector.load %arg4[%c0_83, %c0_84] : memref<64x256xbf16, #tpu.memory_space<vmem>>, vector<64x256xbf16>
    %cst_85 = arith.constant dense<0.000000e+00> : vector<8x256xf32>
    %203 = tpu.matmul %201, %202, %cst_85 {dimension_numbers = #tpu.dot_dimension_numbers<[1], [0], [0], [1], [0, 0, 1, 1], [], []>} : vector<8x64xbf16>, vector<64x256xbf16>, vector<8x256xf32> -> vector<8x256xf32>
    %204 = arith.truncf %164 : vector<8x64xf32> to vector<8x64xbf16>
    %c0_86 = arith.constant 0 : index
    %c0_87 = arith.constant 0 : index
    %205 = vector.load %arg5[%c0_86, %c0_87] : memref<64x256xbf16, #tpu.memory_space<vmem>>, vector<64x256xbf16>
    %cst_88 = arith.constant dense<0.000000e+00> : vector<8x256xf32>
    %206 = tpu.matmul %204, %205, %cst_88 {dimension_numbers = #tpu.dot_dimension_numbers<[1], [0], [0], [1], [0, 0, 1, 1], [], []>} : vector<8x64xbf16>, vector<64x256xbf16>, vector<8x256xf32> -> vector<8x256xf32>
    %207 = arith.addf %203, %206 : vector<8x256xf32>
    %208 = arith.addf %207, %10 : vector<8x256xf32>
    %209 = vector.extract_strided_slice %208 {offsets = [0, 0], sizes = [8, 64], strides = [1, 1]} : vector<8x256xf32> to vector<8x64xf32>
    %cst_89 = arith.constant 5.000000e-01 : f32
    %210 = vector.broadcast %cst_89 : f32 to vector<8x64xf32>
    %211 = arith.mulf %210, %209 : vector<8x64xf32>
    %212 = math.tanh %211 : vector<8x64xf32>
    %cst_90 = arith.constant 5.000000e-01 : f32
    %213 = vector.broadcast %cst_90 : f32 to vector<8x64xf32>
    %214 = arith.mulf %213, %212 : vector<8x64xf32>
    %cst_91 = arith.constant 5.000000e-01 : f32
    %215 = vector.broadcast %cst_91 : f32 to vector<8x64xf32>
    %216 = arith.addf %214, %215 : vector<8x64xf32>
    %217 = vector.extract_strided_slice %208 {offsets = [0, 64], sizes = [8, 64], strides = [1, 1]} : vector<8x256xf32> to vector<8x64xf32>
    %cst_92 = arith.constant 5.000000e-01 : f32
    %218 = vector.broadcast %cst_92 : f32 to vector<8x64xf32>
    %219 = arith.mulf %218, %217 : vector<8x64xf32>
    %220 = math.tanh %219 : vector<8x64xf32>
    %cst_93 = arith.constant 5.000000e-01 : f32
    %221 = vector.broadcast %cst_93 : f32 to vector<8x64xf32>
    %222 = arith.mulf %221, %220 : vector<8x64xf32>
    %cst_94 = arith.constant 5.000000e-01 : f32
    %223 = vector.broadcast %cst_94 : f32 to vector<8x64xf32>
    %224 = arith.addf %222, %223 : vector<8x64xf32>
    %225 = vector.extract_strided_slice %208 {offsets = [0, 128], sizes = [8, 64], strides = [1, 1]} : vector<8x256xf32> to vector<8x64xf32>
    %226 = math.tanh %225 : vector<8x64xf32>
    %227 = vector.extract_strided_slice %208 {offsets = [0, 192], sizes = [8, 64], strides = [1, 1]} : vector<8x256xf32> to vector<8x64xf32>
    %cst_95 = arith.constant 5.000000e-01 : f32
    %228 = vector.broadcast %cst_95 : f32 to vector<8x64xf32>
    %229 = arith.mulf %228, %227 : vector<8x64xf32>
    %230 = math.tanh %229 : vector<8x64xf32>
    %cst_96 = arith.constant 5.000000e-01 : f32
    %231 = vector.broadcast %cst_96 : f32 to vector<8x64xf32>
    %232 = arith.mulf %231, %230 : vector<8x64xf32>
    %cst_97 = arith.constant 5.000000e-01 : f32
    %233 = vector.broadcast %cst_97 : f32 to vector<8x64xf32>
    %234 = arith.addf %232, %233 : vector<8x64xf32>
    %235 = arith.mulf %224, %162 : vector<8x64xf32>
    %236 = arith.mulf %216, %226 : vector<8x64xf32>
    %237 = arith.addf %235, %236 : vector<8x64xf32>
    %238 = math.tanh %237 : vector<8x64xf32>
    %239 = arith.mulf %234, %238 : vector<8x64xf32>
    %c24 = arith.constant 24 : index
    %c0_98 = arith.constant 0 : index
    %240 = vector.load %arg10[%c24, %c0_98] : memref<128x256xf32, #tpu.memory_space<vmem>>, vector<8x256xf32>
    %241 = arith.truncf %200 : vector<8x64xf32> to vector<8x64xbf16>
    %c0_99 = arith.constant 0 : index
    %c0_100 = arith.constant 0 : index
    %242 = vector.load %arg3[%c0_99, %c0_100] : memref<64x256xbf16, #tpu.memory_space<vmem>>, vector<64x256xbf16>
    %cst_101 = arith.constant dense<0.000000e+00> : vector<8x256xf32>
    %243 = tpu.matmul %241, %242, %cst_101 {dimension_numbers = #tpu.dot_dimension_numbers<[1], [0], [0], [1], [0, 0, 1, 1], [], []>} : vector<8x64xbf16>, vector<64x256xbf16>, vector<8x256xf32> -> vector<8x256xf32>
    %244 = arith.addf %243, %240 : vector<8x256xf32>
    %245 = vector.extract_strided_slice %244 {offsets = [0, 0], sizes = [8, 64], strides = [1, 1]} : vector<8x256xf32> to vector<8x64xf32>
    %cst_102 = arith.constant 5.000000e-01 : f32
    %246 = vector.broadcast %cst_102 : f32 to vector<8x64xf32>
    %247 = arith.mulf %246, %245 : vector<8x64xf32>
    %248 = math.tanh %247 : vector<8x64xf32>
    %cst_103 = arith.constant 5.000000e-01 : f32
    %249 = vector.broadcast %cst_103 : f32 to vector<8x64xf32>
    %250 = arith.mulf %249, %248 : vector<8x64xf32>
    %cst_104 = arith.constant 5.000000e-01 : f32
    %251 = vector.broadcast %cst_104 : f32 to vector<8x64xf32>
    %252 = arith.addf %250, %251 : vector<8x64xf32>
    %253 = vector.extract_strided_slice %244 {offsets = [0, 64], sizes = [8, 64], strides = [1, 1]} : vector<8x256xf32> to vector<8x64xf32>
    %cst_105 = arith.constant 5.000000e-01 : f32
    %254 = vector.broadcast %cst_105 : f32 to vector<8x64xf32>
    %255 = arith.mulf %254, %253 : vector<8x64xf32>
    %256 = math.tanh %255 : vector<8x64xf32>
    %cst_106 = arith.constant 5.000000e-01 : f32
    %257 = vector.broadcast %cst_106 : f32 to vector<8x64xf32>
    %258 = arith.mulf %257, %256 : vector<8x64xf32>
    %cst_107 = arith.constant 5.000000e-01 : f32
    %259 = vector.broadcast %cst_107 : f32 to vector<8x64xf32>
    %260 = arith.addf %258, %259 : vector<8x64xf32>
    %261 = vector.extract_strided_slice %244 {offsets = [0, 128], sizes = [8, 64], strides = [1, 1]} : vector<8x256xf32> to vector<8x64xf32>
    %262 = math.tanh %261 : vector<8x64xf32>
    %263 = vector.extract_strided_slice %244 {offsets = [0, 192], sizes = [8, 64], strides = [1, 1]} : vector<8x256xf32> to vector<8x64xf32>
    %cst_108 = arith.constant 5.000000e-01 : f32
    %264 = vector.broadcast %cst_108 : f32 to vector<8x64xf32>
    %265 = arith.mulf %264, %263 : vector<8x64xf32>
    %266 = math.tanh %265 : vector<8x64xf32>
    %cst_109 = arith.constant 5.000000e-01 : f32
    %267 = vector.broadcast %cst_109 : f32 to vector<8x64xf32>
    %268 = arith.mulf %267, %266 : vector<8x64xf32>
    %cst_110 = arith.constant 5.000000e-01 : f32
    %269 = vector.broadcast %cst_110 : f32 to vector<8x64xf32>
    %270 = arith.addf %268, %269 : vector<8x64xf32>
    %271 = arith.mulf %260, %198 : vector<8x64xf32>
    %272 = arith.mulf %252, %262 : vector<8x64xf32>
    %273 = arith.addf %271, %272 : vector<8x64xf32>
    %274 = math.tanh %273 : vector<8x64xf32>
    %275 = arith.mulf %270, %274 : vector<8x64xf32>
    %276 = arith.truncf %275 : vector<8x64xf32> to vector<8x64xbf16>
    %c0_111 = arith.constant 0 : index
    %c0_112 = arith.constant 0 : index
    %277 = vector.load %arg4[%c0_111, %c0_112] : memref<64x256xbf16, #tpu.memory_space<vmem>>, vector<64x256xbf16>
    %cst_113 = arith.constant dense<0.000000e+00> : vector<8x256xf32>
    %278 = tpu.matmul %276, %277, %cst_113 {dimension_numbers = #tpu.dot_dimension_numbers<[1], [0], [0], [1], [0, 0, 1, 1], [], []>} : vector<8x64xbf16>, vector<64x256xbf16>, vector<8x256xf32> -> vector<8x256xf32>
    %279 = arith.truncf %239 : vector<8x64xf32> to vector<8x64xbf16>
    %c0_114 = arith.constant 0 : index
    %c0_115 = arith.constant 0 : index
    %280 = vector.load %arg5[%c0_114, %c0_115] : memref<64x256xbf16, #tpu.memory_space<vmem>>, vector<64x256xbf16>
    %cst_116 = arith.constant dense<0.000000e+00> : vector<8x256xf32>
    %281 = tpu.matmul %279, %280, %cst_116 {dimension_numbers = #tpu.dot_dimension_numbers<[1], [0], [0], [1], [0, 0, 1, 1], [], []>} : vector<8x64xbf16>, vector<64x256xbf16>, vector<8x256xf32> -> vector<8x256xf32>
    %282 = arith.addf %278, %281 : vector<8x256xf32>
    %283 = arith.addf %282, %10 : vector<8x256xf32>
    %284 = vector.extract_strided_slice %283 {offsets = [0, 0], sizes = [8, 64], strides = [1, 1]} : vector<8x256xf32> to vector<8x64xf32>
    %cst_117 = arith.constant 5.000000e-01 : f32
    %285 = vector.broadcast %cst_117 : f32 to vector<8x64xf32>
    %286 = arith.mulf %285, %284 : vector<8x64xf32>
    %287 = math.tanh %286 : vector<8x64xf32>
    %cst_118 = arith.constant 5.000000e-01 : f32
    %288 = vector.broadcast %cst_118 : f32 to vector<8x64xf32>
    %289 = arith.mulf %288, %287 : vector<8x64xf32>
    %cst_119 = arith.constant 5.000000e-01 : f32
    %290 = vector.broadcast %cst_119 : f32 to vector<8x64xf32>
    %291 = arith.addf %289, %290 : vector<8x64xf32>
    %292 = vector.extract_strided_slice %283 {offsets = [0, 64], sizes = [8, 64], strides = [1, 1]} : vector<8x256xf32> to vector<8x64xf32>
    %cst_120 = arith.constant 5.000000e-01 : f32
    %293 = vector.broadcast %cst_120 : f32 to vector<8x64xf32>
    %294 = arith.mulf %293, %292 : vector<8x64xf32>
    %295 = math.tanh %294 : vector<8x64xf32>
    %cst_121 = arith.constant 5.000000e-01 : f32
    %296 = vector.broadcast %cst_121 : f32 to vector<8x64xf32>
    %297 = arith.mulf %296, %295 : vector<8x64xf32>
    %cst_122 = arith.constant 5.000000e-01 : f32
    %298 = vector.broadcast %cst_122 : f32 to vector<8x64xf32>
    %299 = arith.addf %297, %298 : vector<8x64xf32>
    %300 = vector.extract_strided_slice %283 {offsets = [0, 128], sizes = [8, 64], strides = [1, 1]} : vector<8x256xf32> to vector<8x64xf32>
    %301 = math.tanh %300 : vector<8x64xf32>
    %302 = vector.extract_strided_slice %283 {offsets = [0, 192], sizes = [8, 64], strides = [1, 1]} : vector<8x256xf32> to vector<8x64xf32>
    %cst_123 = arith.constant 5.000000e-01 : f32
    %303 = vector.broadcast %cst_123 : f32 to vector<8x64xf32>
    %304 = arith.mulf %303, %302 : vector<8x64xf32>
    %305 = math.tanh %304 : vector<8x64xf32>
    %cst_124 = arith.constant 5.000000e-01 : f32
    %306 = vector.broadcast %cst_124 : f32 to vector<8x64xf32>
    %307 = arith.mulf %306, %305 : vector<8x64xf32>
    %cst_125 = arith.constant 5.000000e-01 : f32
    %308 = vector.broadcast %cst_125 : f32 to vector<8x64xf32>
    %309 = arith.addf %307, %308 : vector<8x64xf32>
    %310 = arith.mulf %299, %237 : vector<8x64xf32>
    %311 = arith.mulf %291, %301 : vector<8x64xf32>
    %312 = arith.addf %310, %311 : vector<8x64xf32>
    %313 = math.tanh %312 : vector<8x64xf32>
    %314 = arith.mulf %309, %313 : vector<8x64xf32>
    %c32 = arith.constant 32 : index
    %c0_126 = arith.constant 0 : index
    %315 = vector.load %arg10[%c32, %c0_126] : memref<128x256xf32, #tpu.memory_space<vmem>>, vector<8x256xf32>
    %316 = arith.truncf %275 : vector<8x64xf32> to vector<8x64xbf16>
    %c0_127 = arith.constant 0 : index
    %c0_128 = arith.constant 0 : index
    %317 = vector.load %arg3[%c0_127, %c0_128] : memref<64x256xbf16, #tpu.memory_space<vmem>>, vector<64x256xbf16>
    %cst_129 = arith.constant dense<0.000000e+00> : vector<8x256xf32>
    %318 = tpu.matmul %316, %317, %cst_129 {dimension_numbers = #tpu.dot_dimension_numbers<[1], [0], [0], [1], [0, 0, 1, 1], [], []>} : vector<8x64xbf16>, vector<64x256xbf16>, vector<8x256xf32> -> vector<8x256xf32>
    %319 = arith.addf %318, %315 : vector<8x256xf32>
    %320 = vector.extract_strided_slice %319 {offsets = [0, 0], sizes = [8, 64], strides = [1, 1]} : vector<8x256xf32> to vector<8x64xf32>
    %cst_130 = arith.constant 5.000000e-01 : f32
    %321 = vector.broadcast %cst_130 : f32 to vector<8x64xf32>
    %322 = arith.mulf %321, %320 : vector<8x64xf32>
    %323 = math.tanh %322 : vector<8x64xf32>
    %cst_131 = arith.constant 5.000000e-01 : f32
    %324 = vector.broadcast %cst_131 : f32 to vector<8x64xf32>
    %325 = arith.mulf %324, %323 : vector<8x64xf32>
    %cst_132 = arith.constant 5.000000e-01 : f32
    %326 = vector.broadcast %cst_132 : f32 to vector<8x64xf32>
    %327 = arith.addf %325, %326 : vector<8x64xf32>
    %328 = vector.extract_strided_slice %319 {offsets = [0, 64], sizes = [8, 64], strides = [1, 1]} : vector<8x256xf32> to vector<8x64xf32>
    %cst_133 = arith.constant 5.000000e-01 : f32
    %329 = vector.broadcast %cst_133 : f32 to vector<8x64xf32>
    %330 = arith.mulf %329, %328 : vector<8x64xf32>
    %331 = math.tanh %330 : vector<8x64xf32>
    %cst_134 = arith.constant 5.000000e-01 : f32
    %332 = vector.broadcast %cst_134 : f32 to vector<8x64xf32>
    %333 = arith.mulf %332, %331 : vector<8x64xf32>
    %cst_135 = arith.constant 5.000000e-01 : f32
    %334 = vector.broadcast %cst_135 : f32 to vector<8x64xf32>
    %335 = arith.addf %333, %334 : vector<8x64xf32>
    %336 = vector.extract_strided_slice %319 {offsets = [0, 128], sizes = [8, 64], strides = [1, 1]} : vector<8x256xf32> to vector<8x64xf32>
    %337 = math.tanh %336 : vector<8x64xf32>
    %338 = vector.extract_strided_slice %319 {offsets = [0, 192], sizes = [8, 64], strides = [1, 1]} : vector<8x256xf32> to vector<8x64xf32>
    %cst_136 = arith.constant 5.000000e-01 : f32
    %339 = vector.broadcast %cst_136 : f32 to vector<8x64xf32>
    %340 = arith.mulf %339, %338 : vector<8x64xf32>
    %341 = math.tanh %340 : vector<8x64xf32>
    %cst_137 = arith.constant 5.000000e-01 : f32
    %342 = vector.broadcast %cst_137 : f32 to vector<8x64xf32>
    %343 = arith.mulf %342, %341 : vector<8x64xf32>
    %cst_138 = arith.constant 5.000000e-01 : f32
    %344 = vector.broadcast %cst_138 : f32 to vector<8x64xf32>
    %345 = arith.addf %343, %344 : vector<8x64xf32>
    %346 = arith.mulf %335, %273 : vector<8x64xf32>
    %347 = arith.mulf %327, %337 : vector<8x64xf32>
    %348 = arith.addf %346, %347 : vector<8x64xf32>
    %349 = math.tanh %348 : vector<8x64xf32>
    %350 = arith.mulf %345, %349 : vector<8x64xf32>
    %351 = arith.truncf %350 : vector<8x64xf32> to vector<8x64xbf16>
    %c0_139 = arith.constant 0 : index
    %c0_140 = arith.constant 0 : index
    %352 = vector.load %arg4[%c0_139, %c0_140] : memref<64x256xbf16, #tpu.memory_space<vmem>>, vector<64x256xbf16>
    %cst_141 = arith.constant dense<0.000000e+00> : vector<8x256xf32>
    %353 = tpu.matmul %351, %352, %cst_141 {dimension_numbers = #tpu.dot_dimension_numbers<[1], [0], [0], [1], [0, 0, 1, 1], [], []>} : vector<8x64xbf16>, vector<64x256xbf16>, vector<8x256xf32> -> vector<8x256xf32>
    %354 = arith.truncf %314 : vector<8x64xf32> to vector<8x64xbf16>
    %c0_142 = arith.constant 0 : index
    %c0_143 = arith.constant 0 : index
    %355 = vector.load %arg5[%c0_142, %c0_143] : memref<64x256xbf16, #tpu.memory_space<vmem>>, vector<64x256xbf16>
    %cst_144 = arith.constant dense<0.000000e+00> : vector<8x256xf32>
    %356 = tpu.matmul %354, %355, %cst_144 {dimension_numbers = #tpu.dot_dimension_numbers<[1], [0], [0], [1], [0, 0, 1, 1], [], []>} : vector<8x64xbf16>, vector<64x256xbf16>, vector<8x256xf32> -> vector<8x256xf32>
    %357 = arith.addf %353, %356 : vector<8x256xf32>
    %358 = arith.addf %357, %10 : vector<8x256xf32>
    %359 = vector.extract_strided_slice %358 {offsets = [0, 0], sizes = [8, 64], strides = [1, 1]} : vector<8x256xf32> to vector<8x64xf32>
    %cst_145 = arith.constant 5.000000e-01 : f32
    %360 = vector.broadcast %cst_145 : f32 to vector<8x64xf32>
    %361 = arith.mulf %360, %359 : vector<8x64xf32>
    %362 = math.tanh %361 : vector<8x64xf32>
    %cst_146 = arith.constant 5.000000e-01 : f32
    %363 = vector.broadcast %cst_146 : f32 to vector<8x64xf32>
    %364 = arith.mulf %363, %362 : vector<8x64xf32>
    %cst_147 = arith.constant 5.000000e-01 : f32
    %365 = vector.broadcast %cst_147 : f32 to vector<8x64xf32>
    %366 = arith.addf %364, %365 : vector<8x64xf32>
    %367 = vector.extract_strided_slice %358 {offsets = [0, 64], sizes = [8, 64], strides = [1, 1]} : vector<8x256xf32> to vector<8x64xf32>
    %cst_148 = arith.constant 5.000000e-01 : f32
    %368 = vector.broadcast %cst_148 : f32 to vector<8x64xf32>
    %369 = arith.mulf %368, %367 : vector<8x64xf32>
    %370 = math.tanh %369 : vector<8x64xf32>
    %cst_149 = arith.constant 5.000000e-01 : f32
    %371 = vector.broadcast %cst_149 : f32 to vector<8x64xf32>
    %372 = arith.mulf %371, %370 : vector<8x64xf32>
    %cst_150 = arith.constant 5.000000e-01 : f32
    %373 = vector.broadcast %cst_150 : f32 to vector<8x64xf32>
    %374 = arith.addf %372, %373 : vector<8x64xf32>
    %375 = vector.extract_strided_slice %358 {offsets = [0, 128], sizes = [8, 64], strides = [1, 1]} : vector<8x256xf32> to vector<8x64xf32>
    %376 = math.tanh %375 : vector<8x64xf32>
    %377 = vector.extract_strided_slice %358 {offsets = [0, 192], sizes = [8, 64], strides = [1, 1]} : vector<8x256xf32> to vector<8x64xf32>
    %cst_151 = arith.constant 5.000000e-01 : f32
    %378 = vector.broadcast %cst_151 : f32 to vector<8x64xf32>
    %379 = arith.mulf %378, %377 : vector<8x64xf32>
    %380 = math.tanh %379 : vector<8x64xf32>
    %cst_152 = arith.constant 5.000000e-01 : f32
    %381 = vector.broadcast %cst_152 : f32 to vector<8x64xf32>
    %382 = arith.mulf %381, %380 : vector<8x64xf32>
    %cst_153 = arith.constant 5.000000e-01 : f32
    %383 = vector.broadcast %cst_153 : f32 to vector<8x64xf32>
    %384 = arith.addf %382, %383 : vector<8x64xf32>
    %385 = arith.mulf %374, %312 : vector<8x64xf32>
    %386 = arith.mulf %366, %376 : vector<8x64xf32>
    %387 = arith.addf %385, %386 : vector<8x64xf32>
    %388 = math.tanh %387 : vector<8x64xf32>
    %389 = arith.mulf %384, %388 : vector<8x64xf32>
    %c40 = arith.constant 40 : index
    %c0_154 = arith.constant 0 : index
    %390 = vector.load %arg10[%c40, %c0_154] : memref<128x256xf32, #tpu.memory_space<vmem>>, vector<8x256xf32>
    %391 = arith.truncf %350 : vector<8x64xf32> to vector<8x64xbf16>
    %c0_155 = arith.constant 0 : index
    %c0_156 = arith.constant 0 : index
    %392 = vector.load %arg3[%c0_155, %c0_156] : memref<64x256xbf16, #tpu.memory_space<vmem>>, vector<64x256xbf16>
    %cst_157 = arith.constant dense<0.000000e+00> : vector<8x256xf32>
    %393 = tpu.matmul %391, %392, %cst_157 {dimension_numbers = #tpu.dot_dimension_numbers<[1], [0], [0], [1], [0, 0, 1, 1], [], []>} : vector<8x64xbf16>, vector<64x256xbf16>, vector<8x256xf32> -> vector<8x256xf32>
    %394 = arith.addf %393, %390 : vector<8x256xf32>
    %395 = vector.extract_strided_slice %394 {offsets = [0, 0], sizes = [8, 64], strides = [1, 1]} : vector<8x256xf32> to vector<8x64xf32>
    %cst_158 = arith.constant 5.000000e-01 : f32
    %396 = vector.broadcast %cst_158 : f32 to vector<8x64xf32>
    %397 = arith.mulf %396, %395 : vector<8x64xf32>
    %398 = math.tanh %397 : vector<8x64xf32>
    %cst_159 = arith.constant 5.000000e-01 : f32
    %399 = vector.broadcast %cst_159 : f32 to vector<8x64xf32>
    %400 = arith.mulf %399, %398 : vector<8x64xf32>
    %cst_160 = arith.constant 5.000000e-01 : f32
    %401 = vector.broadcast %cst_160 : f32 to vector<8x64xf32>
    %402 = arith.addf %400, %401 : vector<8x64xf32>
    %403 = vector.extract_strided_slice %394 {offsets = [0, 64], sizes = [8, 64], strides = [1, 1]} : vector<8x256xf32> to vector<8x64xf32>
    %cst_161 = arith.constant 5.000000e-01 : f32
    %404 = vector.broadcast %cst_161 : f32 to vector<8x64xf32>
    %405 = arith.mulf %404, %403 : vector<8x64xf32>
    %406 = math.tanh %405 : vector<8x64xf32>
    %cst_162 = arith.constant 5.000000e-01 : f32
    %407 = vector.broadcast %cst_162 : f32 to vector<8x64xf32>
    %408 = arith.mulf %407, %406 : vector<8x64xf32>
    %cst_163 = arith.constant 5.000000e-01 : f32
    %409 = vector.broadcast %cst_163 : f32 to vector<8x64xf32>
    %410 = arith.addf %408, %409 : vector<8x64xf32>
    %411 = vector.extract_strided_slice %394 {offsets = [0, 128], sizes = [8, 64], strides = [1, 1]} : vector<8x256xf32> to vector<8x64xf32>
    %412 = math.tanh %411 : vector<8x64xf32>
    %413 = vector.extract_strided_slice %394 {offsets = [0, 192], sizes = [8, 64], strides = [1, 1]} : vector<8x256xf32> to vector<8x64xf32>
    %cst_164 = arith.constant 5.000000e-01 : f32
    %414 = vector.broadcast %cst_164 : f32 to vector<8x64xf32>
    %415 = arith.mulf %414, %413 : vector<8x64xf32>
    %416 = math.tanh %415 : vector<8x64xf32>
    %cst_165 = arith.constant 5.000000e-01 : f32
    %417 = vector.broadcast %cst_165 : f32 to vector<8x64xf32>
    %418 = arith.mulf %417, %416 : vector<8x64xf32>
    %cst_166 = arith.constant 5.000000e-01 : f32
    %419 = vector.broadcast %cst_166 : f32 to vector<8x64xf32>
    %420 = arith.addf %418, %419 : vector<8x64xf32>
    %421 = arith.mulf %410, %348 : vector<8x64xf32>
    %422 = arith.mulf %402, %412 : vector<8x64xf32>
    %423 = arith.addf %421, %422 : vector<8x64xf32>
    %424 = math.tanh %423 : vector<8x64xf32>
    %425 = arith.mulf %420, %424 : vector<8x64xf32>
    %426 = arith.truncf %425 : vector<8x64xf32> to vector<8x64xbf16>
    %c0_167 = arith.constant 0 : index
    %c0_168 = arith.constant 0 : index
    %427 = vector.load %arg4[%c0_167, %c0_168] : memref<64x256xbf16, #tpu.memory_space<vmem>>, vector<64x256xbf16>
    %cst_169 = arith.constant dense<0.000000e+00> : vector<8x256xf32>
    %428 = tpu.matmul %426, %427, %cst_169 {dimension_numbers = #tpu.dot_dimension_numbers<[1], [0], [0], [1], [0, 0, 1, 1], [], []>} : vector<8x64xbf16>, vector<64x256xbf16>, vector<8x256xf32> -> vector<8x256xf32>
    %429 = arith.truncf %389 : vector<8x64xf32> to vector<8x64xbf16>
    %c0_170 = arith.constant 0 : index
    %c0_171 = arith.constant 0 : index
    %430 = vector.load %arg5[%c0_170, %c0_171] : memref<64x256xbf16, #tpu.memory_space<vmem>>, vector<64x256xbf16>
    %cst_172 = arith.constant dense<0.000000e+00> : vector<8x256xf32>
    %431 = tpu.matmul %429, %430, %cst_172 {dimension_numbers = #tpu.dot_dimension_numbers<[1], [0], [0], [1], [0, 0, 1, 1], [], []>} : vector<8x64xbf16>, vector<64x256xbf16>, vector<8x256xf32> -> vector<8x256xf32>
    %432 = arith.addf %428, %431 : vector<8x256xf32>
    %433 = arith.addf %432, %10 : vector<8x256xf32>
    %434 = vector.extract_strided_slice %433 {offsets = [0, 0], sizes = [8, 64], strides = [1, 1]} : vector<8x256xf32> to vector<8x64xf32>
    %cst_173 = arith.constant 5.000000e-01 : f32
    %435 = vector.broadcast %cst_173 : f32 to vector<8x64xf32>
    %436 = arith.mulf %435, %434 : vector<8x64xf32>
    %437 = math.tanh %436 : vector<8x64xf32>
    %cst_174 = arith.constant 5.000000e-01 : f32
    %438 = vector.broadcast %cst_174 : f32 to vector<8x64xf32>
    %439 = arith.mulf %438, %437 : vector<8x64xf32>
    %cst_175 = arith.constant 5.000000e-01 : f32
    %440 = vector.broadcast %cst_175 : f32 to vector<8x64xf32>
    %441 = arith.addf %439, %440 : vector<8x64xf32>
    %442 = vector.extract_strided_slice %433 {offsets = [0, 64], sizes = [8, 64], strides = [1, 1]} : vector<8x256xf32> to vector<8x64xf32>
    %cst_176 = arith.constant 5.000000e-01 : f32
    %443 = vector.broadcast %cst_176 : f32 to vector<8x64xf32>
    %444 = arith.mulf %443, %442 : vector<8x64xf32>
    %445 = math.tanh %444 : vector<8x64xf32>
    %cst_177 = arith.constant 5.000000e-01 : f32
    %446 = vector.broadcast %cst_177 : f32 to vector<8x64xf32>
    %447 = arith.mulf %446, %445 : vector<8x64xf32>
    %cst_178 = arith.constant 5.000000e-01 : f32
    %448 = vector.broadcast %cst_178 : f32 to vector<8x64xf32>
    %449 = arith.addf %447, %448 : vector<8x64xf32>
    %450 = vector.extract_strided_slice %433 {offsets = [0, 128], sizes = [8, 64], strides = [1, 1]} : vector<8x256xf32> to vector<8x64xf32>
    %451 = math.tanh %450 : vector<8x64xf32>
    %452 = vector.extract_strided_slice %433 {offsets = [0, 192], sizes = [8, 64], strides = [1, 1]} : vector<8x256xf32> to vector<8x64xf32>
    %cst_179 = arith.constant 5.000000e-01 : f32
    %453 = vector.broadcast %cst_179 : f32 to vector<8x64xf32>
    %454 = arith.mulf %453, %452 : vector<8x64xf32>
    %455 = math.tanh %454 : vector<8x64xf32>
    %cst_180 = arith.constant 5.000000e-01 : f32
    %456 = vector.broadcast %cst_180 : f32 to vector<8x64xf32>
    %457 = arith.mulf %456, %455 : vector<8x64xf32>
    %cst_181 = arith.constant 5.000000e-01 : f32
    %458 = vector.broadcast %cst_181 : f32 to vector<8x64xf32>
    %459 = arith.addf %457, %458 : vector<8x64xf32>
    %460 = arith.mulf %449, %387 : vector<8x64xf32>
    %461 = arith.mulf %441, %451 : vector<8x64xf32>
    %462 = arith.addf %460, %461 : vector<8x64xf32>
    %463 = math.tanh %462 : vector<8x64xf32>
    %464 = arith.mulf %459, %463 : vector<8x64xf32>
    %c48 = arith.constant 48 : index
    %c0_182 = arith.constant 0 : index
    %465 = vector.load %arg10[%c48, %c0_182] : memref<128x256xf32, #tpu.memory_space<vmem>>, vector<8x256xf32>
    %466 = arith.truncf %425 : vector<8x64xf32> to vector<8x64xbf16>
    %c0_183 = arith.constant 0 : index
    %c0_184 = arith.constant 0 : index
    %467 = vector.load %arg3[%c0_183, %c0_184] : memref<64x256xbf16, #tpu.memory_space<vmem>>, vector<64x256xbf16>
    %cst_185 = arith.constant dense<0.000000e+00> : vector<8x256xf32>
    %468 = tpu.matmul %466, %467, %cst_185 {dimension_numbers = #tpu.dot_dimension_numbers<[1], [0], [0], [1], [0, 0, 1, 1], [], []>} : vector<8x64xbf16>, vector<64x256xbf16>, vector<8x256xf32> -> vector<8x256xf32>
    %469 = arith.addf %468, %465 : vector<8x256xf32>
    %470 = vector.extract_strided_slice %469 {offsets = [0, 0], sizes = [8, 64], strides = [1, 1]} : vector<8x256xf32> to vector<8x64xf32>
    %cst_186 = arith.constant 5.000000e-01 : f32
    %471 = vector.broadcast %cst_186 : f32 to vector<8x64xf32>
    %472 = arith.mulf %471, %470 : vector<8x64xf32>
    %473 = math.tanh %472 : vector<8x64xf32>
    %cst_187 = arith.constant 5.000000e-01 : f32
    %474 = vector.broadcast %cst_187 : f32 to vector<8x64xf32>
    %475 = arith.mulf %474, %473 : vector<8x64xf32>
    %cst_188 = arith.constant 5.000000e-01 : f32
    %476 = vector.broadcast %cst_188 : f32 to vector<8x64xf32>
    %477 = arith.addf %475, %476 : vector<8x64xf32>
    %478 = vector.extract_strided_slice %469 {offsets = [0, 64], sizes = [8, 64], strides = [1, 1]} : vector<8x256xf32> to vector<8x64xf32>
    %cst_189 = arith.constant 5.000000e-01 : f32
    %479 = vector.broadcast %cst_189 : f32 to vector<8x64xf32>
    %480 = arith.mulf %479, %478 : vector<8x64xf32>
    %481 = math.tanh %480 : vector<8x64xf32>
    %cst_190 = arith.constant 5.000000e-01 : f32
    %482 = vector.broadcast %cst_190 : f32 to vector<8x64xf32>
    %483 = arith.mulf %482, %481 : vector<8x64xf32>
    %cst_191 = arith.constant 5.000000e-01 : f32
    %484 = vector.broadcast %cst_191 : f32 to vector<8x64xf32>
    %485 = arith.addf %483, %484 : vector<8x64xf32>
    %486 = vector.extract_strided_slice %469 {offsets = [0, 128], sizes = [8, 64], strides = [1, 1]} : vector<8x256xf32> to vector<8x64xf32>
    %487 = math.tanh %486 : vector<8x64xf32>
    %488 = vector.extract_strided_slice %469 {offsets = [0, 192], sizes = [8, 64], strides = [1, 1]} : vector<8x256xf32> to vector<8x64xf32>
    %cst_192 = arith.constant 5.000000e-01 : f32
    %489 = vector.broadcast %cst_192 : f32 to vector<8x64xf32>
    %490 = arith.mulf %489, %488 : vector<8x64xf32>
    %491 = math.tanh %490 : vector<8x64xf32>
    %cst_193 = arith.constant 5.000000e-01 : f32
    %492 = vector.broadcast %cst_193 : f32 to vector<8x64xf32>
    %493 = arith.mulf %492, %491 : vector<8x64xf32>
    %cst_194 = arith.constant 5.000000e-01 : f32
    %494 = vector.broadcast %cst_194 : f32 to vector<8x64xf32>
    %495 = arith.addf %493, %494 : vector<8x64xf32>
    %496 = arith.mulf %485, %423 : vector<8x64xf32>
    %497 = arith.mulf %477, %487 : vector<8x64xf32>
    %498 = arith.addf %496, %497 : vector<8x64xf32>
    %499 = math.tanh %498 : vector<8x64xf32>
    %500 = arith.mulf %495, %499 : vector<8x64xf32>
    %501 = arith.truncf %500 : vector<8x64xf32> to vector<8x64xbf16>
    %c0_195 = arith.constant 0 : index
    %c0_196 = arith.constant 0 : index
    %502 = vector.load %arg4[%c0_195, %c0_196] : memref<64x256xbf16, #tpu.memory_space<vmem>>, vector<64x256xbf16>
    %cst_197 = arith.constant dense<0.000000e+00> : vector<8x256xf32>
    %503 = tpu.matmul %501, %502, %cst_197 {dimension_numbers = #tpu.dot_dimension_numbers<[1], [0], [0], [1], [0, 0, 1, 1], [], []>} : vector<8x64xbf16>, vector<64x256xbf16>, vector<8x256xf32> -> vector<8x256xf32>
    %504 = arith.truncf %464 : vector<8x64xf32> to vector<8x64xbf16>
    %c0_198 = arith.constant 0 : index
    %c0_199 = arith.constant 0 : index
    %505 = vector.load %arg5[%c0_198, %c0_199] : memref<64x256xbf16, #tpu.memory_space<vmem>>, vector<64x256xbf16>
    %cst_200 = arith.constant dense<0.000000e+00> : vector<8x256xf32>
    %506 = tpu.matmul %504, %505, %cst_200 {dimension_numbers = #tpu.dot_dimension_numbers<[1], [0], [0], [1], [0, 0, 1, 1], [], []>} : vector<8x64xbf16>, vector<64x256xbf16>, vector<8x256xf32> -> vector<8x256xf32>
    %507 = arith.addf %503, %506 : vector<8x256xf32>
    %508 = arith.addf %507, %10 : vector<8x256xf32>
    %509 = vector.extract_strided_slice %508 {offsets = [0, 0], sizes = [8, 64], strides = [1, 1]} : vector<8x256xf32> to vector<8x64xf32>
    %cst_201 = arith.constant 5.000000e-01 : f32
    %510 = vector.broadcast %cst_201 : f32 to vector<8x64xf32>
    %511 = arith.mulf %510, %509 : vector<8x64xf32>
    %512 = math.tanh %511 : vector<8x64xf32>
    %cst_202 = arith.constant 5.000000e-01 : f32
    %513 = vector.broadcast %cst_202 : f32 to vector<8x64xf32>
    %514 = arith.mulf %513, %512 : vector<8x64xf32>
    %cst_203 = arith.constant 5.000000e-01 : f32
    %515 = vector.broadcast %cst_203 : f32 to vector<8x64xf32>
    %516 = arith.addf %514, %515 : vector<8x64xf32>
    %517 = vector.extract_strided_slice %508 {offsets = [0, 64], sizes = [8, 64], strides = [1, 1]} : vector<8x256xf32> to vector<8x64xf32>
    %cst_204 = arith.constant 5.000000e-01 : f32
    %518 = vector.broadcast %cst_204 : f32 to vector<8x64xf32>
    %519 = arith.mulf %518, %517 : vector<8x64xf32>
    %520 = math.tanh %519 : vector<8x64xf32>
    %cst_205 = arith.constant 5.000000e-01 : f32
    %521 = vector.broadcast %cst_205 : f32 to vector<8x64xf32>
    %522 = arith.mulf %521, %520 : vector<8x64xf32>
    %cst_206 = arith.constant 5.000000e-01 : f32
    %523 = vector.broadcast %cst_206 : f32 to vector<8x64xf32>
    %524 = arith.addf %522, %523 : vector<8x64xf32>
    %525 = vector.extract_strided_slice %508 {offsets = [0, 128], sizes = [8, 64], strides = [1, 1]} : vector<8x256xf32> to vector<8x64xf32>
    %526 = math.tanh %525 : vector<8x64xf32>
    %527 = vector.extract_strided_slice %508 {offsets = [0, 192], sizes = [8, 64], strides = [1, 1]} : vector<8x256xf32> to vector<8x64xf32>
    %cst_207 = arith.constant 5.000000e-01 : f32
    %528 = vector.broadcast %cst_207 : f32 to vector<8x64xf32>
    %529 = arith.mulf %528, %527 : vector<8x64xf32>
    %530 = math.tanh %529 : vector<8x64xf32>
    %cst_208 = arith.constant 5.000000e-01 : f32
    %531 = vector.broadcast %cst_208 : f32 to vector<8x64xf32>
    %532 = arith.mulf %531, %530 : vector<8x64xf32>
    %cst_209 = arith.constant 5.000000e-01 : f32
    %533 = vector.broadcast %cst_209 : f32 to vector<8x64xf32>
    %534 = arith.addf %532, %533 : vector<8x64xf32>
    %535 = arith.mulf %524, %462 : vector<8x64xf32>
    %536 = arith.mulf %516, %526 : vector<8x64xf32>
    %537 = arith.addf %535, %536 : vector<8x64xf32>
    %538 = math.tanh %537 : vector<8x64xf32>
    %539 = arith.mulf %534, %538 : vector<8x64xf32>
    %c56 = arith.constant 56 : index
    %c0_210 = arith.constant 0 : index
    %540 = vector.load %arg10[%c56, %c0_210] : memref<128x256xf32, #tpu.memory_space<vmem>>, vector<8x256xf32>
    %541 = arith.truncf %500 : vector<8x64xf32> to vector<8x64xbf16>
    %c0_211 = arith.constant 0 : index
    %c0_212 = arith.constant 0 : index
    %542 = vector.load %arg3[%c0_211, %c0_212] : memref<64x256xbf16, #tpu.memory_space<vmem>>, vector<64x256xbf16>
    %cst_213 = arith.constant dense<0.000000e+00> : vector<8x256xf32>
    %543 = tpu.matmul %541, %542, %cst_213 {dimension_numbers = #tpu.dot_dimension_numbers<[1], [0], [0], [1], [0, 0, 1, 1], [], []>} : vector<8x64xbf16>, vector<64x256xbf16>, vector<8x256xf32> -> vector<8x256xf32>
    %544 = arith.addf %543, %540 : vector<8x256xf32>
    %545 = vector.extract_strided_slice %544 {offsets = [0, 0], sizes = [8, 64], strides = [1, 1]} : vector<8x256xf32> to vector<8x64xf32>
    %cst_214 = arith.constant 5.000000e-01 : f32
    %546 = vector.broadcast %cst_214 : f32 to vector<8x64xf32>
    %547 = arith.mulf %546, %545 : vector<8x64xf32>
    %548 = math.tanh %547 : vector<8x64xf32>
    %cst_215 = arith.constant 5.000000e-01 : f32
    %549 = vector.broadcast %cst_215 : f32 to vector<8x64xf32>
    %550 = arith.mulf %549, %548 : vector<8x64xf32>
    %cst_216 = arith.constant 5.000000e-01 : f32
    %551 = vector.broadcast %cst_216 : f32 to vector<8x64xf32>
    %552 = arith.addf %550, %551 : vector<8x64xf32>
    %553 = vector.extract_strided_slice %544 {offsets = [0, 64], sizes = [8, 64], strides = [1, 1]} : vector<8x256xf32> to vector<8x64xf32>
    %cst_217 = arith.constant 5.000000e-01 : f32
    %554 = vector.broadcast %cst_217 : f32 to vector<8x64xf32>
    %555 = arith.mulf %554, %553 : vector<8x64xf32>
    %556 = math.tanh %555 : vector<8x64xf32>
    %cst_218 = arith.constant 5.000000e-01 : f32
    %557 = vector.broadcast %cst_218 : f32 to vector<8x64xf32>
    %558 = arith.mulf %557, %556 : vector<8x64xf32>
    %cst_219 = arith.constant 5.000000e-01 : f32
    %559 = vector.broadcast %cst_219 : f32 to vector<8x64xf32>
    %560 = arith.addf %558, %559 : vector<8x64xf32>
    %561 = vector.extract_strided_slice %544 {offsets = [0, 128], sizes = [8, 64], strides = [1, 1]} : vector<8x256xf32> to vector<8x64xf32>
    %562 = math.tanh %561 : vector<8x64xf32>
    %563 = vector.extract_strided_slice %544 {offsets = [0, 192], sizes = [8, 64], strides = [1, 1]} : vector<8x256xf32> to vector<8x64xf32>
    %cst_220 = arith.constant 5.000000e-01 : f32
    %564 = vector.broadcast %cst_220 : f32 to vector<8x64xf32>
    %565 = arith.mulf %564, %563 : vector<8x64xf32>
    %566 = math.tanh %565 : vector<8x64xf32>
    %cst_221 = arith.constant 5.000000e-01 : f32
    %567 = vector.broadcast %cst_221 : f32 to vector<8x64xf32>
    %568 = arith.mulf %567, %566 : vector<8x64xf32>
    %cst_222 = arith.constant 5.000000e-01 : f32
    %569 = vector.broadcast %cst_222 : f32 to vector<8x64xf32>
    %570 = arith.addf %568, %569 : vector<8x64xf32>
    %571 = arith.mulf %560, %498 : vector<8x64xf32>
    %572 = arith.mulf %552, %562 : vector<8x64xf32>
    %573 = arith.addf %571, %572 : vector<8x64xf32>
    %574 = math.tanh %573 : vector<8x64xf32>
    %575 = arith.mulf %570, %574 : vector<8x64xf32>
    %576 = arith.truncf %575 : vector<8x64xf32> to vector<8x64xbf16>
    %c0_223 = arith.constant 0 : index
    %c0_224 = arith.constant 0 : index
    %577 = vector.load %arg4[%c0_223, %c0_224] : memref<64x256xbf16, #tpu.memory_space<vmem>>, vector<64x256xbf16>
    %cst_225 = arith.constant dense<0.000000e+00> : vector<8x256xf32>
    %578 = tpu.matmul %576, %577, %cst_225 {dimension_numbers = #tpu.dot_dimension_numbers<[1], [0], [0], [1], [0, 0, 1, 1], [], []>} : vector<8x64xbf16>, vector<64x256xbf16>, vector<8x256xf32> -> vector<8x256xf32>
    %579 = arith.truncf %539 : vector<8x64xf32> to vector<8x64xbf16>
    %c0_226 = arith.constant 0 : index
    %c0_227 = arith.constant 0 : index
    %580 = vector.load %arg5[%c0_226, %c0_227] : memref<64x256xbf16, #tpu.memory_space<vmem>>, vector<64x256xbf16>
    %cst_228 = arith.constant dense<0.000000e+00> : vector<8x256xf32>
    %581 = tpu.matmul %579, %580, %cst_228 {dimension_numbers = #tpu.dot_dimension_numbers<[1], [0], [0], [1], [0, 0, 1, 1], [], []>} : vector<8x64xbf16>, vector<64x256xbf16>, vector<8x256xf32> -> vector<8x256xf32>
    %582 = arith.addf %578, %581 : vector<8x256xf32>
    %583 = arith.addf %582, %10 : vector<8x256xf32>
    %584 = vector.extract_strided_slice %583 {offsets = [0, 0], sizes = [8, 64], strides = [1, 1]} : vector<8x256xf32> to vector<8x64xf32>
    %cst_229 = arith.constant 5.000000e-01 : f32
    %585 = vector.broadcast %cst_229 : f32 to vector<8x64xf32>
    %586 = arith.mulf %585, %584 : vector<8x64xf32>
    %587 = math.tanh %586 : vector<8x64xf32>
    %cst_230 = arith.constant 5.000000e-01 : f32
    %588 = vector.broadcast %cst_230 : f32 to vector<8x64xf32>
    %589 = arith.mulf %588, %587 : vector<8x64xf32>
    %cst_231 = arith.constant 5.000000e-01 : f32
    %590 = vector.broadcast %cst_231 : f32 to vector<8x64xf32>
    %591 = arith.addf %589, %590 : vector<8x64xf32>
    %592 = vector.extract_strided_slice %583 {offsets = [0, 64], sizes = [8, 64], strides = [1, 1]} : vector<8x256xf32> to vector<8x64xf32>
    %cst_232 = arith.constant 5.000000e-01 : f32
    %593 = vector.broadcast %cst_232 : f32 to vector<8x64xf32>
    %594 = arith.mulf %593, %592 : vector<8x64xf32>
    %595 = math.tanh %594 : vector<8x64xf32>
    %cst_233 = arith.constant 5.000000e-01 : f32
    %596 = vector.broadcast %cst_233 : f32 to vector<8x64xf32>
    %597 = arith.mulf %596, %595 : vector<8x64xf32>
    %cst_234 = arith.constant 5.000000e-01 : f32
    %598 = vector.broadcast %cst_234 : f32 to vector<8x64xf32>
    %599 = arith.addf %597, %598 : vector<8x64xf32>
    %600 = vector.extract_strided_slice %583 {offsets = [0, 128], sizes = [8, 64], strides = [1, 1]} : vector<8x256xf32> to vector<8x64xf32>
    %601 = math.tanh %600 : vector<8x64xf32>
    %602 = vector.extract_strided_slice %583 {offsets = [0, 192], sizes = [8, 64], strides = [1, 1]} : vector<8x256xf32> to vector<8x64xf32>
    %cst_235 = arith.constant 5.000000e-01 : f32
    %603 = vector.broadcast %cst_235 : f32 to vector<8x64xf32>
    %604 = arith.mulf %603, %602 : vector<8x64xf32>
    %605 = math.tanh %604 : vector<8x64xf32>
    %cst_236 = arith.constant 5.000000e-01 : f32
    %606 = vector.broadcast %cst_236 : f32 to vector<8x64xf32>
    %607 = arith.mulf %606, %605 : vector<8x64xf32>
    %cst_237 = arith.constant 5.000000e-01 : f32
    %608 = vector.broadcast %cst_237 : f32 to vector<8x64xf32>
    %609 = arith.addf %607, %608 : vector<8x64xf32>
    %610 = arith.mulf %599, %537 : vector<8x64xf32>
    %611 = arith.mulf %591, %601 : vector<8x64xf32>
    %612 = arith.addf %610, %611 : vector<8x64xf32>
    %613 = math.tanh %612 : vector<8x64xf32>
    %614 = arith.mulf %609, %613 : vector<8x64xf32>
    %c64 = arith.constant 64 : index
    %c0_238 = arith.constant 0 : index
    %615 = vector.load %arg10[%c64, %c0_238] : memref<128x256xf32, #tpu.memory_space<vmem>>, vector<8x256xf32>
    %616 = arith.truncf %575 : vector<8x64xf32> to vector<8x64xbf16>
    %c0_239 = arith.constant 0 : index
    %c0_240 = arith.constant 0 : index
    %617 = vector.load %arg3[%c0_239, %c0_240] : memref<64x256xbf16, #tpu.memory_space<vmem>>, vector<64x256xbf16>
    %cst_241 = arith.constant dense<0.000000e+00> : vector<8x256xf32>
    %618 = tpu.matmul %616, %617, %cst_241 {dimension_numbers = #tpu.dot_dimension_numbers<[1], [0], [0], [1], [0, 0, 1, 1], [], []>} : vector<8x64xbf16>, vector<64x256xbf16>, vector<8x256xf32> -> vector<8x256xf32>
    %619 = arith.addf %618, %615 : vector<8x256xf32>
    %620 = vector.extract_strided_slice %619 {offsets = [0, 0], sizes = [8, 64], strides = [1, 1]} : vector<8x256xf32> to vector<8x64xf32>
    %cst_242 = arith.constant 5.000000e-01 : f32
    %621 = vector.broadcast %cst_242 : f32 to vector<8x64xf32>
    %622 = arith.mulf %621, %620 : vector<8x64xf32>
    %623 = math.tanh %622 : vector<8x64xf32>
    %cst_243 = arith.constant 5.000000e-01 : f32
    %624 = vector.broadcast %cst_243 : f32 to vector<8x64xf32>
    %625 = arith.mulf %624, %623 : vector<8x64xf32>
    %cst_244 = arith.constant 5.000000e-01 : f32
    %626 = vector.broadcast %cst_244 : f32 to vector<8x64xf32>
    %627 = arith.addf %625, %626 : vector<8x64xf32>
    %628 = vector.extract_strided_slice %619 {offsets = [0, 64], sizes = [8, 64], strides = [1, 1]} : vector<8x256xf32> to vector<8x64xf32>
    %cst_245 = arith.constant 5.000000e-01 : f32
    %629 = vector.broadcast %cst_245 : f32 to vector<8x64xf32>
    %630 = arith.mulf %629, %628 : vector<8x64xf32>
    %631 = math.tanh %630 : vector<8x64xf32>
    %cst_246 = arith.constant 5.000000e-01 : f32
    %632 = vector.broadcast %cst_246 : f32 to vector<8x64xf32>
    %633 = arith.mulf %632, %631 : vector<8x64xf32>
    %cst_247 = arith.constant 5.000000e-01 : f32
    %634 = vector.broadcast %cst_247 : f32 to vector<8x64xf32>
    %635 = arith.addf %633, %634 : vector<8x64xf32>
    %636 = vector.extract_strided_slice %619 {offsets = [0, 128], sizes = [8, 64], strides = [1, 1]} : vector<8x256xf32> to vector<8x64xf32>
    %637 = math.tanh %636 : vector<8x64xf32>
    %638 = vector.extract_strided_slice %619 {offsets = [0, 192], sizes = [8, 64], strides = [1, 1]} : vector<8x256xf32> to vector<8x64xf32>
    %cst_248 = arith.constant 5.000000e-01 : f32
    %639 = vector.broadcast %cst_248 : f32 to vector<8x64xf32>
    %640 = arith.mulf %639, %638 : vector<8x64xf32>
    %641 = math.tanh %640 : vector<8x64xf32>
    %cst_249 = arith.constant 5.000000e-01 : f32
    %642 = vector.broadcast %cst_249 : f32 to vector<8x64xf32>
    %643 = arith.mulf %642, %641 : vector<8x64xf32>
    %cst_250 = arith.constant 5.000000e-01 : f32
    %644 = vector.broadcast %cst_250 : f32 to vector<8x64xf32>
    %645 = arith.addf %643, %644 : vector<8x64xf32>
    %646 = arith.mulf %635, %573 : vector<8x64xf32>
    %647 = arith.mulf %627, %637 : vector<8x64xf32>
    %648 = arith.addf %646, %647 : vector<8x64xf32>
    %649 = math.tanh %648 : vector<8x64xf32>
    %650 = arith.mulf %645, %649 : vector<8x64xf32>
    %651 = arith.truncf %650 : vector<8x64xf32> to vector<8x64xbf16>
    %c0_251 = arith.constant 0 : index
    %c0_252 = arith.constant 0 : index
    %652 = vector.load %arg4[%c0_251, %c0_252] : memref<64x256xbf16, #tpu.memory_space<vmem>>, vector<64x256xbf16>
    %cst_253 = arith.constant dense<0.000000e+00> : vector<8x256xf32>
    %653 = tpu.matmul %651, %652, %cst_253 {dimension_numbers = #tpu.dot_dimension_numbers<[1], [0], [0], [1], [0, 0, 1, 1], [], []>} : vector<8x64xbf16>, vector<64x256xbf16>, vector<8x256xf32> -> vector<8x256xf32>
    %654 = arith.truncf %614 : vector<8x64xf32> to vector<8x64xbf16>
    %c0_254 = arith.constant 0 : index
    %c0_255 = arith.constant 0 : index
    %655 = vector.load %arg5[%c0_254, %c0_255] : memref<64x256xbf16, #tpu.memory_space<vmem>>, vector<64x256xbf16>
    %cst_256 = arith.constant dense<0.000000e+00> : vector<8x256xf32>
    %656 = tpu.matmul %654, %655, %cst_256 {dimension_numbers = #tpu.dot_dimension_numbers<[1], [0], [0], [1], [0, 0, 1, 1], [], []>} : vector<8x64xbf16>, vector<64x256xbf16>, vector<8x256xf32> -> vector<8x256xf32>
    %657 = arith.addf %653, %656 : vector<8x256xf32>
    %658 = arith.addf %657, %10 : vector<8x256xf32>
    %659 = vector.extract_strided_slice %658 {offsets = [0, 0], sizes = [8, 64], strides = [1, 1]} : vector<8x256xf32> to vector<8x64xf32>
    %cst_257 = arith.constant 5.000000e-01 : f32
    %660 = vector.broadcast %cst_257 : f32 to vector<8x64xf32>
    %661 = arith.mulf %660, %659 : vector<8x64xf32>
    %662 = math.tanh %661 : vector<8x64xf32>
    %cst_258 = arith.constant 5.000000e-01 : f32
    %663 = vector.broadcast %cst_258 : f32 to vector<8x64xf32>
    %664 = arith.mulf %663, %662 : vector<8x64xf32>
    %cst_259 = arith.constant 5.000000e-01 : f32
    %665 = vector.broadcast %cst_259 : f32 to vector<8x64xf32>
    %666 = arith.addf %664, %665 : vector<8x64xf32>
    %667 = vector.extract_strided_slice %658 {offsets = [0, 64], sizes = [8, 64], strides = [1, 1]} : vector<8x256xf32> to vector<8x64xf32>
    %cst_260 = arith.constant 5.000000e-01 : f32
    %668 = vector.broadcast %cst_260 : f32 to vector<8x64xf32>
    %669 = arith.mulf %668, %667 : vector<8x64xf32>
    %670 = math.tanh %669 : vector<8x64xf32>
    %cst_261 = arith.constant 5.000000e-01 : f32
    %671 = vector.broadcast %cst_261 : f32 to vector<8x64xf32>
    %672 = arith.mulf %671, %670 : vector<8x64xf32>
    %cst_262 = arith.constant 5.000000e-01 : f32
    %673 = vector.broadcast %cst_262 : f32 to vector<8x64xf32>
    %674 = arith.addf %672, %673 : vector<8x64xf32>
    %675 = vector.extract_strided_slice %658 {offsets = [0, 128], sizes = [8, 64], strides = [1, 1]} : vector<8x256xf32> to vector<8x64xf32>
    %676 = math.tanh %675 : vector<8x64xf32>
    %677 = vector.extract_strided_slice %658 {offsets = [0, 192], sizes = [8, 64], strides = [1, 1]} : vector<8x256xf32> to vector<8x64xf32>
    %cst_263 = arith.constant 5.000000e-01 : f32
    %678 = vector.broadcast %cst_263 : f32 to vector<8x64xf32>
    %679 = arith.mulf %678, %677 : vector<8x64xf32>
    %680 = math.tanh %679 : vector<8x64xf32>
    %cst_264 = arith.constant 5.000000e-01 : f32
    %681 = vector.broadcast %cst_264 : f32 to vector<8x64xf32>
    %682 = arith.mulf %681, %680 : vector<8x64xf32>
    %cst_265 = arith.constant 5.000000e-01 : f32
    %683 = vector.broadcast %cst_265 : f32 to vector<8x64xf32>
    %684 = arith.addf %682, %683 : vector<8x64xf32>
    %685 = arith.mulf %674, %612 : vector<8x64xf32>
    %686 = arith.mulf %666, %676 : vector<8x64xf32>
    %687 = arith.addf %685, %686 : vector<8x64xf32>
    %688 = math.tanh %687 : vector<8x64xf32>
    %689 = arith.mulf %684, %688 : vector<8x64xf32>
    %c72 = arith.constant 72 : index
    %c0_266 = arith.constant 0 : index
    %690 = vector.load %arg10[%c72, %c0_266] : memref<128x256xf32, #tpu.memory_space<vmem>>, vector<8x256xf32>
    %691 = arith.truncf %650 : vector<8x64xf32> to vector<8x64xbf16>
    %c0_267 = arith.constant 0 : index
    %c0_268 = arith.constant 0 : index
    %692 = vector.load %arg3[%c0_267, %c0_268] : memref<64x256xbf16, #tpu.memory_space<vmem>>, vector<64x256xbf16>
    %cst_269 = arith.constant dense<0.000000e+00> : vector<8x256xf32>
    %693 = tpu.matmul %691, %692, %cst_269 {dimension_numbers = #tpu.dot_dimension_numbers<[1], [0], [0], [1], [0, 0, 1, 1], [], []>} : vector<8x64xbf16>, vector<64x256xbf16>, vector<8x256xf32> -> vector<8x256xf32>
    %694 = arith.addf %693, %690 : vector<8x256xf32>
    %695 = vector.extract_strided_slice %694 {offsets = [0, 0], sizes = [8, 64], strides = [1, 1]} : vector<8x256xf32> to vector<8x64xf32>
    %cst_270 = arith.constant 5.000000e-01 : f32
    %696 = vector.broadcast %cst_270 : f32 to vector<8x64xf32>
    %697 = arith.mulf %696, %695 : vector<8x64xf32>
    %698 = math.tanh %697 : vector<8x64xf32>
    %cst_271 = arith.constant 5.000000e-01 : f32
    %699 = vector.broadcast %cst_271 : f32 to vector<8x64xf32>
    %700 = arith.mulf %699, %698 : vector<8x64xf32>
    %cst_272 = arith.constant 5.000000e-01 : f32
    %701 = vector.broadcast %cst_272 : f32 to vector<8x64xf32>
    %702 = arith.addf %700, %701 : vector<8x64xf32>
    %703 = vector.extract_strided_slice %694 {offsets = [0, 64], sizes = [8, 64], strides = [1, 1]} : vector<8x256xf32> to vector<8x64xf32>
    %cst_273 = arith.constant 5.000000e-01 : f32
    %704 = vector.broadcast %cst_273 : f32 to vector<8x64xf32>
    %705 = arith.mulf %704, %703 : vector<8x64xf32>
    %706 = math.tanh %705 : vector<8x64xf32>
    %cst_274 = arith.constant 5.000000e-01 : f32
    %707 = vector.broadcast %cst_274 : f32 to vector<8x64xf32>
    %708 = arith.mulf %707, %706 : vector<8x64xf32>
    %cst_275 = arith.constant 5.000000e-01 : f32
    %709 = vector.broadcast %cst_275 : f32 to vector<8x64xf32>
    %710 = arith.addf %708, %709 : vector<8x64xf32>
    %711 = vector.extract_strided_slice %694 {offsets = [0, 128], sizes = [8, 64], strides = [1, 1]} : vector<8x256xf32> to vector<8x64xf32>
    %712 = math.tanh %711 : vector<8x64xf32>
    %713 = vector.extract_strided_slice %694 {offsets = [0, 192], sizes = [8, 64], strides = [1, 1]} : vector<8x256xf32> to vector<8x64xf32>
    %cst_276 = arith.constant 5.000000e-01 : f32
    %714 = vector.broadcast %cst_276 : f32 to vector<8x64xf32>
    %715 = arith.mulf %714, %713 : vector<8x64xf32>
    %716 = math.tanh %715 : vector<8x64xf32>
    %cst_277 = arith.constant 5.000000e-01 : f32
    %717 = vector.broadcast %cst_277 : f32 to vector<8x64xf32>
    %718 = arith.mulf %717, %716 : vector<8x64xf32>
    %cst_278 = arith.constant 5.000000e-01 : f32
    %719 = vector.broadcast %cst_278 : f32 to vector<8x64xf32>
    %720 = arith.addf %718, %719 : vector<8x64xf32>
    %721 = arith.mulf %710, %648 : vector<8x64xf32>
    %722 = arith.mulf %702, %712 : vector<8x64xf32>
    %723 = arith.addf %721, %722 : vector<8x64xf32>
    %724 = math.tanh %723 : vector<8x64xf32>
    %725 = arith.mulf %720, %724 : vector<8x64xf32>
    %726 = arith.truncf %725 : vector<8x64xf32> to vector<8x64xbf16>
    %c0_279 = arith.constant 0 : index
    %c0_280 = arith.constant 0 : index
    %727 = vector.load %arg4[%c0_279, %c0_280] : memref<64x256xbf16, #tpu.memory_space<vmem>>, vector<64x256xbf16>
    %cst_281 = arith.constant dense<0.000000e+00> : vector<8x256xf32>
    %728 = tpu.matmul %726, %727, %cst_281 {dimension_numbers = #tpu.dot_dimension_numbers<[1], [0], [0], [1], [0, 0, 1, 1], [], []>} : vector<8x64xbf16>, vector<64x256xbf16>, vector<8x256xf32> -> vector<8x256xf32>
    %729 = arith.truncf %689 : vector<8x64xf32> to vector<8x64xbf16>
    %c0_282 = arith.constant 0 : index
    %c0_283 = arith.constant 0 : index
    %730 = vector.load %arg5[%c0_282, %c0_283] : memref<64x256xbf16, #tpu.memory_space<vmem>>, vector<64x256xbf16>
    %cst_284 = arith.constant dense<0.000000e+00> : vector<8x256xf32>
    %731 = tpu.matmul %729, %730, %cst_284 {dimension_numbers = #tpu.dot_dimension_numbers<[1], [0], [0], [1], [0, 0, 1, 1], [], []>} : vector<8x64xbf16>, vector<64x256xbf16>, vector<8x256xf32> -> vector<8x256xf32>
    %732 = arith.addf %728, %731 : vector<8x256xf32>
    %733 = arith.addf %732, %10 : vector<8x256xf32>
    %734 = vector.extract_strided_slice %733 {offsets = [0, 0], sizes = [8, 64], strides = [1, 1]} : vector<8x256xf32> to vector<8x64xf32>
    %cst_285 = arith.constant 5.000000e-01 : f32
    %735 = vector.broadcast %cst_285 : f32 to vector<8x64xf32>
    %736 = arith.mulf %735, %734 : vector<8x64xf32>
    %737 = math.tanh %736 : vector<8x64xf32>
    %cst_286 = arith.constant 5.000000e-01 : f32
    %738 = vector.broadcast %cst_286 : f32 to vector<8x64xf32>
    %739 = arith.mulf %738, %737 : vector<8x64xf32>
    %cst_287 = arith.constant 5.000000e-01 : f32
    %740 = vector.broadcast %cst_287 : f32 to vector<8x64xf32>
    %741 = arith.addf %739, %740 : vector<8x64xf32>
    %742 = vector.extract_strided_slice %733 {offsets = [0, 64], sizes = [8, 64], strides = [1, 1]} : vector<8x256xf32> to vector<8x64xf32>
    %cst_288 = arith.constant 5.000000e-01 : f32
    %743 = vector.broadcast %cst_288 : f32 to vector<8x64xf32>
    %744 = arith.mulf %743, %742 : vector<8x64xf32>
    %745 = math.tanh %744 : vector<8x64xf32>
    %cst_289 = arith.constant 5.000000e-01 : f32
    %746 = vector.broadcast %cst_289 : f32 to vector<8x64xf32>
    %747 = arith.mulf %746, %745 : vector<8x64xf32>
    %cst_290 = arith.constant 5.000000e-01 : f32
    %748 = vector.broadcast %cst_290 : f32 to vector<8x64xf32>
    %749 = arith.addf %747, %748 : vector<8x64xf32>
    %750 = vector.extract_strided_slice %733 {offsets = [0, 128], sizes = [8, 64], strides = [1, 1]} : vector<8x256xf32> to vector<8x64xf32>
    %751 = math.tanh %750 : vector<8x64xf32>
    %752 = vector.extract_strided_slice %733 {offsets = [0, 192], sizes = [8, 64], strides = [1, 1]} : vector<8x256xf32> to vector<8x64xf32>
    %cst_291 = arith.constant 5.000000e-01 : f32
    %753 = vector.broadcast %cst_291 : f32 to vector<8x64xf32>
    %754 = arith.mulf %753, %752 : vector<8x64xf32>
    %755 = math.tanh %754 : vector<8x64xf32>
    %cst_292 = arith.constant 5.000000e-01 : f32
    %756 = vector.broadcast %cst_292 : f32 to vector<8x64xf32>
    %757 = arith.mulf %756, %755 : vector<8x64xf32>
    %cst_293 = arith.constant 5.000000e-01 : f32
    %758 = vector.broadcast %cst_293 : f32 to vector<8x64xf32>
    %759 = arith.addf %757, %758 : vector<8x64xf32>
    %760 = arith.mulf %749, %687 : vector<8x64xf32>
    %761 = arith.mulf %741, %751 : vector<8x64xf32>
    %762 = arith.addf %760, %761 : vector<8x64xf32>
    %763 = math.tanh %762 : vector<8x64xf32>
    %764 = arith.mulf %759, %763 : vector<8x64xf32>
    %c80 = arith.constant 80 : index
    %c0_294 = arith.constant 0 : index
    %765 = vector.load %arg10[%c80, %c0_294] : memref<128x256xf32, #tpu.memory_space<vmem>>, vector<8x256xf32>
    %766 = arith.truncf %725 : vector<8x64xf32> to vector<8x64xbf16>
    %c0_295 = arith.constant 0 : index
    %c0_296 = arith.constant 0 : index
    %767 = vector.load %arg3[%c0_295, %c0_296] : memref<64x256xbf16, #tpu.memory_space<vmem>>, vector<64x256xbf16>
    %cst_297 = arith.constant dense<0.000000e+00> : vector<8x256xf32>
    %768 = tpu.matmul %766, %767, %cst_297 {dimension_numbers = #tpu.dot_dimension_numbers<[1], [0], [0], [1], [0, 0, 1, 1], [], []>} : vector<8x64xbf16>, vector<64x256xbf16>, vector<8x256xf32> -> vector<8x256xf32>
    %769 = arith.addf %768, %765 : vector<8x256xf32>
    %770 = vector.extract_strided_slice %769 {offsets = [0, 0], sizes = [8, 64], strides = [1, 1]} : vector<8x256xf32> to vector<8x64xf32>
    %cst_298 = arith.constant 5.000000e-01 : f32
    %771 = vector.broadcast %cst_298 : f32 to vector<8x64xf32>
    %772 = arith.mulf %771, %770 : vector<8x64xf32>
    %773 = math.tanh %772 : vector<8x64xf32>
    %cst_299 = arith.constant 5.000000e-01 : f32
    %774 = vector.broadcast %cst_299 : f32 to vector<8x64xf32>
    %775 = arith.mulf %774, %773 : vector<8x64xf32>
    %cst_300 = arith.constant 5.000000e-01 : f32
    %776 = vector.broadcast %cst_300 : f32 to vector<8x64xf32>
    %777 = arith.addf %775, %776 : vector<8x64xf32>
    %778 = vector.extract_strided_slice %769 {offsets = [0, 64], sizes = [8, 64], strides = [1, 1]} : vector<8x256xf32> to vector<8x64xf32>
    %cst_301 = arith.constant 5.000000e-01 : f32
    %779 = vector.broadcast %cst_301 : f32 to vector<8x64xf32>
    %780 = arith.mulf %779, %778 : vector<8x64xf32>
    %781 = math.tanh %780 : vector<8x64xf32>
    %cst_302 = arith.constant 5.000000e-01 : f32
    %782 = vector.broadcast %cst_302 : f32 to vector<8x64xf32>
    %783 = arith.mulf %782, %781 : vector<8x64xf32>
    %cst_303 = arith.constant 5.000000e-01 : f32
    %784 = vector.broadcast %cst_303 : f32 to vector<8x64xf32>
    %785 = arith.addf %783, %784 : vector<8x64xf32>
    %786 = vector.extract_strided_slice %769 {offsets = [0, 128], sizes = [8, 64], strides = [1, 1]} : vector<8x256xf32> to vector<8x64xf32>
    %787 = math.tanh %786 : vector<8x64xf32>
    %788 = vector.extract_strided_slice %769 {offsets = [0, 192], sizes = [8, 64], strides = [1, 1]} : vector<8x256xf32> to vector<8x64xf32>
    %cst_304 = arith.constant 5.000000e-01 : f32
    %789 = vector.broadcast %cst_304 : f32 to vector<8x64xf32>
    %790 = arith.mulf %789, %788 : vector<8x64xf32>
    %791 = math.tanh %790 : vector<8x64xf32>
    %cst_305 = arith.constant 5.000000e-01 : f32
    %792 = vector.broadcast %cst_305 : f32 to vector<8x64xf32>
    %793 = arith.mulf %792, %791 : vector<8x64xf32>
    %cst_306 = arith.constant 5.000000e-01 : f32
    %794 = vector.broadcast %cst_306 : f32 to vector<8x64xf32>
    %795 = arith.addf %793, %794 : vector<8x64xf32>
    %796 = arith.mulf %785, %723 : vector<8x64xf32>
    %797 = arith.mulf %777, %787 : vector<8x64xf32>
    %798 = arith.addf %796, %797 : vector<8x64xf32>
    %799 = math.tanh %798 : vector<8x64xf32>
    %800 = arith.mulf %795, %799 : vector<8x64xf32>
    %801 = arith.truncf %800 : vector<8x64xf32> to vector<8x64xbf16>
    %c0_307 = arith.constant 0 : index
    %c0_308 = arith.constant 0 : index
    %802 = vector.load %arg4[%c0_307, %c0_308] : memref<64x256xbf16, #tpu.memory_space<vmem>>, vector<64x256xbf16>
    %cst_309 = arith.constant dense<0.000000e+00> : vector<8x256xf32>
    %803 = tpu.matmul %801, %802, %cst_309 {dimension_numbers = #tpu.dot_dimension_numbers<[1], [0], [0], [1], [0, 0, 1, 1], [], []>} : vector<8x64xbf16>, vector<64x256xbf16>, vector<8x256xf32> -> vector<8x256xf32>
    %804 = arith.truncf %764 : vector<8x64xf32> to vector<8x64xbf16>
    %c0_310 = arith.constant 0 : index
    %c0_311 = arith.constant 0 : index
    %805 = vector.load %arg5[%c0_310, %c0_311] : memref<64x256xbf16, #tpu.memory_space<vmem>>, vector<64x256xbf16>
    %cst_312 = arith.constant dense<0.000000e+00> : vector<8x256xf32>
    %806 = tpu.matmul %804, %805, %cst_312 {dimension_numbers = #tpu.dot_dimension_numbers<[1], [0], [0], [1], [0, 0, 1, 1], [], []>} : vector<8x64xbf16>, vector<64x256xbf16>, vector<8x256xf32> -> vector<8x256xf32>
    %807 = arith.addf %803, %806 : vector<8x256xf32>
    %808 = arith.addf %807, %10 : vector<8x256xf32>
    %809 = vector.extract_strided_slice %808 {offsets = [0, 0], sizes = [8, 64], strides = [1, 1]} : vector<8x256xf32> to vector<8x64xf32>
    %cst_313 = arith.constant 5.000000e-01 : f32
    %810 = vector.broadcast %cst_313 : f32 to vector<8x64xf32>
    %811 = arith.mulf %810, %809 : vector<8x64xf32>
    %812 = math.tanh %811 : vector<8x64xf32>
    %cst_314 = arith.constant 5.000000e-01 : f32
    %813 = vector.broadcast %cst_314 : f32 to vector<8x64xf32>
    %814 = arith.mulf %813, %812 : vector<8x64xf32>
    %cst_315 = arith.constant 5.000000e-01 : f32
    %815 = vector.broadcast %cst_315 : f32 to vector<8x64xf32>
    %816 = arith.addf %814, %815 : vector<8x64xf32>
    %817 = vector.extract_strided_slice %808 {offsets = [0, 64], sizes = [8, 64], strides = [1, 1]} : vector<8x256xf32> to vector<8x64xf32>
    %cst_316 = arith.constant 5.000000e-01 : f32
    %818 = vector.broadcast %cst_316 : f32 to vector<8x64xf32>
    %819 = arith.mulf %818, %817 : vector<8x64xf32>
    %820 = math.tanh %819 : vector<8x64xf32>
    %cst_317 = arith.constant 5.000000e-01 : f32
    %821 = vector.broadcast %cst_317 : f32 to vector<8x64xf32>
    %822 = arith.mulf %821, %820 : vector<8x64xf32>
    %cst_318 = arith.constant 5.000000e-01 : f32
    %823 = vector.broadcast %cst_318 : f32 to vector<8x64xf32>
    %824 = arith.addf %822, %823 : vector<8x64xf32>
    %825 = vector.extract_strided_slice %808 {offsets = [0, 128], sizes = [8, 64], strides = [1, 1]} : vector<8x256xf32> to vector<8x64xf32>
    %826 = math.tanh %825 : vector<8x64xf32>
    %827 = vector.extract_strided_slice %808 {offsets = [0, 192], sizes = [8, 64], strides = [1, 1]} : vector<8x256xf32> to vector<8x64xf32>
    %cst_319 = arith.constant 5.000000e-01 : f32
    %828 = vector.broadcast %cst_319 : f32 to vector<8x64xf32>
    %829 = arith.mulf %828, %827 : vector<8x64xf32>
    %830 = math.tanh %829 : vector<8x64xf32>
    %cst_320 = arith.constant 5.000000e-01 : f32
    %831 = vector.broadcast %cst_320 : f32 to vector<8x64xf32>
    %832 = arith.mulf %831, %830 : vector<8x64xf32>
    %cst_321 = arith.constant 5.000000e-01 : f32
    %833 = vector.broadcast %cst_321 : f32 to vector<8x64xf32>
    %834 = arith.addf %832, %833 : vector<8x64xf32>
    %835 = arith.mulf %824, %762 : vector<8x64xf32>
    %836 = arith.mulf %816, %826 : vector<8x64xf32>
    %837 = arith.addf %835, %836 : vector<8x64xf32>
    %838 = math.tanh %837 : vector<8x64xf32>
    %839 = arith.mulf %834, %838 : vector<8x64xf32>
    %c88 = arith.constant 88 : index
    %c0_322 = arith.constant 0 : index
    %840 = vector.load %arg10[%c88, %c0_322] : memref<128x256xf32, #tpu.memory_space<vmem>>, vector<8x256xf32>
    %841 = arith.truncf %800 : vector<8x64xf32> to vector<8x64xbf16>
    %c0_323 = arith.constant 0 : index
    %c0_324 = arith.constant 0 : index
    %842 = vector.load %arg3[%c0_323, %c0_324] : memref<64x256xbf16, #tpu.memory_space<vmem>>, vector<64x256xbf16>
    %cst_325 = arith.constant dense<0.000000e+00> : vector<8x256xf32>
    %843 = tpu.matmul %841, %842, %cst_325 {dimension_numbers = #tpu.dot_dimension_numbers<[1], [0], [0], [1], [0, 0, 1, 1], [], []>} : vector<8x64xbf16>, vector<64x256xbf16>, vector<8x256xf32> -> vector<8x256xf32>
    %844 = arith.addf %843, %840 : vector<8x256xf32>
    %845 = vector.extract_strided_slice %844 {offsets = [0, 0], sizes = [8, 64], strides = [1, 1]} : vector<8x256xf32> to vector<8x64xf32>
    %cst_326 = arith.constant 5.000000e-01 : f32
    %846 = vector.broadcast %cst_326 : f32 to vector<8x64xf32>
    %847 = arith.mulf %846, %845 : vector<8x64xf32>
    %848 = math.tanh %847 : vector<8x64xf32>
    %cst_327 = arith.constant 5.000000e-01 : f32
    %849 = vector.broadcast %cst_327 : f32 to vector<8x64xf32>
    %850 = arith.mulf %849, %848 : vector<8x64xf32>
    %cst_328 = arith.constant 5.000000e-01 : f32
    %851 = vector.broadcast %cst_328 : f32 to vector<8x64xf32>
    %852 = arith.addf %850, %851 : vector<8x64xf32>
    %853 = vector.extract_strided_slice %844 {offsets = [0, 64], sizes = [8, 64], strides = [1, 1]} : vector<8x256xf32> to vector<8x64xf32>
    %cst_329 = arith.constant 5.000000e-01 : f32
    %854 = vector.broadcast %cst_329 : f32 to vector<8x64xf32>
    %855 = arith.mulf %854, %853 : vector<8x64xf32>
    %856 = math.tanh %855 : vector<8x64xf32>
    %cst_330 = arith.constant 5.000000e-01 : f32
    %857 = vector.broadcast %cst_330 : f32 to vector<8x64xf32>
    %858 = arith.mulf %857, %856 : vector<8x64xf32>
    %cst_331 = arith.constant 5.000000e-01 : f32
    %859 = vector.broadcast %cst_331 : f32 to vector<8x64xf32>
    %860 = arith.addf %858, %859 : vector<8x64xf32>
    %861 = vector.extract_strided_slice %844 {offsets = [0, 128], sizes = [8, 64], strides = [1, 1]} : vector<8x256xf32> to vector<8x64xf32>
    %862 = math.tanh %861 : vector<8x64xf32>
    %863 = vector.extract_strided_slice %844 {offsets = [0, 192], sizes = [8, 64], strides = [1, 1]} : vector<8x256xf32> to vector<8x64xf32>
    %cst_332 = arith.constant 5.000000e-01 : f32
    %864 = vector.broadcast %cst_332 : f32 to vector<8x64xf32>
    %865 = arith.mulf %864, %863 : vector<8x64xf32>
    %866 = math.tanh %865 : vector<8x64xf32>
    %cst_333 = arith.constant 5.000000e-01 : f32
    %867 = vector.broadcast %cst_333 : f32 to vector<8x64xf32>
    %868 = arith.mulf %867, %866 : vector<8x64xf32>
    %cst_334 = arith.constant 5.000000e-01 : f32
    %869 = vector.broadcast %cst_334 : f32 to vector<8x64xf32>
    %870 = arith.addf %868, %869 : vector<8x64xf32>
    %871 = arith.mulf %860, %798 : vector<8x64xf32>
    %872 = arith.mulf %852, %862 : vector<8x64xf32>
    %873 = arith.addf %871, %872 : vector<8x64xf32>
    %874 = math.tanh %873 : vector<8x64xf32>
    %875 = arith.mulf %870, %874 : vector<8x64xf32>
    %876 = arith.truncf %875 : vector<8x64xf32> to vector<8x64xbf16>
    %c0_335 = arith.constant 0 : index
    %c0_336 = arith.constant 0 : index
    %877 = vector.load %arg4[%c0_335, %c0_336] : memref<64x256xbf16, #tpu.memory_space<vmem>>, vector<64x256xbf16>
    %cst_337 = arith.constant dense<0.000000e+00> : vector<8x256xf32>
    %878 = tpu.matmul %876, %877, %cst_337 {dimension_numbers = #tpu.dot_dimension_numbers<[1], [0], [0], [1], [0, 0, 1, 1], [], []>} : vector<8x64xbf16>, vector<64x256xbf16>, vector<8x256xf32> -> vector<8x256xf32>
    %879 = arith.truncf %839 : vector<8x64xf32> to vector<8x64xbf16>
    %c0_338 = arith.constant 0 : index
    %c0_339 = arith.constant 0 : index
    %880 = vector.load %arg5[%c0_338, %c0_339] : memref<64x256xbf16, #tpu.memory_space<vmem>>, vector<64x256xbf16>
    %cst_340 = arith.constant dense<0.000000e+00> : vector<8x256xf32>
    %881 = tpu.matmul %879, %880, %cst_340 {dimension_numbers = #tpu.dot_dimension_numbers<[1], [0], [0], [1], [0, 0, 1, 1], [], []>} : vector<8x64xbf16>, vector<64x256xbf16>, vector<8x256xf32> -> vector<8x256xf32>
    %882 = arith.addf %878, %881 : vector<8x256xf32>
    %883 = arith.addf %882, %10 : vector<8x256xf32>
    %884 = vector.extract_strided_slice %883 {offsets = [0, 0], sizes = [8, 64], strides = [1, 1]} : vector<8x256xf32> to vector<8x64xf32>
    %cst_341 = arith.constant 5.000000e-01 : f32
    %885 = vector.broadcast %cst_341 : f32 to vector<8x64xf32>
    %886 = arith.mulf %885, %884 : vector<8x64xf32>
    %887 = math.tanh %886 : vector<8x64xf32>
    %cst_342 = arith.constant 5.000000e-01 : f32
    %888 = vector.broadcast %cst_342 : f32 to vector<8x64xf32>
    %889 = arith.mulf %888, %887 : vector<8x64xf32>
    %cst_343 = arith.constant 5.000000e-01 : f32
    %890 = vector.broadcast %cst_343 : f32 to vector<8x64xf32>
    %891 = arith.addf %889, %890 : vector<8x64xf32>
    %892 = vector.extract_strided_slice %883 {offsets = [0, 64], sizes = [8, 64], strides = [1, 1]} : vector<8x256xf32> to vector<8x64xf32>
    %cst_344 = arith.constant 5.000000e-01 : f32
    %893 = vector.broadcast %cst_344 : f32 to vector<8x64xf32>
    %894 = arith.mulf %893, %892 : vector<8x64xf32>
    %895 = math.tanh %894 : vector<8x64xf32>
    %cst_345 = arith.constant 5.000000e-01 : f32
    %896 = vector.broadcast %cst_345 : f32 to vector<8x64xf32>
    %897 = arith.mulf %896, %895 : vector<8x64xf32>
    %cst_346 = arith.constant 5.000000e-01 : f32
    %898 = vector.broadcast %cst_346 : f32 to vector<8x64xf32>
    %899 = arith.addf %897, %898 : vector<8x64xf32>
    %900 = vector.extract_strided_slice %883 {offsets = [0, 128], sizes = [8, 64], strides = [1, 1]} : vector<8x256xf32> to vector<8x64xf32>
    %901 = math.tanh %900 : vector<8x64xf32>
    %902 = vector.extract_strided_slice %883 {offsets = [0, 192], sizes = [8, 64], strides = [1, 1]} : vector<8x256xf32> to vector<8x64xf32>
    %cst_347 = arith.constant 5.000000e-01 : f32
    %903 = vector.broadcast %cst_347 : f32 to vector<8x64xf32>
    %904 = arith.mulf %903, %902 : vector<8x64xf32>
    %905 = math.tanh %904 : vector<8x64xf32>
    %cst_348 = arith.constant 5.000000e-01 : f32
    %906 = vector.broadcast %cst_348 : f32 to vector<8x64xf32>
    %907 = arith.mulf %906, %905 : vector<8x64xf32>
    %cst_349 = arith.constant 5.000000e-01 : f32
    %908 = vector.broadcast %cst_349 : f32 to vector<8x64xf32>
    %909 = arith.addf %907, %908 : vector<8x64xf32>
    %910 = arith.mulf %899, %837 : vector<8x64xf32>
    %911 = arith.mulf %891, %901 : vector<8x64xf32>
    %912 = arith.addf %910, %911 : vector<8x64xf32>
    %913 = math.tanh %912 : vector<8x64xf32>
    %914 = arith.mulf %909, %913 : vector<8x64xf32>
    %c96 = arith.constant 96 : index
    %c0_350 = arith.constant 0 : index
    %915 = vector.load %arg10[%c96, %c0_350] : memref<128x256xf32, #tpu.memory_space<vmem>>, vector<8x256xf32>
    %916 = arith.truncf %875 : vector<8x64xf32> to vector<8x64xbf16>
    %c0_351 = arith.constant 0 : index
    %c0_352 = arith.constant 0 : index
    %917 = vector.load %arg3[%c0_351, %c0_352] : memref<64x256xbf16, #tpu.memory_space<vmem>>, vector<64x256xbf16>
    %cst_353 = arith.constant dense<0.000000e+00> : vector<8x256xf32>
    %918 = tpu.matmul %916, %917, %cst_353 {dimension_numbers = #tpu.dot_dimension_numbers<[1], [0], [0], [1], [0, 0, 1, 1], [], []>} : vector<8x64xbf16>, vector<64x256xbf16>, vector<8x256xf32> -> vector<8x256xf32>
    %919 = arith.addf %918, %915 : vector<8x256xf32>
    %920 = vector.extract_strided_slice %919 {offsets = [0, 0], sizes = [8, 64], strides = [1, 1]} : vector<8x256xf32> to vector<8x64xf32>
    %cst_354 = arith.constant 5.000000e-01 : f32
    %921 = vector.broadcast %cst_354 : f32 to vector<8x64xf32>
    %922 = arith.mulf %921, %920 : vector<8x64xf32>
    %923 = math.tanh %922 : vector<8x64xf32>
    %cst_355 = arith.constant 5.000000e-01 : f32
    %924 = vector.broadcast %cst_355 : f32 to vector<8x64xf32>
    %925 = arith.mulf %924, %923 : vector<8x64xf32>
    %cst_356 = arith.constant 5.000000e-01 : f32
    %926 = vector.broadcast %cst_356 : f32 to vector<8x64xf32>
    %927 = arith.addf %925, %926 : vector<8x64xf32>
    %928 = vector.extract_strided_slice %919 {offsets = [0, 64], sizes = [8, 64], strides = [1, 1]} : vector<8x256xf32> to vector<8x64xf32>
    %cst_357 = arith.constant 5.000000e-01 : f32
    %929 = vector.broadcast %cst_357 : f32 to vector<8x64xf32>
    %930 = arith.mulf %929, %928 : vector<8x64xf32>
    %931 = math.tanh %930 : vector<8x64xf32>
    %cst_358 = arith.constant 5.000000e-01 : f32
    %932 = vector.broadcast %cst_358 : f32 to vector<8x64xf32>
    %933 = arith.mulf %932, %931 : vector<8x64xf32>
    %cst_359 = arith.constant 5.000000e-01 : f32
    %934 = vector.broadcast %cst_359 : f32 to vector<8x64xf32>
    %935 = arith.addf %933, %934 : vector<8x64xf32>
    %936 = vector.extract_strided_slice %919 {offsets = [0, 128], sizes = [8, 64], strides = [1, 1]} : vector<8x256xf32> to vector<8x64xf32>
    %937 = math.tanh %936 : vector<8x64xf32>
    %938 = vector.extract_strided_slice %919 {offsets = [0, 192], sizes = [8, 64], strides = [1, 1]} : vector<8x256xf32> to vector<8x64xf32>
    %cst_360 = arith.constant 5.000000e-01 : f32
    %939 = vector.broadcast %cst_360 : f32 to vector<8x64xf32>
    %940 = arith.mulf %939, %938 : vector<8x64xf32>
    %941 = math.tanh %940 : vector<8x64xf32>
    %cst_361 = arith.constant 5.000000e-01 : f32
    %942 = vector.broadcast %cst_361 : f32 to vector<8x64xf32>
    %943 = arith.mulf %942, %941 : vector<8x64xf32>
    %cst_362 = arith.constant 5.000000e-01 : f32
    %944 = vector.broadcast %cst_362 : f32 to vector<8x64xf32>
    %945 = arith.addf %943, %944 : vector<8x64xf32>
    %946 = arith.mulf %935, %873 : vector<8x64xf32>
    %947 = arith.mulf %927, %937 : vector<8x64xf32>
    %948 = arith.addf %946, %947 : vector<8x64xf32>
    %949 = math.tanh %948 : vector<8x64xf32>
    %950 = arith.mulf %945, %949 : vector<8x64xf32>
    %951 = arith.truncf %950 : vector<8x64xf32> to vector<8x64xbf16>
    %c0_363 = arith.constant 0 : index
    %c0_364 = arith.constant 0 : index
    %952 = vector.load %arg4[%c0_363, %c0_364] : memref<64x256xbf16, #tpu.memory_space<vmem>>, vector<64x256xbf16>
    %cst_365 = arith.constant dense<0.000000e+00> : vector<8x256xf32>
    %953 = tpu.matmul %951, %952, %cst_365 {dimension_numbers = #tpu.dot_dimension_numbers<[1], [0], [0], [1], [0, 0, 1, 1], [], []>} : vector<8x64xbf16>, vector<64x256xbf16>, vector<8x256xf32> -> vector<8x256xf32>
    %954 = arith.truncf %914 : vector<8x64xf32> to vector<8x64xbf16>
    %c0_366 = arith.constant 0 : index
    %c0_367 = arith.constant 0 : index
    %955 = vector.load %arg5[%c0_366, %c0_367] : memref<64x256xbf16, #tpu.memory_space<vmem>>, vector<64x256xbf16>
    %cst_368 = arith.constant dense<0.000000e+00> : vector<8x256xf32>
    %956 = tpu.matmul %954, %955, %cst_368 {dimension_numbers = #tpu.dot_dimension_numbers<[1], [0], [0], [1], [0, 0, 1, 1], [], []>} : vector<8x64xbf16>, vector<64x256xbf16>, vector<8x256xf32> -> vector<8x256xf32>
    %957 = arith.addf %953, %956 : vector<8x256xf32>
    %958 = arith.addf %957, %10 : vector<8x256xf32>
    %959 = vector.extract_strided_slice %958 {offsets = [0, 0], sizes = [8, 64], strides = [1, 1]} : vector<8x256xf32> to vector<8x64xf32>
    %cst_369 = arith.constant 5.000000e-01 : f32
    %960 = vector.broadcast %cst_369 : f32 to vector<8x64xf32>
    %961 = arith.mulf %960, %959 : vector<8x64xf32>
    %962 = math.tanh %961 : vector<8x64xf32>
    %cst_370 = arith.constant 5.000000e-01 : f32
    %963 = vector.broadcast %cst_370 : f32 to vector<8x64xf32>
    %964 = arith.mulf %963, %962 : vector<8x64xf32>
    %cst_371 = arith.constant 5.000000e-01 : f32
    %965 = vector.broadcast %cst_371 : f32 to vector<8x64xf32>
    %966 = arith.addf %964, %965 : vector<8x64xf32>
    %967 = vector.extract_strided_slice %958 {offsets = [0, 64], sizes = [8, 64], strides = [1, 1]} : vector<8x256xf32> to vector<8x64xf32>
    %cst_372 = arith.constant 5.000000e-01 : f32
    %968 = vector.broadcast %cst_372 : f32 to vector<8x64xf32>
    %969 = arith.mulf %968, %967 : vector<8x64xf32>
    %970 = math.tanh %969 : vector<8x64xf32>
    %cst_373 = arith.constant 5.000000e-01 : f32
    %971 = vector.broadcast %cst_373 : f32 to vector<8x64xf32>
    %972 = arith.mulf %971, %970 : vector<8x64xf32>
    %cst_374 = arith.constant 5.000000e-01 : f32
    %973 = vector.broadcast %cst_374 : f32 to vector<8x64xf32>
    %974 = arith.addf %972, %973 : vector<8x64xf32>
    %975 = vector.extract_strided_slice %958 {offsets = [0, 128], sizes = [8, 64], strides = [1, 1]} : vector<8x256xf32> to vector<8x64xf32>
    %976 = math.tanh %975 : vector<8x64xf32>
    %977 = vector.extract_strided_slice %958 {offsets = [0, 192], sizes = [8, 64], strides = [1, 1]} : vector<8x256xf32> to vector<8x64xf32>
    %cst_375 = arith.constant 5.000000e-01 : f32
    %978 = vector.broadcast %cst_375 : f32 to vector<8x64xf32>
    %979 = arith.mulf %978, %977 : vector<8x64xf32>
    %980 = math.tanh %979 : vector<8x64xf32>
    %cst_376 = arith.constant 5.000000e-01 : f32
    %981 = vector.broadcast %cst_376 : f32 to vector<8x64xf32>
    %982 = arith.mulf %981, %980 : vector<8x64xf32>
    %cst_377 = arith.constant 5.000000e-01 : f32
    %983 = vector.broadcast %cst_377 : f32 to vector<8x64xf32>
    %984 = arith.addf %982, %983 : vector<8x64xf32>
    %985 = arith.mulf %974, %912 : vector<8x64xf32>
    %986 = arith.mulf %966, %976 : vector<8x64xf32>
    %987 = arith.addf %985, %986 : vector<8x64xf32>
    %988 = math.tanh %987 : vector<8x64xf32>
    %989 = arith.mulf %984, %988 : vector<8x64xf32>
    %c104 = arith.constant 104 : index
    %c0_378 = arith.constant 0 : index
    %990 = vector.load %arg10[%c104, %c0_378] : memref<128x256xf32, #tpu.memory_space<vmem>>, vector<8x256xf32>
    %991 = arith.truncf %950 : vector<8x64xf32> to vector<8x64xbf16>
    %c0_379 = arith.constant 0 : index
    %c0_380 = arith.constant 0 : index
    %992 = vector.load %arg3[%c0_379, %c0_380] : memref<64x256xbf16, #tpu.memory_space<vmem>>, vector<64x256xbf16>
    %cst_381 = arith.constant dense<0.000000e+00> : vector<8x256xf32>
    %993 = tpu.matmul %991, %992, %cst_381 {dimension_numbers = #tpu.dot_dimension_numbers<[1], [0], [0], [1], [0, 0, 1, 1], [], []>} : vector<8x64xbf16>, vector<64x256xbf16>, vector<8x256xf32> -> vector<8x256xf32>
    %994 = arith.addf %993, %990 : vector<8x256xf32>
    %995 = vector.extract_strided_slice %994 {offsets = [0, 0], sizes = [8, 64], strides = [1, 1]} : vector<8x256xf32> to vector<8x64xf32>
    %cst_382 = arith.constant 5.000000e-01 : f32
    %996 = vector.broadcast %cst_382 : f32 to vector<8x64xf32>
    %997 = arith.mulf %996, %995 : vector<8x64xf32>
    %998 = math.tanh %997 : vector<8x64xf32>
    %cst_383 = arith.constant 5.000000e-01 : f32
    %999 = vector.broadcast %cst_383 : f32 to vector<8x64xf32>
    %1000 = arith.mulf %999, %998 : vector<8x64xf32>
    %cst_384 = arith.constant 5.000000e-01 : f32
    %1001 = vector.broadcast %cst_384 : f32 to vector<8x64xf32>
    %1002 = arith.addf %1000, %1001 : vector<8x64xf32>
    %1003 = vector.extract_strided_slice %994 {offsets = [0, 64], sizes = [8, 64], strides = [1, 1]} : vector<8x256xf32> to vector<8x64xf32>
    %cst_385 = arith.constant 5.000000e-01 : f32
    %1004 = vector.broadcast %cst_385 : f32 to vector<8x64xf32>
    %1005 = arith.mulf %1004, %1003 : vector<8x64xf32>
    %1006 = math.tanh %1005 : vector<8x64xf32>
    %cst_386 = arith.constant 5.000000e-01 : f32
    %1007 = vector.broadcast %cst_386 : f32 to vector<8x64xf32>
    %1008 = arith.mulf %1007, %1006 : vector<8x64xf32>
    %cst_387 = arith.constant 5.000000e-01 : f32
    %1009 = vector.broadcast %cst_387 : f32 to vector<8x64xf32>
    %1010 = arith.addf %1008, %1009 : vector<8x64xf32>
    %1011 = vector.extract_strided_slice %994 {offsets = [0, 128], sizes = [8, 64], strides = [1, 1]} : vector<8x256xf32> to vector<8x64xf32>
    %1012 = math.tanh %1011 : vector<8x64xf32>
    %1013 = vector.extract_strided_slice %994 {offsets = [0, 192], sizes = [8, 64], strides = [1, 1]} : vector<8x256xf32> to vector<8x64xf32>
    %cst_388 = arith.constant 5.000000e-01 : f32
    %1014 = vector.broadcast %cst_388 : f32 to vector<8x64xf32>
    %1015 = arith.mulf %1014, %1013 : vector<8x64xf32>
    %1016 = math.tanh %1015 : vector<8x64xf32>
    %cst_389 = arith.constant 5.000000e-01 : f32
    %1017 = vector.broadcast %cst_389 : f32 to vector<8x64xf32>
    %1018 = arith.mulf %1017, %1016 : vector<8x64xf32>
    %cst_390 = arith.constant 5.000000e-01 : f32
    %1019 = vector.broadcast %cst_390 : f32 to vector<8x64xf32>
    %1020 = arith.addf %1018, %1019 : vector<8x64xf32>
    %1021 = arith.mulf %1010, %948 : vector<8x64xf32>
    %1022 = arith.mulf %1002, %1012 : vector<8x64xf32>
    %1023 = arith.addf %1021, %1022 : vector<8x64xf32>
    %1024 = math.tanh %1023 : vector<8x64xf32>
    %1025 = arith.mulf %1020, %1024 : vector<8x64xf32>
    %1026 = arith.truncf %1025 : vector<8x64xf32> to vector<8x64xbf16>
    %c0_391 = arith.constant 0 : index
    %c0_392 = arith.constant 0 : index
    %1027 = vector.load %arg4[%c0_391, %c0_392] : memref<64x256xbf16, #tpu.memory_space<vmem>>, vector<64x256xbf16>
    %cst_393 = arith.constant dense<0.000000e+00> : vector<8x256xf32>
    %1028 = tpu.matmul %1026, %1027, %cst_393 {dimension_numbers = #tpu.dot_dimension_numbers<[1], [0], [0], [1], [0, 0, 1, 1], [], []>} : vector<8x64xbf16>, vector<64x256xbf16>, vector<8x256xf32> -> vector<8x256xf32>
    %1029 = arith.truncf %989 : vector<8x64xf32> to vector<8x64xbf16>
    %c0_394 = arith.constant 0 : index
    %c0_395 = arith.constant 0 : index
    %1030 = vector.load %arg5[%c0_394, %c0_395] : memref<64x256xbf16, #tpu.memory_space<vmem>>, vector<64x256xbf16>
    %cst_396 = arith.constant dense<0.000000e+00> : vector<8x256xf32>
    %1031 = tpu.matmul %1029, %1030, %cst_396 {dimension_numbers = #tpu.dot_dimension_numbers<[1], [0], [0], [1], [0, 0, 1, 1], [], []>} : vector<8x64xbf16>, vector<64x256xbf16>, vector<8x256xf32> -> vector<8x256xf32>
    %1032 = arith.addf %1028, %1031 : vector<8x256xf32>
    %1033 = arith.addf %1032, %10 : vector<8x256xf32>
    %1034 = vector.extract_strided_slice %1033 {offsets = [0, 0], sizes = [8, 64], strides = [1, 1]} : vector<8x256xf32> to vector<8x64xf32>
    %cst_397 = arith.constant 5.000000e-01 : f32
    %1035 = vector.broadcast %cst_397 : f32 to vector<8x64xf32>
    %1036 = arith.mulf %1035, %1034 : vector<8x64xf32>
    %1037 = math.tanh %1036 : vector<8x64xf32>
    %cst_398 = arith.constant 5.000000e-01 : f32
    %1038 = vector.broadcast %cst_398 : f32 to vector<8x64xf32>
    %1039 = arith.mulf %1038, %1037 : vector<8x64xf32>
    %cst_399 = arith.constant 5.000000e-01 : f32
    %1040 = vector.broadcast %cst_399 : f32 to vector<8x64xf32>
    %1041 = arith.addf %1039, %1040 : vector<8x64xf32>
    %1042 = vector.extract_strided_slice %1033 {offsets = [0, 64], sizes = [8, 64], strides = [1, 1]} : vector<8x256xf32> to vector<8x64xf32>
    %cst_400 = arith.constant 5.000000e-01 : f32
    %1043 = vector.broadcast %cst_400 : f32 to vector<8x64xf32>
    %1044 = arith.mulf %1043, %1042 : vector<8x64xf32>
    %1045 = math.tanh %1044 : vector<8x64xf32>
    %cst_401 = arith.constant 5.000000e-01 : f32
    %1046 = vector.broadcast %cst_401 : f32 to vector<8x64xf32>
    %1047 = arith.mulf %1046, %1045 : vector<8x64xf32>
    %cst_402 = arith.constant 5.000000e-01 : f32
    %1048 = vector.broadcast %cst_402 : f32 to vector<8x64xf32>
    %1049 = arith.addf %1047, %1048 : vector<8x64xf32>
    %1050 = vector.extract_strided_slice %1033 {offsets = [0, 128], sizes = [8, 64], strides = [1, 1]} : vector<8x256xf32> to vector<8x64xf32>
    %1051 = math.tanh %1050 : vector<8x64xf32>
    %1052 = vector.extract_strided_slice %1033 {offsets = [0, 192], sizes = [8, 64], strides = [1, 1]} : vector<8x256xf32> to vector<8x64xf32>
    %cst_403 = arith.constant 5.000000e-01 : f32
    %1053 = vector.broadcast %cst_403 : f32 to vector<8x64xf32>
    %1054 = arith.mulf %1053, %1052 : vector<8x64xf32>
    %1055 = math.tanh %1054 : vector<8x64xf32>
    %cst_404 = arith.constant 5.000000e-01 : f32
    %1056 = vector.broadcast %cst_404 : f32 to vector<8x64xf32>
    %1057 = arith.mulf %1056, %1055 : vector<8x64xf32>
    %cst_405 = arith.constant 5.000000e-01 : f32
    %1058 = vector.broadcast %cst_405 : f32 to vector<8x64xf32>
    %1059 = arith.addf %1057, %1058 : vector<8x64xf32>
    %1060 = arith.mulf %1049, %987 : vector<8x64xf32>
    %1061 = arith.mulf %1041, %1051 : vector<8x64xf32>
    %1062 = arith.addf %1060, %1061 : vector<8x64xf32>
    %1063 = math.tanh %1062 : vector<8x64xf32>
    %1064 = arith.mulf %1059, %1063 : vector<8x64xf32>
    %c112 = arith.constant 112 : index
    %c0_406 = arith.constant 0 : index
    %1065 = vector.load %arg10[%c112, %c0_406] : memref<128x256xf32, #tpu.memory_space<vmem>>, vector<8x256xf32>
    %1066 = arith.truncf %1025 : vector<8x64xf32> to vector<8x64xbf16>
    %c0_407 = arith.constant 0 : index
    %c0_408 = arith.constant 0 : index
    %1067 = vector.load %arg3[%c0_407, %c0_408] : memref<64x256xbf16, #tpu.memory_space<vmem>>, vector<64x256xbf16>
    %cst_409 = arith.constant dense<0.000000e+00> : vector<8x256xf32>
    %1068 = tpu.matmul %1066, %1067, %cst_409 {dimension_numbers = #tpu.dot_dimension_numbers<[1], [0], [0], [1], [0, 0, 1, 1], [], []>} : vector<8x64xbf16>, vector<64x256xbf16>, vector<8x256xf32> -> vector<8x256xf32>
    %1069 = arith.addf %1068, %1065 : vector<8x256xf32>
    %1070 = vector.extract_strided_slice %1069 {offsets = [0, 0], sizes = [8, 64], strides = [1, 1]} : vector<8x256xf32> to vector<8x64xf32>
    %cst_410 = arith.constant 5.000000e-01 : f32
    %1071 = vector.broadcast %cst_410 : f32 to vector<8x64xf32>
    %1072 = arith.mulf %1071, %1070 : vector<8x64xf32>
    %1073 = math.tanh %1072 : vector<8x64xf32>
    %cst_411 = arith.constant 5.000000e-01 : f32
    %1074 = vector.broadcast %cst_411 : f32 to vector<8x64xf32>
    %1075 = arith.mulf %1074, %1073 : vector<8x64xf32>
    %cst_412 = arith.constant 5.000000e-01 : f32
    %1076 = vector.broadcast %cst_412 : f32 to vector<8x64xf32>
    %1077 = arith.addf %1075, %1076 : vector<8x64xf32>
    %1078 = vector.extract_strided_slice %1069 {offsets = [0, 64], sizes = [8, 64], strides = [1, 1]} : vector<8x256xf32> to vector<8x64xf32>
    %cst_413 = arith.constant 5.000000e-01 : f32
    %1079 = vector.broadcast %cst_413 : f32 to vector<8x64xf32>
    %1080 = arith.mulf %1079, %1078 : vector<8x64xf32>
    %1081 = math.tanh %1080 : vector<8x64xf32>
    %cst_414 = arith.constant 5.000000e-01 : f32
    %1082 = vector.broadcast %cst_414 : f32 to vector<8x64xf32>
    %1083 = arith.mulf %1082, %1081 : vector<8x64xf32>
    %cst_415 = arith.constant 5.000000e-01 : f32
    %1084 = vector.broadcast %cst_415 : f32 to vector<8x64xf32>
    %1085 = arith.addf %1083, %1084 : vector<8x64xf32>
    %1086 = vector.extract_strided_slice %1069 {offsets = [0, 128], sizes = [8, 64], strides = [1, 1]} : vector<8x256xf32> to vector<8x64xf32>
    %1087 = math.tanh %1086 : vector<8x64xf32>
    %1088 = vector.extract_strided_slice %1069 {offsets = [0, 192], sizes = [8, 64], strides = [1, 1]} : vector<8x256xf32> to vector<8x64xf32>
    %cst_416 = arith.constant 5.000000e-01 : f32
    %1089 = vector.broadcast %cst_416 : f32 to vector<8x64xf32>
    %1090 = arith.mulf %1089, %1088 : vector<8x64xf32>
    %1091 = math.tanh %1090 : vector<8x64xf32>
    %cst_417 = arith.constant 5.000000e-01 : f32
    %1092 = vector.broadcast %cst_417 : f32 to vector<8x64xf32>
    %1093 = arith.mulf %1092, %1091 : vector<8x64xf32>
    %cst_418 = arith.constant 5.000000e-01 : f32
    %1094 = vector.broadcast %cst_418 : f32 to vector<8x64xf32>
    %1095 = arith.addf %1093, %1094 : vector<8x64xf32>
    %1096 = arith.mulf %1085, %1023 : vector<8x64xf32>
    %1097 = arith.mulf %1077, %1087 : vector<8x64xf32>
    %1098 = arith.addf %1096, %1097 : vector<8x64xf32>
    %1099 = math.tanh %1098 : vector<8x64xf32>
    %1100 = arith.mulf %1095, %1099 : vector<8x64xf32>
    %1101 = arith.truncf %1100 : vector<8x64xf32> to vector<8x64xbf16>
    %c0_419 = arith.constant 0 : index
    %c0_420 = arith.constant 0 : index
    %1102 = vector.load %arg4[%c0_419, %c0_420] : memref<64x256xbf16, #tpu.memory_space<vmem>>, vector<64x256xbf16>
    %cst_421 = arith.constant dense<0.000000e+00> : vector<8x256xf32>
    %1103 = tpu.matmul %1101, %1102, %cst_421 {dimension_numbers = #tpu.dot_dimension_numbers<[1], [0], [0], [1], [0, 0, 1, 1], [], []>} : vector<8x64xbf16>, vector<64x256xbf16>, vector<8x256xf32> -> vector<8x256xf32>
    %1104 = arith.truncf %1064 : vector<8x64xf32> to vector<8x64xbf16>
    %c0_422 = arith.constant 0 : index
    %c0_423 = arith.constant 0 : index
    %1105 = vector.load %arg5[%c0_422, %c0_423] : memref<64x256xbf16, #tpu.memory_space<vmem>>, vector<64x256xbf16>
    %cst_424 = arith.constant dense<0.000000e+00> : vector<8x256xf32>
    %1106 = tpu.matmul %1104, %1105, %cst_424 {dimension_numbers = #tpu.dot_dimension_numbers<[1], [0], [0], [1], [0, 0, 1, 1], [], []>} : vector<8x64xbf16>, vector<64x256xbf16>, vector<8x256xf32> -> vector<8x256xf32>
    %1107 = arith.addf %1103, %1106 : vector<8x256xf32>
    %1108 = arith.addf %1107, %10 : vector<8x256xf32>
    %1109 = vector.extract_strided_slice %1108 {offsets = [0, 0], sizes = [8, 64], strides = [1, 1]} : vector<8x256xf32> to vector<8x64xf32>
    %cst_425 = arith.constant 5.000000e-01 : f32
    %1110 = vector.broadcast %cst_425 : f32 to vector<8x64xf32>
    %1111 = arith.mulf %1110, %1109 : vector<8x64xf32>
    %1112 = math.tanh %1111 : vector<8x64xf32>
    %cst_426 = arith.constant 5.000000e-01 : f32
    %1113 = vector.broadcast %cst_426 : f32 to vector<8x64xf32>
    %1114 = arith.mulf %1113, %1112 : vector<8x64xf32>
    %cst_427 = arith.constant 5.000000e-01 : f32
    %1115 = vector.broadcast %cst_427 : f32 to vector<8x64xf32>
    %1116 = arith.addf %1114, %1115 : vector<8x64xf32>
    %1117 = vector.extract_strided_slice %1108 {offsets = [0, 64], sizes = [8, 64], strides = [1, 1]} : vector<8x256xf32> to vector<8x64xf32>
    %cst_428 = arith.constant 5.000000e-01 : f32
    %1118 = vector.broadcast %cst_428 : f32 to vector<8x64xf32>
    %1119 = arith.mulf %1118, %1117 : vector<8x64xf32>
    %1120 = math.tanh %1119 : vector<8x64xf32>
    %cst_429 = arith.constant 5.000000e-01 : f32
    %1121 = vector.broadcast %cst_429 : f32 to vector<8x64xf32>
    %1122 = arith.mulf %1121, %1120 : vector<8x64xf32>
    %cst_430 = arith.constant 5.000000e-01 : f32
    %1123 = vector.broadcast %cst_430 : f32 to vector<8x64xf32>
    %1124 = arith.addf %1122, %1123 : vector<8x64xf32>
    %1125 = vector.extract_strided_slice %1108 {offsets = [0, 128], sizes = [8, 64], strides = [1, 1]} : vector<8x256xf32> to vector<8x64xf32>
    %1126 = math.tanh %1125 : vector<8x64xf32>
    %1127 = vector.extract_strided_slice %1108 {offsets = [0, 192], sizes = [8, 64], strides = [1, 1]} : vector<8x256xf32> to vector<8x64xf32>
    %cst_431 = arith.constant 5.000000e-01 : f32
    %1128 = vector.broadcast %cst_431 : f32 to vector<8x64xf32>
    %1129 = arith.mulf %1128, %1127 : vector<8x64xf32>
    %1130 = math.tanh %1129 : vector<8x64xf32>
    %cst_432 = arith.constant 5.000000e-01 : f32
    %1131 = vector.broadcast %cst_432 : f32 to vector<8x64xf32>
    %1132 = arith.mulf %1131, %1130 : vector<8x64xf32>
    %cst_433 = arith.constant 5.000000e-01 : f32
    %1133 = vector.broadcast %cst_433 : f32 to vector<8x64xf32>
    %1134 = arith.addf %1132, %1133 : vector<8x64xf32>
    %1135 = arith.mulf %1124, %1062 : vector<8x64xf32>
    %1136 = arith.mulf %1116, %1126 : vector<8x64xf32>
    %1137 = arith.addf %1135, %1136 : vector<8x64xf32>
    %1138 = math.tanh %1137 : vector<8x64xf32>
    %1139 = arith.mulf %1134, %1138 : vector<8x64xf32>
    %c120 = arith.constant 120 : index
    %c0_434 = arith.constant 0 : index
    %1140 = vector.load %arg10[%c120, %c0_434] : memref<128x256xf32, #tpu.memory_space<vmem>>, vector<8x256xf32>
    %1141 = arith.truncf %1100 : vector<8x64xf32> to vector<8x64xbf16>
    %c0_435 = arith.constant 0 : index
    %c0_436 = arith.constant 0 : index
    %1142 = vector.load %arg3[%c0_435, %c0_436] : memref<64x256xbf16, #tpu.memory_space<vmem>>, vector<64x256xbf16>
    %cst_437 = arith.constant dense<0.000000e+00> : vector<8x256xf32>
    %1143 = tpu.matmul %1141, %1142, %cst_437 {dimension_numbers = #tpu.dot_dimension_numbers<[1], [0], [0], [1], [0, 0, 1, 1], [], []>} : vector<8x64xbf16>, vector<64x256xbf16>, vector<8x256xf32> -> vector<8x256xf32>
    %1144 = arith.addf %1143, %1140 : vector<8x256xf32>
    %1145 = vector.extract_strided_slice %1144 {offsets = [0, 0], sizes = [8, 64], strides = [1, 1]} : vector<8x256xf32> to vector<8x64xf32>
    %cst_438 = arith.constant 5.000000e-01 : f32
    %1146 = vector.broadcast %cst_438 : f32 to vector<8x64xf32>
    %1147 = arith.mulf %1146, %1145 : vector<8x64xf32>
    %1148 = math.tanh %1147 : vector<8x64xf32>
    %cst_439 = arith.constant 5.000000e-01 : f32
    %1149 = vector.broadcast %cst_439 : f32 to vector<8x64xf32>
    %1150 = arith.mulf %1149, %1148 : vector<8x64xf32>
    %cst_440 = arith.constant 5.000000e-01 : f32
    %1151 = vector.broadcast %cst_440 : f32 to vector<8x64xf32>
    %1152 = arith.addf %1150, %1151 : vector<8x64xf32>
    %1153 = vector.extract_strided_slice %1144 {offsets = [0, 64], sizes = [8, 64], strides = [1, 1]} : vector<8x256xf32> to vector<8x64xf32>
    %cst_441 = arith.constant 5.000000e-01 : f32
    %1154 = vector.broadcast %cst_441 : f32 to vector<8x64xf32>
    %1155 = arith.mulf %1154, %1153 : vector<8x64xf32>
    %1156 = math.tanh %1155 : vector<8x64xf32>
    %cst_442 = arith.constant 5.000000e-01 : f32
    %1157 = vector.broadcast %cst_442 : f32 to vector<8x64xf32>
    %1158 = arith.mulf %1157, %1156 : vector<8x64xf32>
    %cst_443 = arith.constant 5.000000e-01 : f32
    %1159 = vector.broadcast %cst_443 : f32 to vector<8x64xf32>
    %1160 = arith.addf %1158, %1159 : vector<8x64xf32>
    %1161 = vector.extract_strided_slice %1144 {offsets = [0, 128], sizes = [8, 64], strides = [1, 1]} : vector<8x256xf32> to vector<8x64xf32>
    %1162 = math.tanh %1161 : vector<8x64xf32>
    %1163 = vector.extract_strided_slice %1144 {offsets = [0, 192], sizes = [8, 64], strides = [1, 1]} : vector<8x256xf32> to vector<8x64xf32>
    %cst_444 = arith.constant 5.000000e-01 : f32
    %1164 = vector.broadcast %cst_444 : f32 to vector<8x64xf32>
    %1165 = arith.mulf %1164, %1163 : vector<8x64xf32>
    %1166 = math.tanh %1165 : vector<8x64xf32>
    %cst_445 = arith.constant 5.000000e-01 : f32
    %1167 = vector.broadcast %cst_445 : f32 to vector<8x64xf32>
    %1168 = arith.mulf %1167, %1166 : vector<8x64xf32>
    %cst_446 = arith.constant 5.000000e-01 : f32
    %1169 = vector.broadcast %cst_446 : f32 to vector<8x64xf32>
    %1170 = arith.addf %1168, %1169 : vector<8x64xf32>
    %1171 = arith.mulf %1160, %1098 : vector<8x64xf32>
    %1172 = arith.mulf %1152, %1162 : vector<8x64xf32>
    %1173 = arith.addf %1171, %1172 : vector<8x64xf32>
    %1174 = math.tanh %1173 : vector<8x64xf32>
    %1175 = arith.mulf %1170, %1174 : vector<8x64xf32>
    %1176 = arith.truncf %1175 : vector<8x64xf32> to vector<8x64xbf16>
    %c0_447 = arith.constant 0 : index
    %c0_448 = arith.constant 0 : index
    %1177 = vector.load %arg4[%c0_447, %c0_448] : memref<64x256xbf16, #tpu.memory_space<vmem>>, vector<64x256xbf16>
    %cst_449 = arith.constant dense<0.000000e+00> : vector<8x256xf32>
    %1178 = tpu.matmul %1176, %1177, %cst_449 {dimension_numbers = #tpu.dot_dimension_numbers<[1], [0], [0], [1], [0, 0, 1, 1], [], []>} : vector<8x64xbf16>, vector<64x256xbf16>, vector<8x256xf32> -> vector<8x256xf32>
    %1179 = arith.truncf %1139 : vector<8x64xf32> to vector<8x64xbf16>
    %c0_450 = arith.constant 0 : index
    %c0_451 = arith.constant 0 : index
    %1180 = vector.load %arg5[%c0_450, %c0_451] : memref<64x256xbf16, #tpu.memory_space<vmem>>, vector<64x256xbf16>
    %cst_452 = arith.constant dense<0.000000e+00> : vector<8x256xf32>
    %1181 = tpu.matmul %1179, %1180, %cst_452 {dimension_numbers = #tpu.dot_dimension_numbers<[1], [0], [0], [1], [0, 0, 1, 1], [], []>} : vector<8x64xbf16>, vector<64x256xbf16>, vector<8x256xf32> -> vector<8x256xf32>
    %1182 = arith.addf %1178, %1181 : vector<8x256xf32>
    %1183 = arith.addf %1182, %10 : vector<8x256xf32>
    %1184 = vector.extract_strided_slice %1183 {offsets = [0, 0], sizes = [8, 64], strides = [1, 1]} : vector<8x256xf32> to vector<8x64xf32>
    %cst_453 = arith.constant 5.000000e-01 : f32
    %1185 = vector.broadcast %cst_453 : f32 to vector<8x64xf32>
    %1186 = arith.mulf %1185, %1184 : vector<8x64xf32>
    %1187 = math.tanh %1186 : vector<8x64xf32>
    %cst_454 = arith.constant 5.000000e-01 : f32
    %1188 = vector.broadcast %cst_454 : f32 to vector<8x64xf32>
    %1189 = arith.mulf %1188, %1187 : vector<8x64xf32>
    %cst_455 = arith.constant 5.000000e-01 : f32
    %1190 = vector.broadcast %cst_455 : f32 to vector<8x64xf32>
    %1191 = arith.addf %1189, %1190 : vector<8x64xf32>
    %1192 = vector.extract_strided_slice %1183 {offsets = [0, 64], sizes = [8, 64], strides = [1, 1]} : vector<8x256xf32> to vector<8x64xf32>
    %cst_456 = arith.constant 5.000000e-01 : f32
    %1193 = vector.broadcast %cst_456 : f32 to vector<8x64xf32>
    %1194 = arith.mulf %1193, %1192 : vector<8x64xf32>
    %1195 = math.tanh %1194 : vector<8x64xf32>
    %cst_457 = arith.constant 5.000000e-01 : f32
    %1196 = vector.broadcast %cst_457 : f32 to vector<8x64xf32>
    %1197 = arith.mulf %1196, %1195 : vector<8x64xf32>
    %cst_458 = arith.constant 5.000000e-01 : f32
    %1198 = vector.broadcast %cst_458 : f32 to vector<8x64xf32>
    %1199 = arith.addf %1197, %1198 : vector<8x64xf32>
    %1200 = vector.extract_strided_slice %1183 {offsets = [0, 128], sizes = [8, 64], strides = [1, 1]} : vector<8x256xf32> to vector<8x64xf32>
    %1201 = math.tanh %1200 : vector<8x64xf32>
    %1202 = vector.extract_strided_slice %1183 {offsets = [0, 192], sizes = [8, 64], strides = [1, 1]} : vector<8x256xf32> to vector<8x64xf32>
    %cst_459 = arith.constant 5.000000e-01 : f32
    %1203 = vector.broadcast %cst_459 : f32 to vector<8x64xf32>
    %1204 = arith.mulf %1203, %1202 : vector<8x64xf32>
    %1205 = math.tanh %1204 : vector<8x64xf32>
    %cst_460 = arith.constant 5.000000e-01 : f32
    %1206 = vector.broadcast %cst_460 : f32 to vector<8x64xf32>
    %1207 = arith.mulf %1206, %1205 : vector<8x64xf32>
    %cst_461 = arith.constant 5.000000e-01 : f32
    %1208 = vector.broadcast %cst_461 : f32 to vector<8x64xf32>
    %1209 = arith.addf %1207, %1208 : vector<8x64xf32>
    %1210 = arith.mulf %1199, %1137 : vector<8x64xf32>
    %1211 = arith.mulf %1191, %1201 : vector<8x64xf32>
    %1212 = arith.addf %1210, %1211 : vector<8x64xf32>
    %1213 = math.tanh %1212 : vector<8x64xf32>
    %1214 = arith.mulf %1209, %1213 : vector<8x64xf32>
    %c0_462 = arith.constant 0 : index
    %c0_463 = arith.constant 0 : index
    %1215 = vector.load %arg7[%c0_462, %c0_463] : memref<64x128xf32, #tpu.memory_space<vmem>>, vector<64x128xf32>
    %cst_464 = arith.constant dense<0.000000e+00> : vector<8x128xf32>
    %1216 = tpu.matmul %1214, %1215, %cst_464 {dimension_numbers = #tpu.dot_dimension_numbers<[1], [0], [0], [1], [0, 0, 1, 1], [], []>} : vector<8x64xf32>, vector<64x128xf32>, vector<8x128xf32> -> vector<8x128xf32>
    %c0_465 = arith.constant 0 : index
    %c0_466 = arith.constant 0 : index
    %1217 = vector.load %arg8[%c0_465, %c0_466] : memref<1x128xf32, #tpu.memory_space<vmem>>, vector<1x128xf32>
    %1218 = vector.broadcast %1217 : vector<1x128xf32> to vector<8x128xf32>
    %1219 = arith.addf %1216, %1218 : vector<8x128xf32>
    %c0_467 = arith.constant 0 : index
    %c0_468 = arith.constant 0 : index
    %1220 = vector.load %arg9[%c0_467, %c0_468] : memref<8x128xf32, #tpu.memory_space<vmem>>, vector<8x128xf32>
    tpu.vector_store %arg9[%c0_467, %c0_468], %1219 {strides = array<i32>} : memref<8x128xf32, #tpu.memory_space<vmem>>, vector<8x128xf32>,
    return
  }
}

</mosaic_0001>

<bundles_post_ra>
// kernel: tpu_custom_call.1
= control target key start
LH: loop header
LB: loop body
LE: loop exit
PB: predicated region body
PF: predicated region fallthrough
CT: control target
= control target key end

     0   :  { %14 = vsyncpa [#allocation4], 0  ;;  %s5162_s0 = inlined_call_operand.vmem [shape: f32[128,16], index: 0, kind: input, shape index: {}]   ;;  %s5163_s1 = inlined_call_operand.vmem [shape: bf16[16,256], index: 1, kind: input, shape index: {}]   ;;  %s5164_s2 = inlined_call_operand.vmem [shape: f32[1,256], index: 2, kind: input, shape index: {}]   ;;  %s5165_s3 = inlined_call_operand.vmem [shape: bf16[64,256], index: 3, kind: input, shape index: {}]   ;;  %s5166_s4 = inlined_call_operand.vmem [shape: bf16[64,256], index: 4, kind: input, shape index: {}]   ;;  %s5167_s5 = inlined_call_operand.hbm [shape: bf16[64,256], index: 5, kind: input, shape index: {}]   ;;  %s5168_s6 = inlined_call_operand.vmem [shape: f32[1,256], index: 6, kind: input, shape index: {}]   ;;  %s5169_s7 = inlined_call_operand.hbm [shape: f32[64,128], index: 7, kind: input, shape index: {}]   ;;  %s5170_s8 = inlined_call_operand.vmem [shape: f32[1,128], index: 8, kind: input, shape index: {}]   ;;  %s5171_s9 = inlined_call_operand.hbm [shape: f32[8,128], index: 9, kind: output, shape index: {}]  }
   0x1   :  { %15 = vsyncpa [#allocation7], 0 }
   0x2   :  { %16 = vsyncpa [#allocation5], 0  ;;  %s3900_s30 = smov [#allocation3]  }
   0x3   :  { %s32_s10 = sshll.u32 %s3900_s30, 4  ;;  %s33_s10 = int_to_ptr.vmem [resolvable:$true] %s32_s10 }
   0x4   :  { %s3842_s11 = scalar_lea.vmem %s33_s10, 1024  ;;  %p3847_p1 = scmp.lt.s32.totalorder %s33_s10, %s33_s10 }
   0x5   :  { %p3843_p0 = scmp.ne.s32.totalorder %s33_s10, %s3842_s11  ;;  %p3848_p2 = scmp.lt.s32.totalorder %s3842_s11, %s3842_s11 }
   0x7   :  { %p3849_p3 = por %p3848_p2, %p3847_p1 }
   0x9   :  { %p3850_p4 = pnand %p3849_p3, %p3843_p0 }
   0xb   :  { %3853 = shalt.err (!%p3850_p4)
}
   0xc   :  { %s3901_s12 = smov 128   ;;  %s3902_s13 = smov 8  }
   0xd   :  { %38 = dma.hbm_to_vmem [thread:$0]  %s5167_s5, 1024, %s33_s10, [#allocation4], %s3901_s12, %s3901_s12, %s3902_s13  }
   0xe   :  { %s3903_s16 = smov [#allocation6]  }
   0xf   :  { %s46_s17 = sshll.u32 %s3903_s16, 4  ;;  %s47_s17 = int_to_ptr.vmem [resolvable:$true] %s46_s17 }
  0x10   :  { %s3862_s18 = scalar_lea.vmem %s47_s17, 1024  ;;  %p3867_p6 = scmp.lt.s32.totalorder %s47_s17, %s47_s17 }
  0x11   :  { %p3863_p5 = scmp.ne.s32.totalorder %s47_s17, %s3862_s18  ;;  %p3868_p7 = scmp.lt.s32.totalorder %s3862_s18, %s3862_s18 }
  0x13   :  { %p3869_p8 = por %p3868_p7, %p3867_p6 }
  0x15   :  { %p3870_p9 = pnand %p3869_p8, %p3863_p5 }
  0x17   :  { %3873 = shalt.err (!%p3870_p9)
}
  0x18   :  { %52 = dma.hbm_to_vmem [thread:$0]  %s5169_s7, 1024, %s47_s17, [#allocation7], %s3901_s12, %s3901_s12, %s3902_s13  }
  0x19   :  { %3894 = dma.done.wait [#allocation4], 1024  }
  0x1a   :  { %3895 = vsyncadd [#allocation4], 4294966272 }
  0x1b   :  { %3896 = dma.done.wait [#allocation7], 1024  }
  0x1c   :  { %3897 = vsyncadd [#allocation7], 4294966272  ;;  %v5172_v0 = vmov 0   ;;  %v3970_v1 = vld [vmem:[%s5165_s3 + $0x34] ss:$8 sps:$4 sm:$0xff]   ;;  %v62_v7 = vld [vmem:[%s5162_s0] sm:$0xff]  ;;  %v90_v14 = vlaneseq }
  0x1d   :  { %167 = vmatprep.mubr.bf16.mxu0 %v5172_v0  ;;  %378 = vmatprep.mubr.bf16.mxu1 %v5172_v0  ;;  %v3975_v2 = vld [vmem:[%s5165_s3 + $0x30] ss:$8 sps:$4 sm:$0xff]   ;;  %v3494_v3 = vld [vmem:[%s5163_s1 + $0x4] ss:$8 sps:$4 sm:$0xff]   ;;  %v3498_v5 = vld [vmem:[%s5163_s1] ss:$8 sps:$4 sm:$0xff]  }
  0x1e   :  { %354 = vmatprep.subr.bf16.mxu1 %v3970_v1  ;;  %v3985_v4 = vld [vmem:[%s5165_s3 + $0x24] ss:$8 sps:$4 sm:$0xff]   ;;  %v3993_v6 = vld [vmem:[%s5165_s3 + $0x20] ss:$8 sps:$4 sm:$0xff]   ;;  %149 = vmatprep.subr.bf16.mxu0 %v3494_v3  ;;  %vm110_vm0 = vcmask 130048   ;;  %v4031_v15 = vshrl.u32 %v90_v14, 7 }
  0x1f   :  { %355 = vmatpush1.bf16.msra.mxu1 %v3975_v2  ;;  %v63_v8 = vld [vmem:[%s5162_s0 + $0x8] sm:$0xff]  ;;  %150 = vmatpush1.bf16.msra.mxu0 %v3498_v5  ;;  %v4005_v10 = vld [vmem:[%s5165_s3 + $0x14] ss:$8 sps:$4 sm:$0xff]   ;;  %v4011_v11 = vld [vmem:[%s5165_s3 + $0x10] ss:$8 sps:$4 sm:$0xff]   ;;  %vm342_vm1 = vcmask 523264  }
  0x20   :  { %356 = vmatprep.subr.bf16.mxu1 %v3985_v4  ;;  %v78_v9 = vpack.c.bf16 %v63_v8, %v62_v7  ;;  %v4016_v12 = vld [vmem:[%s5165_s3 + $0x4] ss:$8 sps:$4 sm:$0xff]   ;;  %v4023_v13 = vld [vmem:[%s5165_s3] ss:$8 sps:$4 sm:$0xff]   ;;  %v92_v16 = vsub.s32 0, %v4031_v15  ;;  %v96_v19 = vsub.s32 1, %v4031_v15 }
  0x21   :  { %v88_v17 = vld [vmem:[%s5164_s2] sm:$0x3]  ;;  %s3905_s2 = smov 64   ;;  %v4049_v37 = vld [vmem:[#allocation3 + $0x34] ss:$8 sps:$4 sm:$0xff]   ;;  %vm3907_vm2 = vmmov 0  }
  0x22   :  { %3374 = vmatmul.mubr.msk.bf16.vlgmr.msra.gmra.mxu0 %vm110_vm0, %v78_v9  ;;  %v4039_v18 = vrot.slane %v88_v17, %v92_v16  ;;  %v4045_v22 = vrot.slane %v88_v17, %v96_v19  ;;  %v4051_v38 = vld [vmem:[#allocation3 + $0x30] ss:$8 sps:$4 sm:$0xff]   ;;  %v4053_v39 = vld [vmem:[#allocation3 + $0x24] ss:$8 sps:$4 sm:$0xff]   ;;  %687 = vmatprep.subr.bf16.mxu0 %v4049_v37  ;;  %v4058_v40 = vld [vmem:[#allocation3 + $0x20] ss:$8 sps:$4 sm:$0xff]  }
  0x23   :  { %357 = vmatpush1.bf16.msra.mxu1 %v3993_v6  ;;  %177 = vmatprep.mubr.bf16.mxu0 %v5172_v0  ;;  %v4062_v41 = vld [vmem:[#allocation3 + $0x14] ss:$8 sps:$4 sm:$0xff]   ;;  %v4066_v42 = vld [vmem:[#allocation3 + $0x10] ss:$8 sps:$4 sm:$0xff]   ;;  %v4070_v43 = vld [vmem:[#allocation3 + $0x4] ss:$8 sps:$4 sm:$0xff]  }
  0x24   :  { %358 = vmatprep.subr.bf16.mxu1 %v4005_v10  ;;  %688 = vmatpush1.bf16.msra.mxu0 %v4051_v38  ;;  %v4074_v44 = vld [vmem:[#allocation3] ss:$8 sps:$4 sm:$0xff]   ;;  %v4081_v45 = vld [vmem:[%s5166_s4 + $0x34] ss:$8 sps:$4 sm:$0xff]   ;;  %v4088_v46 = vld [vmem:[%s5166_s4 + $0x30] ss:$8 sps:$4 sm:$0xff]  }
  0x25   :  { %689 = vmatprep.subr.bf16.mxu0 %v4053_v39  ;;  %v4095_v47 = vld [vmem:[%s5166_s4 + $0x24] ss:$8 sps:$4 sm:$0xff]   ;;  %v4103_v48 = vld [vmem:[%s5166_s4 + $0x20] ss:$8 sps:$4 sm:$0xff]   ;;  %v4110_v49 = vld [vmem:[%s5166_s4 + $0x14] ss:$8 sps:$4 sm:$0xff]  }
  0x26   :  { %v4116_v50 = vld [vmem:[%s5166_s4 + $0x10] ss:$8 sps:$4 sm:$0xff]   ;;  %v4122_v51 = vld [vmem:[%s5166_s4 + $0x4] ss:$8 sps:$4 sm:$0xff]   ;;  %v4128_v52 = vld [vmem:[%s5166_s4] ss:$8 sps:$4 sm:$0xff]  }
  0x27   :  { %359 = vmatpush1.bf16.msra.mxu1 %v4011_v11  ;;  %v280_v9 = vld [vmem:[%s5168_s6] sm:$0x3]  ;;  %s3908_s28 = smov [#allocation8]  }
  0x28   :  { %360 = vmatprep.subr.bf16.mxu1 %v4016_v12  ;;  %690 = vmatpush1.bf16.msra.mxu0 %v4058_v40  ;;  %v4162_v14 = vrot.slane %v280_v9, %v92_v16  ;;  %s3362_s29 = sshll.u32 %s3908_s28, 4  ;;  %s3363_s29 = int_to_ptr.vmem [resolvable:$true] %s3362_s29 }
  0x29   :  { %691 = vmatprep.subr.bf16.mxu0 %v4062_v41  ;;  %s3874_s30 = scalar_lea.vmem %s3363_s29, 128  ;;  %p3879_p11 = scmp.lt.s32.totalorder %s3363_s29, %s3363_s29 }
  0x2a   :  { %p3875_p10 = scmp.ne.s32.totalorder %s3363_s29, %s3874_s30  ;;  %p3880_p12 = scmp.lt.s32.totalorder %s3874_s30, %s3874_s30 }
  0x2b   :  { %361 = vmatpush1.bf16.msra.mxu1 %v4023_v13 }
  0x2c   :  { %470 = vmatprep.subr.bf16.mxu1 %v4049_v37  ;;  %692 = vmatpush1.bf16.msra.mxu0 %v4066_v42  ;;  %p3881_p13 = por %p3880_p12, %p3879_p11 }
  0x2d   :  { %693 = vmatprep.subr.bf16.mxu0 %v4070_v43 }
  0x2e   :  { %379 = vmatmul.mubr.bf16.vlgmr.msra.gmra.mxu1 %v5172_v0  ;;  %p3882_p0 = pnand %p3881_p13, %p3875_p10 }
  0x2f   :  { %494 = vmatprep.mubr.bf16.mxu1 %v5172_v0  ;;  %471 = vmatpush1.bf16.msra.mxu1 %v4051_v38 }
  0x30   :  { %472 = vmatprep.subr.bf16.mxu1 %v4053_v39  ;;  %694 = vmatpush1.bf16.msra.mxu0 %v4074_v44 }
  0x31   :  { %797 = vmatprep.subr.bf16.mxu0 %v3970_v1 }
  0x33   :  { %473 = vmatpush1.bf16.msra.mxu1 %v4058_v40 }
  0x34   :  { %474 = vmatprep.subr.bf16.mxu1 %v4062_v41 }
  0x37   :  { %475 = vmatpush1.bf16.msra.mxu1 %v4066_v42 }
  0x38   :  { %476 = vmatprep.subr.bf16.mxu1 %v4070_v43 }
  0x3b   :  { %477 = vmatpush1.bf16.msra.mxu1 %v4074_v44 }
  0x3c   :  { %557 = vmatprep.subr.bf16.mxu1 %v4081_v45 }
  0x3e   :  { %495 = vmatmul.mubr.bf16.vlgmr.msra.gmra.mxu1 %v5172_v0 }
  0x3f   :  { %558 = vmatpush1.bf16.msra.mxu1 %v4088_v46  ;;  %581 = vmatprep.mubr.bf16.mxu1 %v5172_v0 }
  0x40   :  { %559 = vmatprep.subr.bf16.mxu1 %v4095_v47 }
  0x43   :  { %560 = vmatpush1.bf16.msra.mxu1 %v4103_v48 }
  0x44   :  { %561 = vmatprep.subr.bf16.mxu1 %v4110_v49 }
  0x47   :  { %562 = vmatpush1.bf16.msra.mxu1 %v4116_v50 }
  0x48   :  { %563 = vmatprep.subr.bf16.mxu1 %v4122_v51 }
  0x4b   :  { %564 = vmatpush1.bf16.msra.mxu1 %v4128_v52 }
  0x4c   :  { %620 = vmatprep.subr.bf16.mxu1 %v3970_v1 }
  0xe2   :  { %v169_v20 = vpop.f32.mrf.mxu0 }
  0xe3   :  { %v170_v21 = vadd.f32 %v169_v20, %v4039_v18 }
  0xe4   :  { %v171_v25 = vpop.f32.mrf.mxu0 }
  0xe5   :  { %v172_v27 = vadd.f32 %v171_v25, %v4045_v22 }
  0xee   :  { %v380_v23 = vpop.f32.mrf.mxu1 }
  0xef   :  { %v381_v24 = vadd.f32 %v380_v23, %v170_v21 }
  0xf0   :  { %v382_v26 = vpop.f32.mrf.mxu1 }
  0xf1   :  { %v387_v28 = vmul.f32 0.5, %v381_v24  ;;  %v383_v30 = vadd.f32 %v382_v26, %v172_v27  ;;  %v4167_v24 = vrot.slane %v280_v9, %v96_v19  ;;  %v66_v9 = vld [vmem:[%s5162_s0 + $0x20] sm:$0xff] }
  0xf2   :  { %v384_v29 = vpop.f32.mrf.mxu1 }
  0xf3   :  { %3530 = vtanh.f32 %v387_v28  ;;  %v392_v53 = vmul.f32 0.5, %v383_v30 }
  0xf4   :  { %v385_v31 = vpop.f32.mrf.mxu1  ;;  %3532 = vtanh.f32 %v383_v30  ;;  %v173_v30 = vpop.f32.mrf.mxu0 }
  0xf5   :  { %3534 = vtanh.f32 %v392_v53  ;;  %v174_v16 = vadd.f32 %v173_v30, %v4039_v18  ;;  %v72_v30 = vld [vmem:[%s5162_s0 + $0x50] sm:$0xff] }
  0xf6   :  { %v175_v31 = vpop.f32.mrf.mxu0 }
  0xfe   :  { %v496_v63 = vpop.f32.mrf.mxu1 }
 0x100   :  { %v3531_v32 = vpop.eup %3530  ;;  %v498_v3 = vpop.f32.mrf.mxu1 }
 0x101   :  { %v389_v33 = vmul.f32 0.5, %v3531_v32  ;;  %v3533_v35 = vpop.eup %3532 }
 0x102   :  { %v3535_v57 = vpop.eup %3534  ;;  %v500_v5 = vpop.f32.mrf.mxu1 }
 0x103   :  { %v390_v34 = vadd.f32 0.5, %v389_v33  ;;  %v394_v58 = vmul.f32 0.5, %v3535_v57  ;;  %v64_v5 = vld [vmem:[%s5162_s0 + $0x10] sm:$0xff] }
 0x104   :  { %v501_v7 = vpop.f32.mrf.mxu1 }
 0x105   :  { %v397_v36 = vmul.f32 %v3533_v35, %v390_v34  ;;  %v396_v54 = vmul.f32 0.0, %v390_v34  ;;  %v395_v59 = vadd.f32 0.5, %v394_v58  ;;  %v176_v35 = vadd.f32 %v175_v31, %v4045_v22  ;;  %v65_v7 = vld [vmem:[%s5162_s0 + $0x18] sm:$0xff] }
 0x107   :  { %399 = vrot.lane.b32.xlu0 %v397_v36, %s3905_s2 }
 0x179   :  { %v400_v55 = vpop.permute.xlu0 %399 }
 0x17a   :  { %v4133_v56 = vadd.f32 %v400_v55, %v396_v54 }
 0x17c   :  { %3536 = vtanh.f32 %v4133_v56 }
 0x189   :  { %v3537_v60 = vpop.eup %3536 }
 0x18a   :  { %v404_v61 = vmul.f32 %v3537_v60, %v395_v59 }
 0x18c   :  { %v405_v62 = vpack.c.bf16 %v404_v61, %v404_v61 }
 0x18e   :  { %504 = vrot.lane.b32.xlu0 %v405_v62, %s3905_s2 }
 0x200   :  { %v505_v8 = vpop.permute.xlu0 %504 }
 0x201   :  { %3406 = vmatmul.mubr.msk.bf16.vlgmr.msra.gmra.mxu1 %vm342_vm1, %v505_v8 }
 0x202   :  { %621 = vmatpush1.bf16.msra.mxu1 %v3975_v2  ;;  %644 = vmatprep.mubr.bf16.mxu1 %v5172_v0 }
 0x203   :  { %622 = vmatprep.subr.bf16.mxu1 %v3985_v4 }
 0x206   :  { %623 = vmatpush1.bf16.msra.mxu1 %v3993_v6 }
 0x207   :  { %624 = vmatprep.subr.bf16.mxu1 %v4005_v10 }
 0x20a   :  { %625 = vmatpush1.bf16.msra.mxu1 %v4011_v11 }
 0x20b   :  { %626 = vmatprep.subr.bf16.mxu1 %v4016_v12 }
 0x20e   :  { %627 = vmatpush1.bf16.msra.mxu1 %v4023_v13 }
 0x20f   :  { %734 = vmatprep.subr.bf16.mxu1 %v4081_v45 }
 0x211   :  { %3407 = vmatmul.mubr.msk.bf16.vlgmr.msra.gmra.mxu1 %vm342_vm1, %v505_v8  ;;  %v79_v8 = vpack.c.bf16 %v65_v7, %v64_v5 }
 0x212   :  { %735 = vmatpush1.bf16.msra.mxu1 %v4088_v46  ;;  %758 = vmatprep.mubr.bf16.mxu1 %v5172_v0 }
 0x213   :  { %736 = vmatprep.subr.bf16.mxu1 %v4095_v47  ;;  %3375 = vmatmul.mubr.msk.bf16.gmra.mxu0 %vm110_vm0, %v79_v8 }
 0x214   :  { %187 = vmatprep.mubr.bf16.mxu0 %v5172_v0 }
 0x216   :  { %737 = vmatpush1.bf16.msra.mxu1 %v4103_v48 }
 0x217   :  { %738 = vmatprep.subr.bf16.mxu1 %v4110_v49 }
 0x21a   :  { %739 = vmatpush1.bf16.msra.mxu1 %v4116_v50 }
 0x21b   :  { %740 = vmatprep.subr.bf16.mxu1 %v4122_v51 }
 0x21e   :  { %741 = vmatpush1.bf16.msra.mxu1 %v4128_v52 }
 0x21f   :  { %864 = vmatprep.subr.bf16.mxu1 %v4049_v37 }
 0x2c1   :  { %v583_v17 = vpop.f32.mrf.mxu1 }
 0x2c2   :  { %v584_v20 = vadd.f32 %v583_v17, %v496_v63  ;;  %v67_v17 = vld [vmem:[%s5162_s0 + $0x28] sm:$0xff] }
 0x2c3   :  { %v585_v21 = vpop.f32.mrf.mxu1 }
 0x2c4   :  { %v590_v23 = vadd.f32 %v584_v20, %v4162_v14  ;;  %v586_v25 = vadd.f32 %v585_v21, %v498_v3  ;;  %v80_v20 = vpack.c.bf16 %v67_v17, %v66_v9  ;;  %v68_v21 = vld [vmem:[%s5162_s0 + $0x30] sm:$0xff] }
 0x2c5   :  { %v587_v26 = vpop.f32.mrf.mxu1 }
 0x2c6   :  { %v592_v27 = vmul.f32 0.5, %v590_v23  ;;  %v591_v29 = vadd.f32 %v586_v25, %v4167_v24  ;;  %3376 = vmatmul.mubr.msk.bf16.gmra.mxu0 %vm110_vm0, %v80_v20  ;;  %v69_v23 = vld [vmem:[%s5162_s0 + $0x38] sm:$0xff]  ;;  %v70_v26 = vld [vmem:[%s5162_s0 + $0x40] sm:$0xff] }
 0x2c7   :  { %v588_v28 = vpop.f32.mrf.mxu1  ;;  %197 = vmatprep.mubr.bf16.mxu0 %v5172_v0  ;;  %v81_v25 = vpack.c.bf16 %v69_v23, %v68_v21 }
 0x2c8   :  { %3538 = vtanh.f32 %v592_v27  ;;  %v71_v27 = vld [vmem:[%s5162_s0 + $0x48] sm:$0xff] }
 0x2c9   :  { %3540 = vtanh.f32 %v591_v29  ;;  %v82_v28 = vpack.c.bf16 %v71_v27, %v70_v26 }
 0x2ce   :  { %3377 = vmatmul.mubr.msk.bf16.gmra.mxu0 %vm110_vm0, %v81_v25 }
 0x2cf   :  { %207 = vmatprep.mubr.bf16.mxu0 %v5172_v0 }
 0x2d1   :  { %v646_v32 = vpop.f32.mrf.mxu1 }
 0x2d2   :  { %v647_v33 = vadd.f32 %v646_v32, %v174_v16  ;;  %v73_v16 = vld [vmem:[%s5162_s0 + $0x58] sm:$0xff]  ;;  %v74_v32 = vld [vmem:[%s5162_s0 + $0x60] sm:$0xff] }
 0x2d3   :  { %v648_v34 = vpop.f32.mrf.mxu1  ;;  %v83_v31 = vpack.c.bf16 %v73_v16, %v72_v30  ;;  %v179_v25 = vpop.f32.mrf.mxu0 }
 0x2d4   :  { %v653_v15 = vmul.f32 0.5, %v647_v33  ;;  %v649_v53 = vadd.f32 %v648_v34, %v176_v35  ;;  %v75_v33 = vld [vmem:[%s5162_s0 + $0x68] sm:$0xff]  ;;  %v76_v35 = vld [vmem:[%s5162_s0 + $0x70] sm:$0xff] }
 0x2d5   :  { %v3539_v19 = vpop.eup %3538  ;;  %v650_v36 = vpop.f32.mrf.mxu1  ;;  %v84_v34 = vpack.c.bf16 %v75_v33, %v74_v32 }
 0x2d6   :  { %3542 = vtanh.f32 %v653_v15  ;;  %v594_v54 = vmul.f32 0.5, %v3539_v19  ;;  %v3541_v58 = vpop.eup %3540  ;;  %3378 = vmatmul.mubr.msk.bf16.gmra.mxu0 %vm110_vm0, %v82_v28  ;;  %v77_v15 = vld [vmem:[%s5162_s0 + $0x78] sm:$0xff]  ;;  %v597_v36 = vmul.f32 0.5, %v591_v29  ;;  %v181_v26 = vpop.f32.mrf.mxu0 }
 0x2d7   :  { %v651_v55 = vpop.f32.mrf.mxu1  ;;  %3544 = vtanh.f32 %v649_v53  ;;  %217 = vmatprep.mubr.bf16.mxu0 %v5172_v0  ;;  %v85_v19 = vpack.c.bf16 %v77_v15, %v76_v35 }
 0x2d8   :  { %v595_v57 = vadd.f32 0.5, %v594_v54  ;;  %3546 = vtanh.f32 %v597_v36  ;;  %v4269_v27 = vpop.f32.mrf.mxu0 }
 0x2da   :  { %v602_v59 = vmul.f32 %v3541_v58, %v595_v57  ;;  %v601_v54 = vmul.f32 0.0, %v595_v57  ;;  %v4271_v28 = vpop.f32.mrf.mxu0 }
 0x2dc   :  { %604 = vrot.lane.b32.xlu1 %v602_v59, %s3905_s2  ;;  %v658_v59 = vmul.f32 0.5, %v649_v53 }
 0x2de   :  { %3379 = vmatmul.mubr.msk.bf16.gmra.mxu0 %vm110_vm0, %v83_v31 }
 0x2df   :  { %227 = vmatprep.mubr.bf16.mxu0 %v5172_v0 }
 0x2e3   :  { %v3543_v60 = vpop.eup %3542 }
 0x2e4   :  { %v655_v61 = vmul.f32 0.5, %v3543_v60  ;;  %v3545_v63 = vpop.eup %3544 }
 0x2e5   :  { %v3547_v60 = vpop.eup %3546 }
 0x2e6   :  { %v656_v62 = vadd.f32 0.5, %v655_v61  ;;  %3380 = vmatmul.mubr.msk.bf16.gmra.mxu0 %vm110_vm0, %v84_v34  ;;  %v599_v61 = vmul.f32 0.5, %v3547_v60 }
 0x2e7   :  { %237 = vmatprep.mubr.bf16.mxu0 %v5172_v0 }
 0x2e8   :  { %v663_v3 = vmul.f32 %v3545_v63, %v656_v62  ;;  %v662_v63 = vmul.f32 %v656_v62, %v4133_v56  ;;  %v600_v7 = vadd.f32 0.5, %v599_v61 }
 0x2ea   :  { %665 = vrot.lane.b32.xlu1 %v663_v3, %s3905_s2 }
 0x2ee   :  { %3381 = vmatmul.mubr.msk.bf16.gmra.mxu0 %vm110_vm0, %v85_v19 }
 0x2ef   :  { %711 = vmatprep.mubr.bf16.mxu0 %v5172_v0 }
 0x34e   :  { %v605_v55 = vpop.permute.xlu1 %604 }
 0x34f   :  { %v4230_v58 = vadd.f32 %v605_v55, %v601_v54 }
 0x351   :  { %3548 = vtanh.f32 %v4230_v58 }
 0x352   :  { %3550 = vtanh.f32 %v658_v59 }
 0x35c   :  { %v666_v3 = vpop.permute.xlu1 %665 }
 0x35d   :  { %v4234_v5 = vadd.f32 %v666_v3, %v662_v63 }
 0x35e   :  { %v3549_v8 = vpop.eup %3548 }
 0x35f   :  { %3552 = vtanh.f32 %v4234_v5  ;;  %v609_v29 = vmul.f32 %v3549_v8, %v600_v7  ;;  %v3551_v9 = vpop.eup %3550 }
 0x360   :  { %v660_v17 = vmul.f32 0.5, %v3551_v9 }
 0x361   :  { %v672_v57 = vpack.c.bf16 %v609_v29, %v609_v29 }
 0x362   :  { %v661_v20 = vadd.f32 0.5, %v660_v17 }
 0x363   :  { %674 = vrot.lane.b32.xlu0 %v672_v57, %s3905_s2 }
 0x36c   :  { %v3553_v53 = vpop.eup %3552 }
 0x36d   :  { %v670_v21 = vmul.f32 %v3553_v53, %v661_v20 }
 0x36f   :  { %v671_v23 = vpack.c.bf16 %v670_v21, %v670_v21 }
 0x371   :  { %721 = vrot.lane.b32.xlu1 %v671_v23, %s3905_s2 }
 0x386   :  { %v4273_v30 = vpop.f32.mrf.mxu0 }
 0x388   :  { %v4275_v16 = vpop.f32.mrf.mxu0 }
 0x38a   :  { %v4277_v31 = vpop.f32.mrf.mxu0 }
 0x38c   :  { %v4279_v32 = vpop.f32.mrf.mxu0 }
 0x38e   :  { %v4281_v33 = vpop.f32.mrf.mxu0 }
 0x390   :  { %v4283_v34 = vpop.f32.mrf.mxu0 }
 0x392   :  { %v4285_v35 = vpop.f32.mrf.mxu0 }
 0x394   :  { %v4287_v15 = vpop.f32.mrf.mxu0 }
 0x396   :  { %v4289_v19 = vpop.f32.mrf.mxu0 }
 0x398   :  { %v4291_v36 = vpop.f32.mrf.mxu0 }
 0x39a   :  { %v4293_v54 = vpop.f32.mrf.mxu0 }
 0x39c   :  { %v4295_v55 = vpop.f32.mrf.mxu0 }
 0x39d   :  { %5174 = vst [vmem:[#allocation12_spill] sm:$0xff] %v4295_v55 }
 0x39e   :  { %v4297_v59 = vpop.f32.mrf.mxu0 }
 0x39f   :  { %5175 = vst [vmem:[#allocation13_spill] sm:$0xff] %v4297_v59 }
 0x3a0   :  { %v4299_v60 = vpop.f32.mrf.mxu0 }
 0x3a1   :  { %5176 = vst [vmem:[#allocation14_spill] sm:$0xff] %v4299_v60 }
 0x3a2   :  { %v4301_v61 = vpop.f32.mrf.mxu0 }
 0x3a3   :  { %5177 = vst [vmem:[#allocation15_spill] sm:$0xff] %v4301_v61 }
 0x3a4   :  { %v4303_v63 = vpop.f32.mrf.mxu0 }
 0x3a5   :  { %5178 = vst [vmem:[#allocation16_spill] sm:$0xff] %v4303_v63 }
 0x3a6   :  { %v4305_v3 = vpop.f32.mrf.mxu0 }
 0x3a7   :  { %5179 = vst [vmem:[#allocation17_spill] sm:$0xff] %v4305_v3 }
 0x3a8   :  { %v4307_v7 = vpop.f32.mrf.mxu0 }
 0x3a9   :  { %5180 = vst [vmem:[#allocation18_spill] sm:$0xff] %v4307_v7 }
 0x3aa   :  { %v4309_v8 = vpop.f32.mrf.mxu0 }
 0x3ab   :  { %5181 = vst [vmem:[#allocation19_spill] sm:$0xff] %v4309_v8 }
 0x3ac   :  { %v4311_v29 = vpop.f32.mrf.mxu0 }
 0x3ad   :  { %5182 = vst [vmem:[#allocation20_spill] sm:$0xff] %v4311_v29 }
 0x3ae   :  { %v4313_v57 = vpop.f32.mrf.mxu0 }
 0x3af   :  { %5183 = vst [vmem:[#allocation21_spill] sm:$0xff] %v4313_v57 }
 0x3b0   :  { %v4315_v9 = vpop.f32.mrf.mxu0 }
 0x3b1   :  { %5184 = vst [vmem:[#allocation22_spill] sm:$0xff] %v4315_v9 }
 0x3b2   :  { %v4317_v17 = vpop.f32.mrf.mxu0 }
 0x3b3   :  { %5185 = vst [vmem:[#allocation23_spill] sm:$0xff] %v4317_v17 }
 0x3b4   :  { %v4319_v20 = vpop.f32.mrf.mxu0 }
 0x3b5   :  { %5186 = vst [vmem:[#allocation24_spill] sm:$0xff] %v4319_v20 }
 0x3d5   :  { %v675_v56 = vpop.permute.xlu0 %674 }
 0x3d6   :  { %3408 = vmatmul.mubr.msk.bf16.vlgmr.msra.gmra.mxu0 %vm342_vm1, %v675_v56 }
 0x3d7   :  { %798 = vmatpush1.bf16.msra.mxu0 %v3975_v2  ;;  %821 = vmatprep.mubr.bf16.mxu0 %v5172_v0 }
 0x3d8   :  { %799 = vmatprep.subr.bf16.mxu0 %v3985_v4 }
 0x3db   :  { %800 = vmatpush1.bf16.msra.mxu0 %v3993_v6 }
 0x3dc   :  { %801 = vmatprep.subr.bf16.mxu0 %v4005_v10 }
 0x3df   :  { %802 = vmatpush1.bf16.msra.mxu0 %v4011_v11 }
 0x3e0   :  { %803 = vmatprep.subr.bf16.mxu0 %v4016_v12 }
 0x3e3   :  { %v722_v62 = vpop.permute.xlu1 %721  ;;  %804 = vmatpush1.bf16.msra.mxu0 %v4023_v13 }
 0x3e4   :  { %3409 = vmatmul.mubr.msk.bf16.vlgmr.msra.gmra.mxu1 %vm342_vm1, %v722_v62  ;;  %911 = vmatprep.subr.bf16.mxu0 %v4081_v45 }
 0x3e5   :  { %865 = vmatpush1.bf16.msra.mxu1 %v4051_v38  ;;  %888 = vmatprep.mubr.bf16.mxu1 %v5172_v0 }
 0x3e6   :  { %3410 = vmatmul.mubr.msk.bf16.vlgmr.msra.gmra.mxu0 %vm342_vm1, %v722_v62  ;;  %866 = vmatprep.subr.bf16.mxu1 %v4053_v39 }
 0x3e7   :  { %912 = vmatpush1.bf16.msra.mxu0 %v4088_v46  ;;  %935 = vmatprep.mubr.bf16.mxu0 %v5172_v0  ;;  %v180_v0 = vadd.f32 %v179_v25, %v4039_v18 }
 0x3e8   :  { %913 = vmatprep.subr.bf16.mxu0 %v4095_v47 }
 0x3e9   :  { %867 = vmatpush1.bf16.msra.mxu1 %v4058_v40 }
 0x3ea   :  { %868 = vmatprep.subr.bf16.mxu1 %v4062_v41 }
 0x3eb   :  { %914 = vmatpush1.bf16.msra.mxu0 %v4103_v48 }
 0x3ec   :  { %915 = vmatprep.subr.bf16.mxu0 %v4110_v49 }
 0x3ed   :  { %869 = vmatpush1.bf16.msra.mxu1 %v4066_v42 }
 0x3ee   :  { %870 = vmatprep.subr.bf16.mxu1 %v4070_v43 }
 0x3ef   :  { %916 = vmatpush1.bf16.msra.mxu0 %v4116_v50 }
 0x3f0   :  { %917 = vmatprep.subr.bf16.mxu0 %v4122_v51 }
 0x3f1   :  { %871 = vmatpush1.bf16.msra.mxu1 %v4074_v44 }
 0x3f2   :  { %974 = vmatprep.subr.bf16.mxu1 %v3970_v1 }
 0x3f3   :  { %918 = vmatpush1.bf16.msra.mxu0 %v4128_v52 }
 0x3f4   :  { %1041 = vmatprep.subr.bf16.mxu0 %v4049_v37 }
 0x496   :  { %v713_v53 = vpop.f32.mrf.mxu0 }
 0x498   :  { %v715_v21 = vpop.f32.mrf.mxu0 }
 0x49a   :  { %v717_v23 = vpop.f32.mrf.mxu0 }
 0x49c   :  { %v718_v56 = vpop.f32.mrf.mxu0 }
 0x49d   :  { %v182_v56 = vadd.f32 %v181_v26, %v4045_v22 }
 0x4a4   :  { %v760_v62 = vpop.f32.mrf.mxu1 }
 0x4a5   :  { %v761_v7 = vadd.f32 %v760_v62, %v713_v53 }
 0x4a6   :  { %v762_v3 = vpop.f32.mrf.mxu1  ;;  %v823_v8 = vpop.f32.mrf.mxu0 }
 0x4a7   :  { %v767_v29 = vadd.f32 %v761_v7, %v4162_v14  ;;  %v763_v63 = vadd.f32 %v762_v3, %v715_v21  ;;  %v824_v57 = vadd.f32 %v823_v8, %v180_v0 }
 0x4a8   :  { %v764_v61 = vpop.f32.mrf.mxu1  ;;  %v825_v9 = vpop.f32.mrf.mxu0 }
 0x4a9   :  { %v769_v60 = vmul.f32 0.5, %v767_v29  ;;  %v830_v17 = vmul.f32 0.5, %v824_v57  ;;  %v768_v23 = vadd.f32 %v763_v63, %v4167_v24  ;;  %v826_v25 = vadd.f32 %v825_v9, %v182_v56 }
 0x4aa   :  { %v765_v59 = vpop.f32.mrf.mxu1  ;;  %v827_v20 = vpop.f32.mrf.mxu0 }
 0x4ab   :  { %3554 = vtanh.f32 %v769_v60  ;;  %v774_v26 = vmul.f32 0.5, %v768_v23 }
 0x4ac   :  { %v828_v55 = vpop.f32.mrf.mxu0  ;;  %3556 = vtanh.f32 %v830_v17 }
 0x4ad   :  { %3558 = vtanh.f32 %v768_v23  ;;  %v835_v55 = vmul.f32 0.5, %v826_v25 }
 0x4ae   :  { %3560 = vtanh.f32 %v826_v25 }
 0x4af   :  { %3562 = vtanh.f32 %v774_v26 }
 0x4b0   :  { %3564 = vtanh.f32 %v835_v55 }
 0x4b8   :  { %v3555_v53 = vpop.eup %3554 }
 0x4b9   :  { %v771_v7 = vmul.f32 0.5, %v3555_v53  ;;  %v3557_v3 = vpop.eup %3556 }
 0x4ba   :  { %v3559_v61 = vpop.eup %3558  ;;  %v832_v8 = vmul.f32 0.5, %v3557_v3 }
 0x4bb   :  { %v772_v0 = vadd.f32 0.5, %v771_v7  ;;  %v3561_v59 = vpop.eup %3560 }
 0x4bc   :  { %v833_v57 = vadd.f32 0.5, %v832_v8  ;;  %v3563_v56 = vpop.eup %3562 }
 0x4bd   :  { %v779_v29 = vmul.f32 %v3559_v61, %v772_v0  ;;  %v778_v63 = vmul.f32 %v772_v0, %v4230_v58  ;;  %v3565_v53 = vpop.eup %3564  ;;  %v776_v23 = vmul.f32 0.5, %v3563_v56 }
 0x4be   :  { %v840_v60 = vmul.f32 %v3561_v59, %v833_v57  ;;  %v839_v20 = vmul.f32 %v833_v57, %v4234_v5  ;;  %v837_v25 = vmul.f32 0.5, %v3565_v53  ;;  %v5187_v59 = vmov 0  }
 0x4bf   :  { %781 = vrot.lane.b32.xlu0 %v779_v29, %s3905_s2  ;;  %v777_v7 = vadd.f32 0.5, %v776_v23 }
 0x4c0   :  { %842 = vrot.lane.b32.xlu1 %v840_v60, %s3905_s2  ;;  %v838_v58 = vadd.f32 0.5, %v837_v25 }
 0x531   :  { %v782_v9 = vpop.permute.xlu0 %781 }
 0x532   :  { %v4328_v17 = vadd.f32 %v782_v9, %v778_v63  ;;  %v843_v21 = vpop.permute.xlu1 %842 }
 0x533   :  { %v4332_v62 = vadd.f32 %v843_v21, %v839_v20 }
 0x534   :  { %3566 = vtanh.f32 %v4328_v17 }
 0x535   :  { %3568 = vtanh.f32 %v4332_v62 }
 0x541   :  { %v3567_v3 = vpop.eup %3566 }
 0x542   :  { %v786_v61 = vmul.f32 %v3567_v3, %v777_v7  ;;  %v3569_v0 = vpop.eup %3568 }
 0x543   :  { %v847_v29 = vmul.f32 %v3569_v0, %v838_v58  ;;  %v184_v58 = vadd.f32 %v4269_v27, %v4039_v18 }
 0x544   :  { %v849_v8 = vpack.c.bf16 %v786_v61, %v786_v61 }
 0x545   :  { %v848_v5 = vpack.c.bf16 %v847_v29, %v847_v29 }
 0x546   :  { %851 = vrot.lane.b32.xlu0 %v849_v8, %s3905_s2 }
 0x547   :  { %898 = vrot.lane.b32.xlu1 %v848_v5, %s3905_s2  ;;  %v186_v5 = vadd.f32 %v4271_v28, %v4045_v22 }
 0x5b8   :  { %v852_v57 = vpop.permute.xlu0 %851 }
 0x5b9   :  { %3411 = vmatmul.mubr.msk.bf16.vlgmr.msra.gmra.mxu1 %vm342_vm1, %v852_v57  ;;  %v899_v60 = vpop.permute.xlu1 %898 }
 0x5ba   :  { %975 = vmatpush1.bf16.msra.mxu1 %v3975_v2  ;;  %998 = vmatprep.mubr.bf16.mxu1 %v5187_v59 }
 0x5bb   :  { %976 = vmatprep.subr.bf16.mxu1 %v3985_v4  ;;  %3412 = vmatmul.mubr.msk.bf16.vlgmr.msra.gmra.mxu0 %vm342_vm1, %v899_v60 }
 0x5bc   :  { %1042 = vmatpush1.bf16.msra.mxu0 %v4051_v38  ;;  %1065 = vmatprep.mubr.bf16.mxu0 %v5187_v59 }
 0x5bd   :  { %1043 = vmatprep.subr.bf16.mxu0 %v4053_v39 }
 0x5be   :  { %977 = vmatpush1.bf16.msra.mxu1 %v3993_v6 }
 0x5bf   :  { %978 = vmatprep.subr.bf16.mxu1 %v4005_v10 }
 0x5c0   :  { %1044 = vmatpush1.bf16.msra.mxu0 %v4058_v40 }
 0x5c1   :  { %1045 = vmatprep.subr.bf16.mxu0 %v4062_v41 }
 0x5c2   :  { %979 = vmatpush1.bf16.msra.mxu1 %v4011_v11 }
 0x5c3   :  { %980 = vmatprep.subr.bf16.mxu1 %v4016_v12 }
 0x5c4   :  { %1046 = vmatpush1.bf16.msra.mxu0 %v4066_v42 }
 0x5c5   :  { %1047 = vmatprep.subr.bf16.mxu0 %v4070_v43 }
 0x5c6   :  { %981 = vmatpush1.bf16.msra.mxu1 %v4023_v13 }
 0x5c7   :  { %1088 = vmatprep.subr.bf16.mxu1 %v4081_v45 }
 0x5c8   :  { %1048 = vmatpush1.bf16.msra.mxu0 %v4074_v44 }
 0x5c9   :  { %3413 = vmatmul.mubr.msk.bf16.vlgmr.msra.gmra.mxu1 %vm342_vm1, %v899_v60  ;;  %1151 = vmatprep.subr.bf16.mxu0 %v3970_v1 }
 0x5ca   :  { %1089 = vmatpush1.bf16.msra.mxu1 %v4088_v46  ;;  %1112 = vmatprep.mubr.bf16.mxu1 %v5187_v59 }
 0x5cb   :  { %1090 = vmatprep.subr.bf16.mxu1 %v4095_v47 }
 0x5ce   :  { %1091 = vmatpush1.bf16.msra.mxu1 %v4103_v48 }
 0x5cf   :  { %1092 = vmatprep.subr.bf16.mxu1 %v4110_v49 }
 0x5d2   :  { %1093 = vmatpush1.bf16.msra.mxu1 %v4116_v50 }
 0x5d3   :  { %1094 = vmatprep.subr.bf16.mxu1 %v4122_v51 }
 0x5d6   :  { %1095 = vmatpush1.bf16.msra.mxu1 %v4128_v52 }
 0x5d7   :  { %1218 = vmatprep.subr.bf16.mxu1 %v4049_v37 }
 0x679   :  { %v890_v26 = vpop.f32.mrf.mxu1 }
 0x67b   :  { %v892_v55 = vpop.f32.mrf.mxu1  ;;  %v937_v63 = vpop.f32.mrf.mxu0 }
 0x67c   :  { %v938_v9 = vadd.f32 %v937_v63, %v890_v26 }
 0x67d   :  { %v894_v20 = vpop.f32.mrf.mxu1  ;;  %v939_v21 = vpop.f32.mrf.mxu0 }
 0x67e   :  { %v944_v56 = vadd.f32 %v938_v9, %v4162_v14  ;;  %v940_v53 = vadd.f32 %v939_v21, %v892_v55 }
 0x67f   :  { %v895_v23 = vpop.f32.mrf.mxu1  ;;  %v941_v25 = vpop.f32.mrf.mxu0 }
 0x680   :  { %v946_v7 = vmul.f32 0.5, %v944_v56  ;;  %v945_v61 = vadd.f32 %v940_v53, %v4167_v24 }
 0x681   :  { %v942_v3 = vpop.f32.mrf.mxu0 }
 0x682   :  { %3570 = vtanh.f32 %v946_v7  ;;  %v951_v28 = vmul.f32 0.5, %v945_v61 }
 0x683   :  { %3572 = vtanh.f32 %v945_v61 }
 0x689   :  { %v1000_v0 = vpop.f32.mrf.mxu1 }
 0x68a   :  { %v1001_v8 = vadd.f32 %v1000_v0, %v184_v58 }
 0x68b   :  { %v1002_v29 = vpop.f32.mrf.mxu1 }
 0x68c   :  { %v1007_v57 = vmul.f32 0.5, %v1001_v8  ;;  %v1003_v26 = vadd.f32 %v1002_v29, %v186_v5 }
 0x68d   :  { %v1004_v60 = vpop.f32.mrf.mxu1 }
 0x68e   :  { %3574 = vtanh.f32 %v1007_v57  ;;  %v1012_v8 = vmul.f32 0.5, %v1003_v26 }
 0x68f   :  { %v1005_v55 = vpop.f32.mrf.mxu1  ;;  %v3571_v63 = vpop.eup %3570  ;;  %3576 = vtanh.f32 %v1003_v26 }
 0x690   :  { %v948_v9 = vmul.f32 0.5, %v3571_v63  ;;  %v3573_v21 = vpop.eup %3572  ;;  %3578 = vtanh.f32 %v951_v28  ;;  %v190_v28 = vadd.f32 %v4273_v30, %v4039_v18 }
 0x692   :  { %v949_v20 = vadd.f32 0.5, %v948_v9 }
 0x694   :  { %v956_v56 = vmul.f32 %v3573_v21, %v949_v20  ;;  %v955_v3 = vmul.f32 %v949_v20, %v4328_v17 }
 0x696   :  { %958 = vrot.lane.b32.xlu0 %v956_v56, %s3905_s2 }
 0x69b   :  { %v3575_v27 = vpop.eup %3574 }
 0x69c   :  { %v1009_v53 = vmul.f32 0.5, %v3575_v27  ;;  %v3577_v25 = vpop.eup %3576 }
 0x69d   :  { %v3579_v29 = vpop.eup %3578 }
 0x69e   :  { %v1010_v23 = vadd.f32 0.5, %v1009_v53  ;;  %v953_v60 = vmul.f32 0.5, %v3579_v29 }
 0x6a0   :  { %v1017_v7 = vmul.f32 %v3577_v25, %v1010_v23  ;;  %v1016_v5 = vmul.f32 %v1010_v23, %v4332_v62  ;;  %v954_v61 = vadd.f32 0.5, %v953_v60 }
 0x6a2   :  { %1019 = vrot.lane.b32.xlu1 %v1017_v7, %s3905_s2 }
 0x708   :  { %v959_v58 = vpop.permute.xlu0 %958 }
 0x709   :  { %v4376_v0 = vadd.f32 %v959_v58, %v955_v3 }
 0x70b   :  { %3580 = vtanh.f32 %v4376_v0 }
 0x70c   :  { %3582 = vtanh.f32 %v1012_v8 }
 0x714   :  { %v1020_v57 = vpop.permute.xlu1 %1019 }
 0x715   :  { %v4380_v55 = vadd.f32 %v1020_v57, %v1016_v5  ;;  %v192_v57 = vadd.f32 %v4275_v16, %v4045_v22 }
 0x717   :  { %3584 = vtanh.f32 %v4380_v55 }
 0x718   :  { %v3581_v63 = vpop.eup %3580 }
 0x719   :  { %v963_v9 = vmul.f32 %v3581_v63, %v954_v61  ;;  %v3583_v17 = vpop.eup %3582 }
 0x71a   :  { %v1014_v26 = vmul.f32 0.5, %v3583_v17 }
 0x71b   :  { %v1026_v20 = vpack.c.bf16 %v963_v9, %v963_v9 }
 0x71c   :  { %v1015_v21 = vadd.f32 0.5, %v1014_v26 }
 0x71d   :  { %1028 = vrot.lane.b32.xlu0 %v1026_v20, %s3905_s2 }
 0x724   :  { %v3585_v56 = vpop.eup %3584 }
 0x725   :  { %v1024_v27 = vmul.f32 %v3585_v56, %v1015_v21 }
 0x727   :  { %v1025_v53 = vpack.c.bf16 %v1024_v27, %v1024_v27 }
 0x729   :  { %1075 = vrot.lane.b32.xlu1 %v1025_v53, %s3905_s2 }
 0x78f   :  { %v1029_v62 = vpop.permute.xlu0 %1028 }
 0x790   :  { %3414 = vmatmul.mubr.msk.bf16.vlgmr.msra.gmra.mxu0 %vm342_vm1, %v1029_v62 }
 0x791   :  { %1152 = vmatpush1.bf16.msra.mxu0 %v3975_v2  ;;  %1175 = vmatprep.mubr.bf16.mxu0 %v5187_v59 }
 0x792   :  { %1153 = vmatprep.subr.bf16.mxu0 %v3985_v4 }
 0x795   :  { %1154 = vmatpush1.bf16.msra.mxu0 %v3993_v6 }
 0x796   :  { %1155 = vmatprep.subr.bf16.mxu0 %v4005_v10 }
 0x799   :  { %1156 = vmatpush1.bf16.msra.mxu0 %v4011_v11 }
 0x79a   :  { %1157 = vmatprep.subr.bf16.mxu0 %v4016_v12 }
 0x79b   :  { %v1076_v23 = vpop.permute.xlu1 %1075 }
 0x79c   :  { %3415 = vmatmul.mubr.msk.bf16.vlgmr.msra.gmra.mxu1 %vm342_vm1, %v1076_v23 }
 0x79d   :  { %1219 = vmatpush1.bf16.msra.mxu1 %v4051_v38  ;;  %1242 = vmatprep.mubr.bf16.mxu1 %v5187_v59 }
 0x79e   :  { %1158 = vmatpush1.bf16.msra.mxu0 %v4023_v13  ;;  %1220 = vmatprep.subr.bf16.mxu1 %v4053_v39 }
 0x79f   :  { %1265 = vmatprep.subr.bf16.mxu0 %v4081_v45 }
 0x7a1   :  { %3416 = vmatmul.mubr.msk.bf16.vlgmr.msra.gmra.mxu0 %vm342_vm1, %v1076_v23  ;;  %1221 = vmatpush1.bf16.msra.mxu1 %v4058_v40 }
 0x7a2   :  { %1266 = vmatpush1.bf16.msra.mxu0 %v4088_v46  ;;  %1222 = vmatprep.subr.bf16.mxu1 %v4062_v41 }
 0x7a3   :  { %1267 = vmatprep.subr.bf16.mxu0 %v4095_v47  ;;  %1289 = vmatprep.mubr.bf16.mxu0 %v5187_v59 }
 0x7a5   :  { %1223 = vmatpush1.bf16.msra.mxu1 %v4066_v42 }
 0x7a6   :  { %1268 = vmatpush1.bf16.msra.mxu0 %v4103_v48  ;;  %1224 = vmatprep.subr.bf16.mxu1 %v4070_v43 }
 0x7a7   :  { %1269 = vmatprep.subr.bf16.mxu0 %v4110_v49 }
 0x7a9   :  { %1225 = vmatpush1.bf16.msra.mxu1 %v4074_v44 }
 0x7aa   :  { %1270 = vmatpush1.bf16.msra.mxu0 %v4116_v50  ;;  %1328 = vmatprep.subr.bf16.mxu1 %v3970_v1 }
 0x7ab   :  { %1271 = vmatprep.subr.bf16.mxu0 %v4122_v51 }
 0x7ae   :  { %1272 = vmatpush1.bf16.msra.mxu0 %v4128_v52 }
 0x7af   :  { %1395 = vmatprep.subr.bf16.mxu0 %v4049_v37 }
 0x850   :  { %v1067_v2 = vpop.f32.mrf.mxu0 }
 0x852   :  { %v1069_v4 = vpop.f32.mrf.mxu0 }
 0x854   :  { %v1071_v6 = vpop.f32.mrf.mxu0 }
 0x856   :  { %v1072_v10 = vpop.f32.mrf.mxu0 }
 0x85c   :  { %v1114_v11 = vpop.f32.mrf.mxu1 }
 0x85d   :  { %v1115_v12 = vadd.f32 %v1114_v11, %v1067_v2 }
 0x85e   :  { %v1116_v13 = vpop.f32.mrf.mxu1 }
 0x85f   :  { %v1121_v25 = vadd.f32 %v1115_v12, %v4162_v14  ;;  %v1117_v7 = vadd.f32 %v1116_v13, %v1069_v4 }
 0x860   :  { %v1118_v1 = vpop.f32.mrf.mxu1 }
 0x861   :  { %v1123_v3 = vmul.f32 0.5, %v1121_v25  ;;  %v1177_v58 = vpop.f32.mrf.mxu0  ;;  %v1122_v37 = vadd.f32 %v1117_v7, %v4167_v24 }
 0x862   :  { %v1178_v8 = vadd.f32 %v1177_v58, %v190_v28  ;;  %v1119_v29 = vpop.f32.mrf.mxu1 }
 0x863   :  { %3586 = vtanh.f32 %v1123_v3  ;;  %v1179_v5 = vpop.f32.mrf.mxu0  ;;  %v1128_v16 = vmul.f32 0.5, %v1122_v37 }
 0x864   :  { %v1184_v60 = vmul.f32 0.5, %v1178_v8  ;;  %v1180_v63 = vadd.f32 %v1179_v5, %v192_v57 }
 0x865   :  { %v1181_v61 = vpop.f32.mrf.mxu0 }
 0x866   :  { %3588 = vtanh.f32 %v1184_v60  ;;  %v1189_v2 = vmul.f32 0.5, %v1180_v63  ;;  %v4437_v60 = vld [vmem:[%s5165_s3 + $0x30] ss:$8 sps:$4 sm:$0xff]  }
 0x867   :  { %3590 = vtanh.f32 %v1122_v37  ;;  %v1182_v9 = vpop.f32.mrf.mxu0 }
 0x868   :  { %3592 = vtanh.f32 %v1180_v63  ;;  %v4444_v63 = vld [vmem:[%s5165_s3 + $0x24] ss:$8 sps:$4 sm:$0xff]   ;;  %v4453_v9 = vld [vmem:[%s5165_s3 + $0x20] ss:$8 sps:$4 sm:$0xff]  }
 0x869   :  { %3594 = vtanh.f32 %v1128_v16 }
 0x86a   :  { %3596 = vtanh.f32 %v1189_v2 }
 0x870   :  { %v3587_v30 = vpop.eup %3586 }
 0x871   :  { %v1125_v17 = vmul.f32 0.5, %v3587_v30  ;;  %v4460_v30 = vld [vmem:[%s5165_s3 + $0x14] ss:$8 sps:$4 sm:$0xff]  }
 0x873   :  { %v3589_v20 = vpop.eup %3588  ;;  %v1126_v26 = vadd.f32 0.5, %v1125_v17 }
 0x874   :  { %v3591_v21 = vpop.eup %3590  ;;  %v1186_v56 = vmul.f32 0.5, %v3589_v20 }
 0x875   :  { %v1133_v27 = vmul.f32 %v3591_v21, %v1126_v26  ;;  %v3593_v62 = vpop.eup %3592  ;;  %v1132_v4 = vmul.f32 %v1126_v26, %v4376_v0 }
 0x876   :  { %v1187_v53 = vadd.f32 0.5, %v1186_v56  ;;  %v3595_v25 = vpop.eup %3594 }
 0x877   :  { %1135 = vrot.lane.b32.xlu0 %v1133_v27, %s3905_s2  ;;  %v3597_v7 = vpop.eup %3596  ;;  %v1130_v28 = vmul.f32 0.5, %v3595_v25 }
 0x878   :  { %v1194_v23 = vmul.f32 %v3593_v62, %v1187_v53  ;;  %v1193_v11 = vmul.f32 %v1187_v53, %v4380_v55  ;;  %v1191_v1 = vmul.f32 0.5, %v3597_v7  ;;  %v196_v62 = vadd.f32 %v4279_v32, %v4045_v22 }
 0x879   :  { %v1131_v3 = vadd.f32 0.5, %v1130_v28 }
 0x87a   :  { %1196 = vrot.lane.b32.xlu1 %v1194_v23, %s3905_s2  ;;  %v1192_v0 = vadd.f32 0.5, %v1191_v1 }
 0x8e9   :  { %v1136_v6 = vpop.permute.xlu0 %1135 }
 0x8ea   :  { %v4424_v10 = vadd.f32 %v1136_v6, %v1132_v4 }
 0x8ec   :  { %3598 = vtanh.f32 %v4424_v10  ;;  %v1197_v12 = vpop.permute.xlu1 %1196 }
 0x8ed   :  { %v4428_v13 = vadd.f32 %v1197_v12, %v1193_v11 }
 0x8ef   :  { %3600 = vtanh.f32 %v4428_v13 }
 0x8f9   :  { %v3599_v58 = vpop.eup %3598 }
 0x8fa   :  { %v1140_v8 = vmul.f32 %v3599_v58, %v1131_v3 }
 0x8fc   :  { %v3601_v29 = vpop.eup %3600  ;;  %v1203_v37 = vpack.c.bf16 %v1140_v8, %v1140_v8 }
 0x8fd   :  { %v1201_v5 = vmul.f32 %v3601_v29, %v1192_v0 }
 0x8fe   :  { %1205 = vrot.lane.b32.xlu0 %v1203_v37, %s3905_s2 }
 0x8ff   :  { %v1202_v55 = vpack.c.bf16 %v1201_v5, %v1201_v5 }
 0x901   :  { %1252 = vrot.lane.b32.xlu1 %v1202_v55, %s3905_s2 }
 0x970   :  { %v1206_v57 = vpop.permute.xlu0 %1205 }
 0x971   :  { %3417 = vmatmul.mubr.msk.bf16.vlgmr.msra.gmra.mxu1 %vm342_vm1, %v1206_v57 }
 0x972   :  { %1329 = vmatpush1.bf16.msra.mxu1 %v4437_v60  ;;  %1352 = vmatprep.mubr.bf16.mxu1 %v5187_v59 }
 0x973   :  { %v1253_v61 = vpop.permute.xlu1 %1252  ;;  %1330 = vmatprep.subr.bf16.mxu1 %v4444_v63 }
 0x974   :  { %3418 = vmatmul.mubr.msk.bf16.vlgmr.msra.gmra.mxu0 %vm342_vm1, %v1253_v61 }
 0x975   :  { %1396 = vmatpush1.bf16.msra.mxu0 %v4051_v38  ;;  %1419 = vmatprep.mubr.bf16.mxu0 %v5187_v59  ;;  %v4467_v38 = vld [vmem:[%s5165_s3 + $0x10] ss:$8 sps:$4 sm:$0xff]  }
 0x976   :  { %1331 = vmatpush1.bf16.msra.mxu1 %v4453_v9  ;;  %1397 = vmatprep.subr.bf16.mxu0 %v4053_v39  ;;  %v4474_v39 = vld [vmem:[%s5165_s3 + $0x4] ss:$8 sps:$4 sm:$0xff]  }
 0x977   :  { %1332 = vmatprep.subr.bf16.mxu1 %v4460_v30 }
 0x979   :  { %1398 = vmatpush1.bf16.msra.mxu0 %v4058_v40  ;;  %v4481_v40 = vld [vmem:[%s5165_s3] ss:$8 sps:$4 sm:$0xff]  }
 0x97a   :  { %1333 = vmatpush1.bf16.msra.mxu1 %v4467_v38  ;;  %1399 = vmatprep.subr.bf16.mxu0 %v4062_v41  ;;  %v4492_v41 = vld [vmem:[%s5165_s3 + $0x34] ss:$8 sps:$4 sm:$0xff]  }
 0x97b   :  { %1334 = vmatprep.subr.bf16.mxu1 %v4474_v39 }
 0x97d   :  { %1400 = vmatpush1.bf16.msra.mxu0 %v4066_v42  ;;  %v4502_v42 = vld [vmem:[#allocation3 + $0x34] ss:$8 sps:$4 sm:$0xff]  }
 0x97e   :  { %1335 = vmatpush1.bf16.msra.mxu1 %v4481_v40  ;;  %1401 = vmatprep.subr.bf16.mxu0 %v4070_v43 }
 0x97f   :  { %1442 = vmatprep.subr.bf16.mxu1 %v4081_v45 }
 0x981   :  { %3419 = vmatmul.mubr.msk.bf16.vlgmr.msra.gmra.mxu1 %vm342_vm1, %v1253_v61  ;;  %1402 = vmatpush1.bf16.msra.mxu0 %v4074_v44 }
 0x982   :  { %1443 = vmatpush1.bf16.msra.mxu1 %v4088_v46  ;;  %1505 = vmatprep.subr.bf16.mxu0 %v4492_v41 }
 0x983   :  { %1444 = vmatprep.subr.bf16.mxu1 %v4095_v47  ;;  %1466 = vmatprep.mubr.bf16.mxu1 %v5187_v59 }
 0x986   :  { %1445 = vmatpush1.bf16.msra.mxu1 %v4103_v48 }
 0x987   :  { %1446 = vmatprep.subr.bf16.mxu1 %v4110_v49 }
 0x98a   :  { %1447 = vmatpush1.bf16.msra.mxu1 %v4116_v50 }
 0x98b   :  { %1448 = vmatprep.subr.bf16.mxu1 %v4122_v51 }
 0x98e   :  { %1449 = vmatpush1.bf16.msra.mxu1 %v4128_v52  ;;  %v194_v52 = vadd.f32 %v4277_v31, %v4039_v18 }
 0x98f   :  { %1572 = vmatprep.subr.bf16.mxu1 %v4502_v42 }
 0xa31   :  { %v1244_v43 = vpop.f32.mrf.mxu1 }
 0xa33   :  { %v1246_v44 = vpop.f32.mrf.mxu1 }
 0xa34   :  { %v1291_v45 = vpop.f32.mrf.mxu0 }
 0xa35   :  { %v1292_v46 = vadd.f32 %v1291_v45, %v1244_v43  ;;  %v1248_v47 = vpop.f32.mrf.mxu1 }
 0xa36   :  { %v1293_v17 = vpop.f32.mrf.mxu0 }
 0xa37   :  { %v1298_v48 = vadd.f32 %v1292_v46, %v4162_v14  ;;  %v1294_v20 = vadd.f32 %v1293_v17, %v1246_v44  ;;  %v1249_v49 = vpop.f32.mrf.mxu1 }
 0xa38   :  { %v1295_v26 = vpop.f32.mrf.mxu0 }
 0xa39   :  { %v1300_v50 = vmul.f32 0.5, %v1298_v48  ;;  %v1299_v51 = vadd.f32 %v1294_v20, %v4167_v24 }
 0xa3a   :  { %v1296_v21 = vpop.f32.mrf.mxu0 }
 0xa3b   :  { %3602 = vtanh.f32 %v1300_v50  ;;  %v1305_v32 = vmul.f32 0.5, %v1299_v51  ;;  %v4532_v21 = vld [vmem:[#allocation3 + $0x30] ss:$8 sps:$4 sm:$0xff]  }
 0xa3c   :  { %3604 = vtanh.f32 %v1299_v51  ;;  %v4537_v51 = vld [vmem:[#allocation3 + $0x24] ss:$8 sps:$4 sm:$0xff]  }
 0xa41   :  { %v1354_v56 = vpop.f32.mrf.mxu1 }
 0xa42   :  { %v1355_v27 = vadd.f32 %v1354_v56, %v194_v52  ;;  %v4543_v52 = vld [vmem:[%s5166_s4 + $0x34] ss:$8 sps:$4 sm:$0xff]   ;;  %v4547_v56 = vld [vmem:[#allocation3 + $0x20] ss:$8 sps:$4 sm:$0xff]  }
 0xa43   :  { %v1356_v53 = vpop.f32.mrf.mxu1 }
 0xa44   :  { %v1361_v23 = vmul.f32 0.5, %v1355_v27  ;;  %v1357_v2 = vadd.f32 %v1356_v53, %v196_v62  ;;  %v4553_v27 = vld [vmem:[%s5166_s4 + $0x30] ss:$8 sps:$4 sm:$0xff]   ;;  %v4556_v53 = vld [vmem:[#allocation3 + $0x14] ss:$8 sps:$4 sm:$0xff]  }
 0xa45   :  { %v1358_v16 = vpop.f32.mrf.mxu1  ;;  %v4562_v62 = vld [vmem:[%s5166_s4 + $0x24] ss:$8 sps:$4 sm:$0xff]  }
 0xa46   :  { %3606 = vtanh.f32 %v1361_v23  ;;  %v1366_v37 = vmul.f32 0.5, %v1357_v2  ;;  %v4566_v23 = vld [vmem:[#allocation3 + $0x10] ss:$8 sps:$4 sm:$0xff]   ;;  %v4572_v16 = vld [vmem:[%s5166_s4 + $0x20] ss:$8 sps:$4 sm:$0xff]  }
 0xa47   :  { %v1359_v4 = vpop.f32.mrf.mxu1  ;;  %3608 = vtanh.f32 %v1357_v2  ;;  %v4575_v2 = vld [vmem:[#allocation3 + $0x4] ss:$8 sps:$4 sm:$0xff]  }
 0xa48   :  { %v3603_v6 = vpop.eup %3602  ;;  %3610 = vtanh.f32 %v1305_v32  ;;  %v4581_v4 = vld [vmem:[%s5166_s4 + $0x14] ss:$8 sps:$4 sm:$0xff]  }
 0xa49   :  { %v1302_v11 = vmul.f32 0.5, %v3603_v6  ;;  %v3605_v25 = vpop.eup %3604  ;;  %v4584_v6 = vld [vmem:[#allocation3] ss:$8 sps:$4 sm:$0xff]  }
 0xa4b   :  { %v1303_v12 = vadd.f32 0.5, %v1302_v11  ;;  %v4590_v11 = vld [vmem:[%s5166_s4 + $0x10] ss:$8 sps:$4 sm:$0xff]  }
 0xa4d   :  { %v1310_v7 = vmul.f32 %v3605_v25, %v1303_v12  ;;  %v1309_v8 = vmul.f32 %v1303_v12, %v4424_v10  ;;  %v4597_v12 = vld [vmem:[%s5166_s4 + $0x4] ss:$8 sps:$4 sm:$0xff]   ;;  %v4603_v25 = vld [vmem:[%s5166_s4] ss:$8 sps:$4 sm:$0xff]  }
 0xa4f   :  { %1312 = vrot.lane.b32.xlu0 %v1310_v7, %s3905_s2 }
 0xa53   :  { %v3607_v31 = vpop.eup %3606 }
 0xa54   :  { %v1363_v28 = vmul.f32 0.5, %v3607_v31  ;;  %v3609_v3 = vpop.eup %3608 }
 0xa55   :  { %v3611_v5 = vpop.eup %3610 }
 0xa56   :  { %v1364_v1 = vadd.f32 0.5, %v1363_v28  ;;  %v1307_v61 = vmul.f32 0.5, %v3611_v5 }
 0xa58   :  { %v1371_v58 = vmul.f32 %v3609_v3, %v1364_v1  ;;  %v1370_v55 = vmul.f32 %v1364_v1, %v4428_v13  ;;  %v1308_v44 = vadd.f32 0.5, %v1307_v61 }
 0xa5a   :  { %1373 = vrot.lane.b32.xlu1 %v1371_v58, %s3905_s2 }
 0xac1   :  { %v1313_v0 = vpop.permute.xlu0 %1312 }
 0xac2   :  { %v4514_v29 = vadd.f32 %v1313_v0, %v1309_v8 }
 0xac4   :  { %3612 = vtanh.f32 %v4514_v29 }
 0xac5   :  { %3614 = vtanh.f32 %v1366_v37  ;;  %v200_v37 = vadd.f32 %v4281_v33, %v4039_v18 }
 0xacc   :  { %v1374_v57 = vpop.permute.xlu1 %1373 }
 0xacd   :  { %v4518_v43 = vadd.f32 %v1374_v57, %v1370_v55 }
 0xacf   :  { %3616 = vtanh.f32 %v4518_v43 }
 0xad1   :  { %v3613_v45 = vpop.eup %3612 }
 0xad2   :  { %v1317_v46 = vmul.f32 %v3613_v45, %v1308_v44  ;;  %v3615_v10 = vpop.eup %3614 }
 0xad3   :  { %v1368_v17 = vmul.f32 0.5, %v3615_v10  ;;  %v202_v10 = vadd.f32 %v4283_v34, %v4045_v22 }
 0xad4   :  { %v1380_v47 = vpack.c.bf16 %v1317_v46, %v1317_v46 }
 0xad5   :  { %v1369_v48 = vadd.f32 0.5, %v1368_v17 }
 0xad6   :  { %1382 = vrot.lane.b32.xlu0 %v1380_v47, %s3905_s2 }
 0xadc   :  { %v3617_v20 = vpop.eup %3616 }
 0xadd   :  { %v1378_v49 = vmul.f32 %v3617_v20, %v1369_v48 }
 0xadf   :  { %v1379_v26 = vpack.c.bf16 %v1378_v49, %v1378_v49 }
 0xae1   :  { %1429 = vrot.lane.b32.xlu1 %v1379_v26, %s3905_s2 }
 0xb48   :  { %v1383_v13 = vpop.permute.xlu0 %1382 }
 0xb49   :  { %3420 = vmatmul.mubr.msk.bf16.vlgmr.msra.gmra.mxu0 %vm342_vm1, %v1383_v13 }
 0xb4a   :  { %1506 = vmatpush1.bf16.msra.mxu0 %v4437_v60  ;;  %1529 = vmatprep.mubr.bf16.mxu0 %v5187_v59 }
 0xb4b   :  { %1507 = vmatprep.subr.bf16.mxu0 %v4444_v63 }
 0xb4e   :  { %1508 = vmatpush1.bf16.msra.mxu0 %v4453_v9 }
 0xb4f   :  { %1509 = vmatprep.subr.bf16.mxu0 %v4460_v30 }
 0xb52   :  { %1510 = vmatpush1.bf16.msra.mxu0 %v4467_v38 }
 0xb53   :  { %1511 = vmatprep.subr.bf16.mxu0 %v4474_v39  ;;  %v1430_v50 = vpop.permute.xlu1 %1429 }
 0xb54   :  { %3421 = vmatmul.mubr.msk.bf16.vlgmr.msra.gmra.mxu1 %vm342_vm1, %v1430_v50 }
 0xb55   :  { %1573 = vmatpush1.bf16.msra.mxu1 %v4532_v21  ;;  %1596 = vmatprep.mubr.bf16.mxu1 %v5187_v59 }
 0xb56   :  { %1512 = vmatpush1.bf16.msra.mxu0 %v4481_v40  ;;  %1574 = vmatprep.subr.bf16.mxu1 %v4537_v51 }
 0xb57   :  { %1619 = vmatprep.subr.bf16.mxu0 %v4543_v52 }
 0xb59   :  { %3422 = vmatmul.mubr.msk.bf16.vlgmr.msra.gmra.mxu0 %vm342_vm1, %v1430_v50  ;;  %1575 = vmatpush1.bf16.msra.mxu1 %v4547_v56 }
 0xb5a   :  { %1620 = vmatpush1.bf16.msra.mxu0 %v4553_v27  ;;  %1576 = vmatprep.subr.bf16.mxu1 %v4556_v53 }
 0xb5b   :  { %1621 = vmatprep.subr.bf16.mxu0 %v4562_v62  ;;  %1643 = vmatprep.mubr.bf16.mxu0 %v5187_v59 }
 0xb5d   :  { %1577 = vmatpush1.bf16.msra.mxu1 %v4566_v23 }
 0xb5e   :  { %1622 = vmatpush1.bf16.msra.mxu0 %v4572_v16  ;;  %1578 = vmatprep.subr.bf16.mxu1 %v4575_v2 }
 0xb5f   :  { %1623 = vmatprep.subr.bf16.mxu0 %v4581_v4 }
 0xb61   :  { %1579 = vmatpush1.bf16.msra.mxu1 %v4584_v6 }
 0xb62   :  { %1624 = vmatpush1.bf16.msra.mxu0 %v4590_v11  ;;  %1682 = vmatprep.subr.bf16.mxu1 %v4492_v41 }
 0xb63   :  { %1625 = vmatprep.subr.bf16.mxu0 %v4597_v12 }
 0xb66   :  { %1626 = vmatpush1.bf16.msra.mxu0 %v4603_v25 }
 0xb67   :  { %1749 = vmatprep.subr.bf16.mxu0 %v4502_v42 }
 0xc09   :  { %v1421_v7 = vpop.f32.mrf.mxu0 }
 0xc0b   :  { %v1423_v31 = vpop.f32.mrf.mxu0 }
 0xc0d   :  { %v1425_v28 = vpop.f32.mrf.mxu0 }
 0xc0f   :  { %v1426_v1 = vpop.f32.mrf.mxu0 }
 0xc14   :  { %v1468_v3 = vpop.f32.mrf.mxu1 }
 0xc15   :  { %v1469_v58 = vadd.f32 %v1468_v3, %v1421_v7 }
 0xc16   :  { %v1470_v32 = vpop.f32.mrf.mxu1 }
 0xc17   :  { %v1475_v8 = vadd.f32 %v1469_v58, %v4162_v14  ;;  %v1471_v0 = vadd.f32 %v1470_v32, %v1423_v31 }
 0xc18   :  { %v1472_v5 = vpop.f32.mrf.mxu1 }
 0xc19   :  { %v1477_v55 = vmul.f32 0.5, %v1475_v8  ;;  %v1531_v57 = vpop.f32.mrf.mxu0  ;;  %v1476_v45 = vadd.f32 %v1471_v0, %v4167_v24 }
 0xc1a   :  { %v1532_v61 = vadd.f32 %v1531_v57, %v200_v37  ;;  %v1473_v44 = vpop.f32.mrf.mxu1 }
 0xc1b   :  { %3618 = vtanh.f32 %v1477_v55  ;;  %v1533_v46 = vpop.f32.mrf.mxu0  ;;  %v1482_v34 = vmul.f32 0.5, %v1476_v45 }
 0xc1c   :  { %v1538_v47 = vmul.f32 0.5, %v1532_v61  ;;  %v1534_v48 = vadd.f32 %v1533_v46, %v202_v10 }
 0xc1d   :  { %v1535_v17 = vpop.f32.mrf.mxu0 }
 0xc1e   :  { %3620 = vtanh.f32 %v1538_v47  ;;  %v1543_v58 = vmul.f32 0.5, %v1534_v48 }
 0xc1f   :  { %3622 = vtanh.f32 %v1476_v45  ;;  %v1536_v20 = vpop.f32.mrf.mxu0 }
 0xc20   :  { %3624 = vtanh.f32 %v1534_v48 }
 0xc21   :  { %3626 = vtanh.f32 %v1482_v34 }
 0xc22   :  { %3628 = vtanh.f32 %v1543_v58 }
 0xc28   :  { %v3619_v33 = vpop.eup %3618 }
 0xc29   :  { %v1479_v49 = vmul.f32 0.5, %v3619_v33 }
 0xc2b   :  { %v3621_v26 = vpop.eup %3620  ;;  %v1480_v13 = vadd.f32 0.5, %v1479_v49 }
 0xc2c   :  { %v3623_v50 = vpop.eup %3622  ;;  %v1540_v7 = vmul.f32 0.5, %v3621_v26 }
 0xc2d   :  { %v1487_v31 = vmul.f32 %v3623_v50, %v1480_v13  ;;  %v3625_v1 = vpop.eup %3624  ;;  %v1486_v32 = vmul.f32 %v1480_v13, %v4514_v29 }
 0xc2e   :  { %v1541_v28 = vadd.f32 0.5, %v1540_v7  ;;  %v3627_v57 = vpop.eup %3626 }
 0xc2f   :  { %1489 = vrot.lane.b32.xlu0 %v1487_v31, %s3905_s2  ;;  %v3629_v61 = vpop.eup %3628  ;;  %v1484_v44 = vmul.f32 0.5, %v3627_v57 }
 0xc30   :  { %v1548_v3 = vmul.f32 %v3625_v1, %v1541_v28  ;;  %v1547_v37 = vmul.f32 %v1541_v28, %v4518_v43  ;;  %v1545_v45 = vmul.f32 0.5, %v3629_v61 }
 0xc31   :  { %v1485_v46 = vadd.f32 0.5, %v1484_v44 }
 0xc32   :  { %1550 = vrot.lane.b32.xlu1 %v1548_v3, %s3905_s2  ;;  %v1546_v29 = vadd.f32 0.5, %v1545_v45  ;;  %v206_v45 = vadd.f32 %v4287_v15, %v4045_v22 }
 0xca1   :  { %v1490_v8 = vpop.permute.xlu0 %1489 }
 0xca2   :  { %v4616_v0 = vadd.f32 %v1490_v8, %v1486_v32 }
 0xca4   :  { %3630 = vtanh.f32 %v4616_v0  ;;  %v1551_v5 = vpop.permute.xlu1 %1550 }
 0xca5   :  { %v4620_v55 = vadd.f32 %v1551_v5, %v1547_v37  ;;  %v204_v5 = vadd.f32 %v4285_v35, %v4039_v18 }
 0xca7   :  { %3632 = vtanh.f32 %v4620_v55 }
 0xcb1   :  { %v3631_v10 = vpop.eup %3630 }
 0xcb2   :  { %v1494_v47 = vmul.f32 %v3631_v10, %v1485_v46 }
 0xcb4   :  { %v3633_v17 = vpop.eup %3632  ;;  %v1557_v48 = vpack.c.bf16 %v1494_v47, %v1494_v47 }
 0xcb5   :  { %v1555_v20 = vmul.f32 %v3633_v17, %v1546_v29 }
 0xcb6   :  { %1559 = vrot.lane.b32.xlu0 %v1557_v48, %s3905_s2 }
 0xcb7   :  { %v1556_v43 = vpack.c.bf16 %v1555_v20, %v1555_v20 }
 0xcb9   :  { %1606 = vrot.lane.b32.xlu1 %v1556_v43, %s3905_s2 }
 0xd28   :  { %v1560_v33 = vpop.permute.xlu0 %1559 }
 0xd29   :  { %3423 = vmatmul.mubr.msk.bf16.vlgmr.msra.gmra.mxu1 %vm342_vm1, %v1560_v33 }
 0xd2a   :  { %1683 = vmatpush1.bf16.msra.mxu1 %v4437_v60  ;;  %1706 = vmatprep.mubr.bf16.mxu1 %v5187_v59 }
 0xd2b   :  { %v1607_v49 = vpop.permute.xlu1 %1606  ;;  %1684 = vmatprep.subr.bf16.mxu1 %v4444_v63 }
 0xd2c   :  { %3424 = vmatmul.mubr.msk.bf16.vlgmr.msra.gmra.mxu0 %vm342_vm1, %v1607_v49 }
 0xd2d   :  { %1750 = vmatpush1.bf16.msra.mxu0 %v4532_v21  ;;  %1773 = vmatprep.mubr.bf16.mxu0 %v5187_v59 }
 0xd2e   :  { %1685 = vmatpush1.bf16.msra.mxu1 %v4453_v9  ;;  %1751 = vmatprep.subr.bf16.mxu0 %v4537_v51 }
 0xd2f   :  { %1686 = vmatprep.subr.bf16.mxu1 %v4460_v30 }
 0xd31   :  { %1752 = vmatpush1.bf16.msra.mxu0 %v4547_v56 }
 0xd32   :  { %1687 = vmatpush1.bf16.msra.mxu1 %v4467_v38  ;;  %1753 = vmatprep.subr.bf16.mxu0 %v4556_v53 }
 0xd33   :  { %1688 = vmatprep.subr.bf16.mxu1 %v4474_v39 }
 0xd35   :  { %1754 = vmatpush1.bf16.msra.mxu0 %v4566_v23 }
 0xd36   :  { %1689 = vmatpush1.bf16.msra.mxu1 %v4481_v40  ;;  %1755 = vmatprep.subr.bf16.mxu0 %v4575_v2 }
 0xd37   :  { %1796 = vmatprep.subr.bf16.mxu1 %v4543_v52 }
 0xd39   :  { %3425 = vmatmul.mubr.msk.bf16.vlgmr.msra.gmra.mxu1 %vm342_vm1, %v1607_v49  ;;  %1756 = vmatpush1.bf16.msra.mxu0 %v4584_v6 }
 0xd3a   :  { %1797 = vmatpush1.bf16.msra.mxu1 %v4553_v27  ;;  %1859 = vmatprep.subr.bf16.mxu0 %v4492_v41 }
 0xd3b   :  { %1798 = vmatprep.subr.bf16.mxu1 %v4562_v62  ;;  %1820 = vmatprep.mubr.bf16.mxu1 %v5187_v59 }
 0xd3e   :  { %1799 = vmatpush1.bf16.msra.mxu1 %v4572_v16 }
 0xd3f   :  { %1800 = vmatprep.subr.bf16.mxu1 %v4581_v4 }
 0xd42   :  { %1801 = vmatpush1.bf16.msra.mxu1 %v4590_v11 }
 0xd43   :  { %1802 = vmatprep.subr.bf16.mxu1 %v4597_v12 }
 0xd46   :  { %1803 = vmatpush1.bf16.msra.mxu1 %v4603_v25 }
 0xd47   :  { %1926 = vmatprep.subr.bf16.mxu1 %v4502_v42 }
 0xde9   :  { %v1598_v26 = vpop.f32.mrf.mxu1 }
 0xdeb   :  { %v1600_v13 = vpop.f32.mrf.mxu1 }
 0xdec   :  { %v1645_v50 = vpop.f32.mrf.mxu0 }
 0xded   :  { %v1646_v7 = vadd.f32 %v1645_v50, %v1598_v26  ;;  %v1602_v31 = vpop.f32.mrf.mxu1 }
 0xdee   :  { %v1647_v28 = vpop.f32.mrf.mxu0 }
 0xdef   :  { %v1652_v1 = vadd.f32 %v1646_v7, %v4162_v14  ;;  %v1648_v3 = vadd.f32 %v1647_v28, %v1600_v13  ;;  %v1603_v34 = vpop.f32.mrf.mxu1 }
 0xdf0   :  { %v1649_v58 = vpop.f32.mrf.mxu0 }
 0xdf1   :  { %v1654_v32 = vmul.f32 0.5, %v1652_v1  ;;  %v1653_v37 = vadd.f32 %v1648_v3, %v4167_v24 }
 0xdf2   :  { %v1650_v8 = vpop.f32.mrf.mxu0 }
 0xdf3   :  { %3634 = vtanh.f32 %v1654_v32  ;;  %v1659_v15 = vmul.f32 0.5, %v1653_v37 }
 0xdf4   :  { %3636 = vtanh.f32 %v1653_v37 }
 0xdf9   :  { %v1708_v57 = vpop.f32.mrf.mxu1 }
 0xdfa   :  { %v1709_v61 = vadd.f32 %v1708_v57, %v204_v5 }
 0xdfb   :  { %v1710_v44 = vpop.f32.mrf.mxu1 }
 0xdfc   :  { %v1715_v46 = vmul.f32 0.5, %v1709_v61  ;;  %v1711_v47 = vadd.f32 %v1710_v44, %v206_v45 }
 0xdfd   :  { %v1712_v10 = vpop.f32.mrf.mxu1 }
 0xdfe   :  { %3638 = vtanh.f32 %v1715_v46  ;;  %v1720_v1 = vmul.f32 0.5, %v1711_v47 }
 0xdff   :  { %v1713_v29 = vpop.f32.mrf.mxu1  ;;  %3640 = vtanh.f32 %v1711_v47 }
 0xe00   :  { %v3635_v17 = vpop.eup %3634  ;;  %3642 = vtanh.f32 %v1659_v15 }
 0xe01   :  { %v1656_v48 = vmul.f32 0.5, %v3635_v17  ;;  %v3637_v43 = vpop.eup %3636 }
 0xe03   :  { %v1657_v20 = vadd.f32 0.5, %v1656_v48 }
 0xe05   :  { %v1664_v33 = vmul.f32 %v3637_v43, %v1657_v20  ;;  %v1663_v7 = vmul.f32 %v1657_v20, %v4616_v0 }
 0xe07   :  { %1666 = vrot.lane.b32.xlu0 %v1664_v33, %s3905_s2 }
 0xe0b   :  { %v3639_v35 = vpop.eup %3638 }
 0xe0c   :  { %v1717_v49 = vmul.f32 0.5, %v3639_v35  ;;  %v3641_v13 = vpop.eup %3640 }
 0xe0d   :  { %v3643_v3 = vpop.eup %3642 }
 0xe0e   :  { %v1718_v26 = vadd.f32 0.5, %v1717_v49  ;;  %v1661_v32 = vmul.f32 0.5, %v3643_v3 }
 0xe10   :  { %v1725_v50 = vmul.f32 %v3641_v13, %v1718_v26  ;;  %v1724_v34 = vmul.f32 %v1718_v26, %v4620_v55  ;;  %v1662_v37 = vadd.f32 0.5, %v1661_v32  ;;  %v212_v32 = vadd.f32 %v4291_v36, %v4045_v22 }
 0xe12   :  { %1727 = vrot.lane.b32.xlu1 %v1725_v50, %s3905_s2  ;;  %v210_v50 = vadd.f32 %v4289_v19, %v4039_v18 }
 0xe79   :  { %v1667_v31 = vpop.permute.xlu0 %1666 }
 0xe7a   :  { %v4664_v28 = vadd.f32 %v1667_v31, %v1663_v7 }
 0xe7c   :  { %3644 = vtanh.f32 %v4664_v28 }
 0xe7d   :  { %3646 = vtanh.f32 %v1720_v1 }
 0xe84   :  { %v1728_v58 = vpop.permute.xlu1 %1727 }
 0xe85   :  { %v4668_v8 = vadd.f32 %v1728_v58, %v1724_v34 }
 0xe87   :  { %3648 = vtanh.f32 %v4668_v8 }
 0xe89   :  { %v3645_v5 = vpop.eup %3644 }
 0xe8a   :  { %v1671_v57 = vmul.f32 %v3645_v5, %v1662_v37  ;;  %v3647_v0 = vpop.eup %3646 }
 0xe8b   :  { %v1722_v44 = vmul.f32 0.5, %v3647_v0 }
 0xe8c   :  { %v1734_v61 = vpack.c.bf16 %v1671_v57, %v1671_v57 }
 0xe8d   :  { %v1723_v45 = vadd.f32 0.5, %v1722_v44 }
 0xe8e   :  { %1736 = vrot.lane.b32.xlu0 %v1734_v61, %s3905_s2 }
 0xe94   :  { %v3649_v46 = vpop.eup %3648 }
 0xe95   :  { %v1732_v10 = vmul.f32 %v3649_v46, %v1723_v45 }
 0xe97   :  { %v1733_v47 = vpack.c.bf16 %v1732_v10, %v1732_v10 }
 0xe99   :  { %1783 = vrot.lane.b32.xlu1 %v1733_v47, %s3905_s2 }
 0xf00   :  { %v1737_v55 = vpop.permute.xlu0 %1736 }
 0xf01   :  { %3426 = vmatmul.mubr.msk.bf16.vlgmr.msra.gmra.mxu0 %vm342_vm1, %v1737_v55 }
 0xf02   :  { %1860 = vmatpush1.bf16.msra.mxu0 %v4437_v60  ;;  %1883 = vmatprep.mubr.bf16.mxu0 %v5187_v59 }
 0xf03   :  { %1861 = vmatprep.subr.bf16.mxu0 %v4444_v63 }
 0xf06   :  { %1862 = vmatpush1.bf16.msra.mxu0 %v4453_v9 }
 0xf07   :  { %1863 = vmatprep.subr.bf16.mxu0 %v4460_v30 }
 0xf0a   :  { %1864 = vmatpush1.bf16.msra.mxu0 %v4467_v38 }
 0xf0b   :  { %1865 = vmatprep.subr.bf16.mxu0 %v4474_v39  ;;  %v1784_v29 = vpop.permute.xlu1 %1783 }
 0xf0c   :  { %3427 = vmatmul.mubr.msk.bf16.vlgmr.msra.gmra.mxu1 %vm342_vm1, %v1784_v29 }
 0xf0d   :  { %1927 = vmatpush1.bf16.msra.mxu1 %v4532_v21  ;;  %1950 = vmatprep.mubr.bf16.mxu1 %v5187_v59 }
 0xf0e   :  { %1866 = vmatpush1.bf16.msra.mxu0 %v4481_v40  ;;  %1928 = vmatprep.subr.bf16.mxu1 %v4537_v51 }
 0xf0f   :  { %1973 = vmatprep.subr.bf16.mxu0 %v4543_v52 }
 0xf11   :  { %3428 = vmatmul.mubr.msk.bf16.vlgmr.msra.gmra.mxu0 %vm342_vm1, %v1784_v29  ;;  %1929 = vmatpush1.bf16.msra.mxu1 %v4547_v56 }
 0xf12   :  { %1974 = vmatpush1.bf16.msra.mxu0 %v4553_v27  ;;  %1930 = vmatprep.subr.bf16.mxu1 %v4556_v53 }
 0xf13   :  { %1975 = vmatprep.subr.bf16.mxu0 %v4562_v62  ;;  %1997 = vmatprep.mubr.bf16.mxu0 %v5187_v59 }
 0xf15   :  { %1931 = vmatpush1.bf16.msra.mxu1 %v4566_v23 }
 0xf16   :  { %1976 = vmatpush1.bf16.msra.mxu0 %v4572_v16  ;;  %1932 = vmatprep.subr.bf16.mxu1 %v4575_v2 }
 0xf17   :  { %1977 = vmatprep.subr.bf16.mxu0 %v4581_v4 }
 0xf19   :  { %1933 = vmatpush1.bf16.msra.mxu1 %v4584_v6 }
 0xf1a   :  { %1978 = vmatpush1.bf16.msra.mxu0 %v4590_v11  ;;  %2036 = vmatprep.subr.bf16.mxu1 %v4492_v41 }
 0xf1b   :  { %1979 = vmatprep.subr.bf16.mxu0 %v4597_v12 }
 0xf1e   :  { %1980 = vmatpush1.bf16.msra.mxu0 %v4603_v25 }
 0xf1f   :  { %2103 = vmatprep.subr.bf16.mxu0 %v4502_v42 }
 0xfc1   :  { %v1775_v17 = vpop.f32.mrf.mxu0 }
 0xfc3   :  { %v1777_v48 = vpop.f32.mrf.mxu0 }
 0xfc5   :  { %v1779_v20 = vpop.f32.mrf.mxu0 }
 0xfc7   :  { %v1780_v43 = vpop.f32.mrf.mxu0 }
 0xfcc   :  { %v1822_v33 = vpop.f32.mrf.mxu1 }
 0xfcd   :  { %v1823_v35 = vadd.f32 %v1822_v33, %v1775_v17 }
 0xfce   :  { %v1824_v49 = vpop.f32.mrf.mxu1 }
 0xfcf   :  { %v1829_v26 = vadd.f32 %v1823_v35, %v4162_v14  ;;  %v1825_v13 = vadd.f32 %v1824_v49, %v1777_v48 }
 0xfd0   :  { %v1826_v15 = vpop.f32.mrf.mxu1 }
 0xfd1   :  { %v1831_v7 = vmul.f32 0.5, %v1829_v26  ;;  %v1885_v31 = vpop.f32.mrf.mxu0  ;;  %v1830_v34 = vadd.f32 %v1825_v13, %v4167_v24 }
 0xfd2   :  { %v1886_v1 = vadd.f32 %v1885_v31, %v210_v50  ;;  %v1827_v3 = vpop.f32.mrf.mxu1 }
 0xfd3   :  { %3650 = vtanh.f32 %v1831_v7  ;;  %v1887_v58 = vpop.f32.mrf.mxu0  ;;  %v1836_v36 = vmul.f32 0.5, %v1830_v34 }
 0xfd4   :  { %v1892_v37 = vmul.f32 0.5, %v1886_v1  ;;  %v1888_v57 = vadd.f32 %v1887_v58, %v212_v32 }
 0xfd5   :  { %v1889_v5 = vpop.f32.mrf.mxu0 }
 0xfd6   :  { %3652 = vtanh.f32 %v1892_v37  ;;  %v1897_v48 = vmul.f32 0.5, %v1888_v57 }
 0xfd7   :  { %3654 = vtanh.f32 %v1830_v34  ;;  %v1890_v0 = vpop.f32.mrf.mxu0 }
 0xfd8   :  { %3656 = vtanh.f32 %v1888_v57 }
 0xfd9   :  { %3658 = vtanh.f32 %v1836_v36 }
 0xfda   :  { %3660 = vtanh.f32 %v1897_v48  ;;  %v214_v48 = vadd.f32 %v4293_v54, %v4039_v18 }
 0xfe0   :  { %v3651_v19 = vpop.eup %3650 }
 0xfe1   :  { %v1833_v61 = vmul.f32 0.5, %v3651_v19 }
 0xfe3   :  { %v3653_v44 = vpop.eup %3652  ;;  %v1834_v45 = vadd.f32 0.5, %v1833_v61 }
 0xfe4   :  { %v3655_v46 = vpop.eup %3654  ;;  %v1894_v10 = vmul.f32 0.5, %v3653_v44 }
 0xfe5   :  { %v1841_v47 = vmul.f32 %v3655_v46, %v1834_v45  ;;  %v3657_v29 = vpop.eup %3656  ;;  %v1840_v20 = vmul.f32 %v1834_v45, %v4664_v28 }
 0xfe6   :  { %v1895_v55 = vadd.f32 0.5, %v1894_v10  ;;  %v3659_v13 = vpop.eup %3658 }
 0xfe7   :  { %1843 = vrot.lane.b32.xlu0 %v1841_v47, %s3905_s2  ;;  %v3661_v50 = vpop.eup %3660  ;;  %v1838_v15 = vmul.f32 0.5, %v3659_v13 }
 0xfe8   :  { %v1902_v17 = vmul.f32 %v3657_v29, %v1895_v55  ;;  %v1901_v35 = vmul.f32 %v1895_v55, %v4668_v8  ;;  %v1899_v7 = vmul.f32 0.5, %v3661_v50 }
 0xfe9   :  { %v1839_v31 = vadd.f32 0.5, %v1838_v15 }
 0xfea   :  { %1904 = vrot.lane.b32.xlu1 %v1902_v17, %s3905_s2  ;;  %v1900_v28 = vadd.f32 0.5, %v1899_v7 }
0x1059   :  { %v1844_v43 = vpop.permute.xlu0 %1843 }
0x105a   :  { %v4712_v33 = vadd.f32 %v1844_v43, %v1840_v20 }
0x105c   :  { %3662 = vtanh.f32 %v4712_v33  ;;  %v1905_v49 = vpop.permute.xlu1 %1904 }
0x105d   :  { %v4716_v26 = vadd.f32 %v1905_v49, %v1901_v35  ;;  %v5188_v49 = vld [vmem:[#allocation12_spill] sm:$0xff] }
0x105e   :  { %v216_v13 = vadd.f32 %v5188_v49, %v4045_v22 }
0x105f   :  { %3664 = vtanh.f32 %v4716_v26 }
0x1069   :  { %v3663_v1 = vpop.eup %3662 }
0x106a   :  { %v1848_v3 = vmul.f32 %v3663_v1, %v1839_v31 }
0x106c   :  { %v3665_v34 = vpop.eup %3664  ;;  %v1911_v58 = vpack.c.bf16 %v1848_v3, %v1848_v3 }
0x106d   :  { %v1909_v32 = vmul.f32 %v3665_v34, %v1900_v28 }
0x106e   :  { %1913 = vrot.lane.b32.xlu0 %v1911_v58, %s3905_s2 }
0x106f   :  { %v1910_v8 = vpack.c.bf16 %v1909_v32, %v1909_v32 }
0x1071   :  { %1960 = vrot.lane.b32.xlu1 %v1910_v8, %s3905_s2 }
0x10e0   :  { %v1914_v37 = vpop.permute.xlu0 %1913 }
0x10e1   :  { %3429 = vmatmul.mubr.msk.bf16.vlgmr.msra.gmra.mxu1 %vm342_vm1, %v1914_v37 }
0x10e2   :  { %2037 = vmatpush1.bf16.msra.mxu1 %v4437_v60  ;;  %2060 = vmatprep.mubr.bf16.mxu1 %v5187_v59 }
0x10e3   :  { %v1961_v5 = vpop.permute.xlu1 %1960  ;;  %2038 = vmatprep.subr.bf16.mxu1 %v4444_v63 }
0x10e4   :  { %3430 = vmatmul.mubr.msk.bf16.vlgmr.msra.gmra.mxu0 %vm342_vm1, %v1961_v5 }
0x10e5   :  { %2104 = vmatpush1.bf16.msra.mxu0 %v4532_v21  ;;  %2127 = vmatprep.mubr.bf16.mxu0 %v5187_v59 }
0x10e6   :  { %2039 = vmatpush1.bf16.msra.mxu1 %v4453_v9  ;;  %2105 = vmatprep.subr.bf16.mxu0 %v4537_v51 }
0x10e7   :  { %2040 = vmatprep.subr.bf16.mxu1 %v4460_v30 }
0x10e9   :  { %2106 = vmatpush1.bf16.msra.mxu0 %v4547_v56 }
0x10ea   :  { %2041 = vmatpush1.bf16.msra.mxu1 %v4467_v38  ;;  %2107 = vmatprep.subr.bf16.mxu0 %v4556_v53 }
0x10eb   :  { %2042 = vmatprep.subr.bf16.mxu1 %v4474_v39 }
0x10ed   :  { %2108 = vmatpush1.bf16.msra.mxu0 %v4566_v23 }
0x10ee   :  { %2043 = vmatpush1.bf16.msra.mxu1 %v4481_v40  ;;  %2109 = vmatprep.subr.bf16.mxu0 %v4575_v2 }
0x10ef   :  { %2150 = vmatprep.subr.bf16.mxu1 %v4543_v52 }
0x10f1   :  { %3431 = vmatmul.mubr.msk.bf16.vlgmr.msra.gmra.mxu1 %vm342_vm1, %v1961_v5  ;;  %2110 = vmatpush1.bf16.msra.mxu0 %v4584_v6 }
0x10f2   :  { %2151 = vmatpush1.bf16.msra.mxu1 %v4553_v27  ;;  %2213 = vmatprep.subr.bf16.mxu0 %v4492_v41 }
0x10f3   :  { %2152 = vmatprep.subr.bf16.mxu1 %v4562_v62  ;;  %2174 = vmatprep.mubr.bf16.mxu1 %v5187_v59 }
0x10f6   :  { %2153 = vmatpush1.bf16.msra.mxu1 %v4572_v16 }
0x10f7   :  { %2154 = vmatprep.subr.bf16.mxu1 %v4581_v4 }
0x10fa   :  { %2155 = vmatpush1.bf16.msra.mxu1 %v4590_v11 }
0x10fb   :  { %2156 = vmatprep.subr.bf16.mxu1 %v4597_v12 }
0x10fe   :  { %2157 = vmatpush1.bf16.msra.mxu1 %v4603_v25 }
0x10ff   :  { %2280 = vmatprep.subr.bf16.mxu1 %v4502_v42 }
0x11a1   :  { %v1952_v57 = vpop.f32.mrf.mxu1 }
0x11a3   :  { %v1954_v0 = vpop.f32.mrf.mxu1 }
0x11a4   :  { %v1999_v19 = vpop.f32.mrf.mxu0 }
0x11a5   :  { %v2000_v61 = vadd.f32 %v1999_v19, %v1952_v57  ;;  %v1956_v44 = vpop.f32.mrf.mxu1 }
0x11a6   :  { %v2001_v45 = vpop.f32.mrf.mxu0 }
0x11a7   :  { %v2006_v46 = vadd.f32 %v2000_v61, %v4162_v14  ;;  %v2002_v10 = vadd.f32 %v2001_v45, %v1954_v0  ;;  %v1957_v47 = vpop.f32.mrf.mxu1 }
0x11a8   :  { %v2003_v55 = vpop.f32.mrf.mxu0 }
0x11a9   :  { %v2008_v29 = vmul.f32 0.5, %v2006_v46  ;;  %v2007_v36 = vadd.f32 %v2002_v10, %v4167_v24 }
0x11aa   :  { %v2004_v17 = vpop.f32.mrf.mxu0 }
0x11ab   :  { %3666 = vtanh.f32 %v2008_v29  ;;  %v2013_v57 = vmul.f32 0.5, %v2007_v36 }
0x11ac   :  { %3668 = vtanh.f32 %v2007_v36 }
0x11b1   :  { %v2062_v20 = vpop.f32.mrf.mxu1 }
0x11b2   :  { %v2063_v43 = vadd.f32 %v2062_v20, %v214_v48 }
0x11b3   :  { %v2064_v35 = vpop.f32.mrf.mxu1 }
0x11b4   :  { %v2069_v50 = vmul.f32 0.5, %v2063_v43  ;;  %v2065_v7 = vadd.f32 %v2064_v35, %v216_v13 }
0x11b5   :  { %v2066_v15 = vpop.f32.mrf.mxu1 }
0x11b6   :  { %3670 = vtanh.f32 %v2069_v50  ;;  %v2074_v44 = vmul.f32 0.5, %v2065_v7 }
0x11b7   :  { %v2067_v31 = vpop.f32.mrf.mxu1  ;;  %3672 = vtanh.f32 %v2065_v7 }
0x11b8   :  { %v3667_v1 = vpop.eup %3666  ;;  %3674 = vtanh.f32 %v2013_v57  ;;  %v5189_v31 = vld [vmem:[#allocation13_spill] sm:$0xff] }
0x11b9   :  { %v2010_v3 = vmul.f32 0.5, %v3667_v1  ;;  %v3669_v34 = vpop.eup %3668  ;;  %v220_v1 = vadd.f32 %v5189_v31, %v4039_v18 }
0x11bb   :  { %v2011_v28 = vadd.f32 0.5, %v2010_v3 }
0x11bd   :  { %v2018_v58 = vmul.f32 %v3669_v34, %v2011_v28  ;;  %v2017_v0 = vmul.f32 %v2011_v28, %v4712_v33 }
0x11bf   :  { %2020 = vrot.lane.b32.xlu0 %v2018_v58, %s3905_s2 }
0x11c3   :  { %v3671_v54 = vpop.eup %3670 }
0x11c4   :  { %v2071_v32 = vmul.f32 0.5, %v3671_v54  ;;  %v3673_v37 = vpop.eup %3672 }
0x11c5   :  { %v3675_v45 = vpop.eup %3674 }
0x11c6   :  { %v2072_v8 = vadd.f32 0.5, %v2071_v32  ;;  %v2015_v47 = vmul.f32 0.5, %v3675_v45  ;;  %v5190_v32 = vld [vmem:[#allocation14_spill] sm:$0xff] }
0x11c8   :  { %v2079_v5 = vmul.f32 %v3673_v37, %v2072_v8  ;;  %v2078_v46 = vmul.f32 %v2072_v8, %v4716_v26  ;;  %v2016_v29 = vadd.f32 0.5, %v2015_v47  ;;  %v222_v8 = vadd.f32 %v5190_v32, %v4045_v22 }
0x11ca   :  { %2081 = vrot.lane.b32.xlu1 %v2079_v5, %s3905_s2 }
0x1231   :  { %v2021_v19 = vpop.permute.xlu0 %2020 }
0x1232   :  { %v4760_v61 = vadd.f32 %v2021_v19, %v2017_v0 }
0x1234   :  { %3676 = vtanh.f32 %v4760_v61 }
0x1235   :  { %3678 = vtanh.f32 %v2074_v44 }
0x123c   :  { %v2082_v10 = vpop.permute.xlu1 %2081 }
0x123d   :  { %v4764_v55 = vadd.f32 %v2082_v10, %v2078_v46 }
0x123f   :  { %3680 = vtanh.f32 %v4764_v55 }
0x1241   :  { %v3677_v17 = vpop.eup %3676 }
0x1242   :  { %v2025_v36 = vmul.f32 %v3677_v17, %v2016_v29  ;;  %v3679_v33 = vpop.eup %3678 }
0x1243   :  { %v2076_v20 = vmul.f32 0.5, %v3679_v33 }
0x1244   :  { %v2088_v48 = vpack.c.bf16 %v2025_v36, %v2025_v36 }
0x1245   :  { %v2077_v43 = vadd.f32 0.5, %v2076_v20 }
0x1246   :  { %2090 = vrot.lane.b32.xlu0 %v2088_v48, %s3905_s2 }
0x124c   :  { %v3681_v35 = vpop.eup %3680 }
0x124d   :  { %v2086_v49 = vmul.f32 %v3681_v35, %v2077_v43 }
0x124f   :  { %v2087_v13 = vpack.c.bf16 %v2086_v49, %v2086_v49 }
0x1251   :  { %2137 = vrot.lane.b32.xlu1 %v2087_v13, %s3905_s2 }
0x12b8   :  { %v2091_v26 = vpop.permute.xlu0 %2090 }
0x12b9   :  { %3432 = vmatmul.mubr.msk.bf16.vlgmr.msra.gmra.mxu0 %vm342_vm1, %v2091_v26 }
0x12ba   :  { %2214 = vmatpush1.bf16.msra.mxu0 %v4437_v60  ;;  %2237 = vmatprep.mubr.bf16.mxu0 %v5187_v59 }
0x12bb   :  { %2215 = vmatprep.subr.bf16.mxu0 %v4444_v63 }
0x12be   :  { %2216 = vmatpush1.bf16.msra.mxu0 %v4453_v9 }
0x12bf   :  { %2217 = vmatprep.subr.bf16.mxu0 %v4460_v30 }
0x12c2   :  { %2218 = vmatpush1.bf16.msra.mxu0 %v4467_v38 }
0x12c3   :  { %2219 = vmatprep.subr.bf16.mxu0 %v4474_v39  ;;  %v2138_v50 = vpop.permute.xlu1 %2137 }
0x12c4   :  { %3433 = vmatmul.mubr.msk.bf16.vlgmr.msra.gmra.mxu1 %vm342_vm1, %v2138_v50 }
0x12c5   :  { %2281 = vmatpush1.bf16.msra.mxu1 %v4532_v21  ;;  %2304 = vmatprep.mubr.bf16.mxu1 %v5187_v59 }
0x12c6   :  { %2220 = vmatpush1.bf16.msra.mxu0 %v4481_v40  ;;  %2282 = vmatprep.subr.bf16.mxu1 %v4537_v51 }
0x12c7   :  { %2327 = vmatprep.subr.bf16.mxu0 %v4543_v52 }
0x12c9   :  { %3434 = vmatmul.mubr.msk.bf16.vlgmr.msra.gmra.mxu0 %vm342_vm1, %v2138_v50  ;;  %2283 = vmatpush1.bf16.msra.mxu1 %v4547_v56 }
0x12ca   :  { %2328 = vmatpush1.bf16.msra.mxu0 %v4553_v27  ;;  %2284 = vmatprep.subr.bf16.mxu1 %v4556_v53 }
0x12cb   :  { %2329 = vmatprep.subr.bf16.mxu0 %v4562_v62  ;;  %2351 = vmatprep.mubr.bf16.mxu0 %v5187_v59 }
0x12cd   :  { %2285 = vmatpush1.bf16.msra.mxu1 %v4566_v23 }
0x12ce   :  { %2330 = vmatpush1.bf16.msra.mxu0 %v4572_v16  ;;  %2286 = vmatprep.subr.bf16.mxu1 %v4575_v2 }
0x12cf   :  { %2331 = vmatprep.subr.bf16.mxu0 %v4581_v4 }
0x12d1   :  { %2287 = vmatpush1.bf16.msra.mxu1 %v4584_v6 }
0x12d2   :  { %2332 = vmatpush1.bf16.msra.mxu0 %v4590_v11  ;;  %2390 = vmatprep.subr.bf16.mxu1 %v4492_v41 }
0x12d3   :  { %2333 = vmatprep.subr.bf16.mxu0 %v4597_v12 }
0x12d6   :  { %2334 = vmatpush1.bf16.msra.mxu0 %v4603_v25 }
0x12d7   :  { %2457 = vmatprep.subr.bf16.mxu0 %v4502_v42 }
0x1379   :  { %v2129_v60 = vpop.f32.mrf.mxu0 }
0x137b   :  { %v2131_v63 = vpop.f32.mrf.mxu0 }
0x137d   :  { %v2133_v9 = vpop.f32.mrf.mxu0 }
0x137f   :  { %v2134_v30 = vpop.f32.mrf.mxu0 }
0x1384   :  { %v2176_v38 = vpop.f32.mrf.mxu1 }
0x1385   :  { %v2177_v39 = vadd.f32 %v2176_v38, %v2129_v60 }
0x1386   :  { %v2178_v40 = vpop.f32.mrf.mxu1 }
0x1387   :  { %v2183_v15 = vadd.f32 %v2177_v39, %v4162_v14  ;;  %v2179_v7 = vadd.f32 %v2178_v40, %v2131_v63 }
0x1388   :  { %v2180_v41 = vpop.f32.mrf.mxu1 }
0x1389   :  { %v2185_v3 = vmul.f32 0.5, %v2183_v15  ;;  %v2239_v28 = vpop.f32.mrf.mxu0  ;;  %v2184_v42 = vadd.f32 %v2179_v7, %v4167_v24  ;;  %v4821_v41 = vld [vmem:[%s5165_s3 + $0x30] ss:$8 sps:$4 sm:$0xff]  }
0x138a   :  { %v2240_v34 = vadd.f32 %v2239_v28, %v220_v1  ;;  %v2181_v58 = vpop.f32.mrf.mxu1  ;;  %v4828_v28 = vld [vmem:[%s5165_s3 + $0x24] ss:$8 sps:$4 sm:$0xff]  }
0x138b   :  { %3682 = vtanh.f32 %v2185_v3  ;;  %v2241_v54 = vpop.f32.mrf.mxu0  ;;  %v2190_v48 = vmul.f32 0.5, %v2184_v42  ;;  %v4844_v58 = vld [vmem:[%s5165_s3 + $0x14] ss:$8 sps:$4 sm:$0xff]  }
0x138c   :  { %v2246_v37 = vmul.f32 0.5, %v2240_v34  ;;  %v2242_v57 = vadd.f32 %v2241_v54, %v222_v8  ;;  %v4837_v34 = vld [vmem:[%s5165_s3 + $0x20] ss:$8 sps:$4 sm:$0xff]  }
0x138d   :  { %v2243_v5 = vpop.f32.mrf.mxu0 }
0x138e   :  { %3684 = vtanh.f32 %v2246_v37  ;;  %v2251_v20 = vmul.f32 0.5, %v2242_v57 }
0x138f   :  { %3686 = vtanh.f32 %v2184_v42  ;;  %v2244_v0 = vpop.f32.mrf.mxu0 }
0x1390   :  { %3688 = vtanh.f32 %v2242_v57 }
0x1391   :  { %3690 = vtanh.f32 %v2190_v48 }
0x1392   :  { %3692 = vtanh.f32 %v2251_v20 }
0x1398   :  { %v3683_v19 = vpop.eup %3682 }
0x1399   :  { %v2187_v44 = vmul.f32 0.5, %v3683_v19  ;;  %v5192_v19 = vld [vmem:[#allocation16_spill] sm:$0xff] }
0x139b   :  { %v3685_v45 = vpop.eup %3684  ;;  %v2188_v46 = vadd.f32 0.5, %v2187_v44  ;;  %v226_v44 = vadd.f32 %v5192_v19, %v4045_v22  ;;  %v4974_v19 = vld [vmem:[%s5166_s4 + $0x10] ss:$8 sps:$4 sm:$0xff]  }
0x139c   :  { %v3687_v10 = vpop.eup %3686  ;;  %v2248_v47 = vmul.f32 0.5, %v3685_v45 }
0x139d   :  { %v2195_v29 = vmul.f32 %v3687_v10, %v2188_v46  ;;  %v3689_v36 = vpop.eup %3688  ;;  %v2194_v43 = vmul.f32 %v2188_v46, %v4760_v61 }
0x139e   :  { %v2249_v17 = vadd.f32 0.5, %v2248_v47  ;;  %v3691_v60 = vpop.eup %3690 }
0x139f   :  { %2197 = vrot.lane.b32.xlu0 %v2195_v29, %s3905_s2  ;;  %v3693_v63 = vpop.eup %3692  ;;  %v2192_v9 = vmul.f32 0.5, %v3691_v60 }
0x13a0   :  { %v2256_v33 = vmul.f32 %v3689_v36, %v2249_v17  ;;  %v2255_v13 = vmul.f32 %v2249_v17, %v4764_v55  ;;  %v2253_v30 = vmul.f32 0.5, %v3693_v63 }
0x13a1   :  { %v2193_v38 = vadd.f32 0.5, %v2192_v9 }
0x13a2   :  { %2258 = vrot.lane.b32.xlu1 %v2256_v33, %s3905_s2  ;;  %v2254_v61 = vadd.f32 0.5, %v2253_v30 }
0x1411   :  { %v2198_v35 = vpop.permute.xlu0 %2197 }
0x1412   :  { %v4808_v49 = vadd.f32 %v2198_v35, %v2194_v43 }
0x1414   :  { %3694 = vtanh.f32 %v4808_v49  ;;  %v2259_v26 = vpop.permute.xlu1 %2258 }
0x1415   :  { %v4812_v50 = vadd.f32 %v2259_v26, %v2255_v13 }
0x1417   :  { %3696 = vtanh.f32 %v4812_v50 }
0x1421   :  { %v3695_v39 = vpop.eup %3694 }
0x1422   :  { %v2202_v40 = vmul.f32 %v3695_v39, %v2193_v38 }
0x1424   :  { %v3697_v15 = vpop.eup %3696  ;;  %v2265_v7 = vpack.c.bf16 %v2202_v40, %v2202_v40 }
0x1425   :  { %v2263_v31 = vmul.f32 %v3697_v15, %v2254_v61 }
0x1426   :  { %2267 = vrot.lane.b32.xlu0 %v2265_v7, %s3905_s2 }
0x1427   :  { %v2264_v55 = vpack.c.bf16 %v2263_v31, %v2263_v31 }
0x1429   :  { %2314 = vrot.lane.b32.xlu1 %v2264_v55, %s3905_s2 }
0x1498   :  { %v2268_v1 = vpop.permute.xlu0 %2267 }
0x1499   :  { %3435 = vmatmul.mubr.msk.bf16.vlgmr.msra.gmra.mxu1 %vm342_vm1, %v2268_v1 }
0x149a   :  { %2391 = vmatpush1.bf16.msra.mxu1 %v4821_v41  ;;  %2414 = vmatprep.mubr.bf16.mxu1 %v5187_v59 }
0x149b   :  { %v2315_v3 = vpop.permute.xlu1 %2314  ;;  %2392 = vmatprep.subr.bf16.mxu1 %v4828_v28 }
0x149c   :  { %3436 = vmatmul.mubr.msk.bf16.vlgmr.msra.gmra.mxu0 %vm342_vm1, %v2315_v3 }
0x149d   :  { %2458 = vmatpush1.bf16.msra.mxu0 %v4532_v21  ;;  %2481 = vmatprep.mubr.bf16.mxu0 %v5187_v59  ;;  %v4851_v21 = vld [vmem:[%s5165_s3 + $0x10] ss:$8 sps:$4 sm:$0xff]  }
0x149e   :  { %2393 = vmatpush1.bf16.msra.mxu1 %v4837_v34  ;;  %2459 = vmatprep.subr.bf16.mxu0 %v4537_v51  ;;  %v4858_v51 = vld [vmem:[%s5165_s3 + $0x4] ss:$8 sps:$4 sm:$0xff]  }
0x149f   :  { %2394 = vmatprep.subr.bf16.mxu1 %v4844_v58 }
0x14a1   :  { %2460 = vmatpush1.bf16.msra.mxu0 %v4547_v56  ;;  %v4865_v56 = vld [vmem:[%s5165_s3] ss:$8 sps:$4 sm:$0xff]  }
0x14a2   :  { %2395 = vmatpush1.bf16.msra.mxu1 %v4851_v21  ;;  %2461 = vmatprep.subr.bf16.mxu0 %v4556_v53  ;;  %v4876_v53 = vld [vmem:[%s5165_s3 + $0x34] ss:$8 sps:$4 sm:$0xff]  }
0x14a3   :  { %2396 = vmatprep.subr.bf16.mxu1 %v4858_v51 }
0x14a5   :  { %2462 = vmatpush1.bf16.msra.mxu0 %v4566_v23 }
0x14a6   :  { %2397 = vmatpush1.bf16.msra.mxu1 %v4865_v56  ;;  %2463 = vmatprep.subr.bf16.mxu0 %v4575_v2 }
0x14a7   :  { %2504 = vmatprep.subr.bf16.mxu1 %v4543_v52  ;;  %v4886_v52 = vld [vmem:[#allocation3 + $0x34] ss:$8 sps:$4 sm:$0xff]  }
0x14a9   :  { %3437 = vmatmul.mubr.msk.bf16.vlgmr.msra.gmra.mxu1 %vm342_vm1, %v2315_v3  ;;  %2464 = vmatpush1.bf16.msra.mxu0 %v4584_v6 }
0x14aa   :  { %2505 = vmatpush1.bf16.msra.mxu1 %v4553_v27  ;;  %2567 = vmatprep.subr.bf16.mxu0 %v4876_v53 }
0x14ab   :  { %2506 = vmatprep.subr.bf16.mxu1 %v4562_v62  ;;  %2528 = vmatprep.mubr.bf16.mxu1 %v5187_v59 }
0x14ae   :  { %2507 = vmatpush1.bf16.msra.mxu1 %v4572_v16 }
0x14af   :  { %2508 = vmatprep.subr.bf16.mxu1 %v4581_v4 }
0x14b2   :  { %2509 = vmatpush1.bf16.msra.mxu1 %v4590_v11 }
0x14b3   :  { %2510 = vmatprep.subr.bf16.mxu1 %v4597_v12 }
0x14b6   :  { %2511 = vmatpush1.bf16.msra.mxu1 %v4603_v25  ;;  %v5191_v25 = vld [vmem:[#allocation15_spill] sm:$0xff] }
0x14b7   :  { %2634 = vmatprep.subr.bf16.mxu1 %v4886_v52  ;;  %v224_v37 = vadd.f32 %v5191_v25, %v4039_v18  ;;  %v4950_v25 = vld [vmem:[#allocation3 + $0x10] ss:$8 sps:$4 sm:$0xff]  }
0x1559   :  { %v2306_v27 = vpop.f32.mrf.mxu1 }
0x155b   :  { %v2308_v23 = vpop.f32.mrf.mxu1 }
0x155c   :  { %v2353_v2 = vpop.f32.mrf.mxu0 }
0x155d   :  { %v2354_v62 = vadd.f32 %v2353_v2, %v2306_v27  ;;  %v2310_v6 = vpop.f32.mrf.mxu1 }
0x155e   :  { %v2355_v42 = vpop.f32.mrf.mxu0 }
0x155f   :  { %v2360_v16 = vadd.f32 %v2354_v62, %v4162_v14  ;;  %v2356_v54 = vadd.f32 %v2355_v42, %v2308_v23  ;;  %v2311_v4 = vpop.f32.mrf.mxu1 }
0x1560   :  { %v2357_v32 = vpop.f32.mrf.mxu0  ;;  %v4927_v4 = vld [vmem:[%s5166_s4 + $0x34] ss:$8 sps:$4 sm:$0xff]  }
0x1561   :  { %v2362_v11 = vmul.f32 0.5, %v2360_v16  ;;  %v2361_v12 = vadd.f32 %v2356_v54, %v4167_v24  ;;  %v4916_v16 = vld [vmem:[#allocation3 + $0x30] ss:$8 sps:$4 sm:$0xff]   ;;  %v4921_v54 = vld [vmem:[#allocation3 + $0x24] ss:$8 sps:$4 sm:$0xff]  }
0x1562   :  { %v2358_v8 = vpop.f32.mrf.mxu0  ;;  %v4931_v32 = vld [vmem:[#allocation3 + $0x20] ss:$8 sps:$4 sm:$0xff]  }
0x1563   :  { %3698 = vtanh.f32 %v2362_v11  ;;  %v2367_v60 = vmul.f32 0.5, %v2361_v12  ;;  %v4937_v11 = vld [vmem:[%s5166_s4 + $0x30] ss:$8 sps:$4 sm:$0xff]   ;;  %v4940_v8 = vld [vmem:[#allocation3 + $0x14] ss:$8 sps:$4 sm:$0xff]  }
0x1564   :  { %3700 = vtanh.f32 %v2361_v12  ;;  %v4946_v12 = vld [vmem:[%s5166_s4 + $0x24] ss:$8 sps:$4 sm:$0xff]  }
0x1569   :  { %v2416_v5 = vpop.f32.mrf.mxu1 }
0x156a   :  { %v2417_v57 = vadd.f32 %v2416_v5, %v224_v37  ;;  %v4956_v37 = vld [vmem:[%s5166_s4 + $0x20] ss:$8 sps:$4 sm:$0xff]   ;;  %v4959_v5 = vld [vmem:[#allocation3 + $0x4] ss:$8 sps:$4 sm:$0xff]  }
0x156b   :  { %v2418_v0 = vpop.f32.mrf.mxu1 }
0x156c   :  { %v2423_v45 = vmul.f32 0.5, %v2417_v57  ;;  %v2419_v10 = vadd.f32 %v2418_v0, %v226_v44  ;;  %v4965_v57 = vld [vmem:[%s5166_s4 + $0x14] ss:$8 sps:$4 sm:$0xff]   ;;  %v4968_v0 = vld [vmem:[#allocation3] ss:$8 sps:$4 sm:$0xff]  }
0x156d   :  { %v2420_v46 = vpop.f32.mrf.mxu1  ;;  %v4981_v44 = vld [vmem:[%s5166_s4 + $0x4] ss:$8 sps:$4 sm:$0xff]  }
0x156e   :  { %3702 = vtanh.f32 %v2423_v45  ;;  %v2428_v38 = vmul.f32 0.5, %v2419_v10  ;;  %v4987_v45 = vld [vmem:[%s5166_s4] ss:$8 sps:$4 sm:$0xff]  }
0x156f   :  { %v2421_v47 = vpop.f32.mrf.mxu1  ;;  %3704 = vtanh.f32 %v2419_v10 }
0x1570   :  { %v3699_v29 = vpop.eup %3698  ;;  %3706 = vtanh.f32 %v2367_v60 }
0x1571   :  { %v2364_v17 = vmul.f32 0.5, %v3699_v29  ;;  %v3701_v33 = vpop.eup %3700 }
0x1573   :  { %v2365_v36 = vadd.f32 0.5, %v2364_v17 }
0x1575   :  { %v2372_v48 = vmul.f32 %v3701_v33, %v2365_v36  ;;  %v2371_v63 = vmul.f32 %v2365_v36, %v4808_v49 }
0x1577   :  { %2374 = vrot.lane.b32.xlu0 %v2372_v48, %s3905_s2 }
0x157b   :  { %v3703_v20 = vpop.eup %3702 }
0x157c   :  { %v2425_v43 = vmul.f32 0.5, %v3703_v20  ;;  %v3705_v13 = vpop.eup %3704 }
0x157d   :  { %v3707_v39 = vpop.eup %3706 }
0x157e   :  { %v2426_v35 = vadd.f32 0.5, %v2425_v43  ;;  %v2369_v15 = vmul.f32 0.5, %v3707_v39  ;;  %v5193_v43 = vld [vmem:[#allocation17_spill] sm:$0xff] }
0x1580   :  { %v2433_v26 = vmul.f32 %v3705_v13, %v2426_v35  ;;  %v2432_v40 = vmul.f32 %v2426_v35, %v4812_v50  ;;  %v2370_v31 = vadd.f32 0.5, %v2369_v15  ;;  %v230_v35 = vadd.f32 %v5193_v43, %v4039_v18 }
0x1582   :  { %2435 = vrot.lane.b32.xlu1 %v2433_v26, %s3905_s2 }
0x15e9   :  { %v2375_v9 = vpop.permute.xlu0 %2374 }
0x15ea   :  { %v4898_v30 = vadd.f32 %v2375_v9, %v2371_v63 }
0x15ec   :  { %3708 = vtanh.f32 %v4898_v30 }
0x15ed   :  { %3710 = vtanh.f32 %v2428_v38 }
0x15f4   :  { %v2436_v61 = vpop.permute.xlu1 %2435 }
0x15f5   :  { %v4902_v7 = vadd.f32 %v2436_v61, %v2432_v40  ;;  %v5194_v40 = vld [vmem:[#allocation18_spill] sm:$0xff] }
0x15f6   :  { %v232_v61 = vadd.f32 %v5194_v40, %v4045_v22 }
0x15f7   :  { %3712 = vtanh.f32 %v4902_v7 }
0x15f9   :  { %v3709_v55 = vpop.eup %3708 }
0x15fa   :  { %v2379_v1 = vmul.f32 %v3709_v55, %v2370_v31  ;;  %v3711_v49 = vpop.eup %3710 }
0x15fb   :  { %v2430_v27 = vmul.f32 0.5, %v3711_v49 }
0x15fc   :  { %v2442_v3 = vpack.c.bf16 %v2379_v1, %v2379_v1 }
0x15fd   :  { %v2431_v23 = vadd.f32 0.5, %v2430_v27 }
0x15fe   :  { %2444 = vrot.lane.b32.xlu0 %v2442_v3, %s3905_s2 }
0x1604   :  { %v3713_v2 = vpop.eup %3712 }
0x1605   :  { %v2440_v62 = vmul.f32 %v3713_v2, %v2431_v23 }
0x1607   :  { %v2441_v6 = vpack.c.bf16 %v2440_v62, %v2440_v62 }
0x1609   :  { %2491 = vrot.lane.b32.xlu1 %v2441_v6, %s3905_s2 }
0x1670   :  { %v2445_v50 = vpop.permute.xlu0 %2444 }
0x1671   :  { %3438 = vmatmul.mubr.msk.bf16.vlgmr.msra.gmra.mxu0 %vm342_vm1, %v2445_v50 }
0x1672   :  { %2568 = vmatpush1.bf16.msra.mxu0 %v4821_v41  ;;  %2591 = vmatprep.mubr.bf16.mxu0 %v5187_v59 }
0x1673   :  { %2569 = vmatprep.subr.bf16.mxu0 %v4828_v28 }
0x1676   :  { %2570 = vmatpush1.bf16.msra.mxu0 %v4837_v34 }
0x1677   :  { %2571 = vmatprep.subr.bf16.mxu0 %v4844_v58 }
0x167a   :  { %2572 = vmatpush1.bf16.msra.mxu0 %v4851_v21 }
0x167b   :  { %2573 = vmatprep.subr.bf16.mxu0 %v4858_v51  ;;  %v2492_v42 = vpop.permute.xlu1 %2491 }
0x167c   :  { %3439 = vmatmul.mubr.msk.bf16.vlgmr.msra.gmra.mxu1 %vm342_vm1, %v2492_v42 }
0x167d   :  { %2635 = vmatpush1.bf16.msra.mxu1 %v4916_v16  ;;  %2658 = vmatprep.mubr.bf16.mxu1 %v5187_v59 }
0x167e   :  { %2574 = vmatpush1.bf16.msra.mxu0 %v4865_v56  ;;  %2636 = vmatprep.subr.bf16.mxu1 %v4921_v54 }
0x167f   :  { %2681 = vmatprep.subr.bf16.mxu0 %v4927_v4 }
0x1681   :  { %3440 = vmatmul.mubr.msk.bf16.vlgmr.msra.gmra.mxu0 %vm342_vm1, %v2492_v42  ;;  %2637 = vmatpush1.bf16.msra.mxu1 %v4931_v32 }
0x1682   :  { %2682 = vmatpush1.bf16.msra.mxu0 %v4937_v11  ;;  %2638 = vmatprep.subr.bf16.mxu1 %v4940_v8 }
0x1683   :  { %2683 = vmatprep.subr.bf16.mxu0 %v4946_v12  ;;  %2705 = vmatprep.mubr.bf16.mxu0 %v5187_v59 }
0x1685   :  { %2639 = vmatpush1.bf16.msra.mxu1 %v4950_v25 }
0x1686   :  { %2684 = vmatpush1.bf16.msra.mxu0 %v4956_v37  ;;  %2640 = vmatprep.subr.bf16.mxu1 %v4959_v5 }
0x1687   :  { %2685 = vmatprep.subr.bf16.mxu0 %v4965_v57 }
0x1689   :  { %2641 = vmatpush1.bf16.msra.mxu1 %v4968_v0 }
0x168a   :  { %2686 = vmatpush1.bf16.msra.mxu0 %v4974_v19  ;;  %2744 = vmatprep.subr.bf16.mxu1 %v4876_v53 }
0x168b   :  { %2687 = vmatprep.subr.bf16.mxu0 %v4981_v44 }
0x168e   :  { %2688 = vmatpush1.bf16.msra.mxu0 %v4987_v45 }
0x168f   :  { %2811 = vmatprep.subr.bf16.mxu0 %v4886_v52 }
0x1731   :  { %v2483_v46 = vpop.f32.mrf.mxu0 }
0x1733   :  { %v2485_v10 = vpop.f32.mrf.mxu0 }
0x1735   :  { %v2487_v47 = vpop.f32.mrf.mxu0 }
0x1737   :  { %v2488_v29 = vpop.f32.mrf.mxu0 }
0x173c   :  { %v2530_v17 = vpop.f32.mrf.mxu1 }
0x173d   :  { %v2531_v36 = vadd.f32 %v2530_v17, %v2483_v46 }
0x173e   :  { %v2532_v33 = vpop.f32.mrf.mxu1 }
0x173f   :  { %v2537_v48 = vadd.f32 %v2531_v36, %v4162_v14  ;;  %v2533_v20 = vadd.f32 %v2532_v33, %v2485_v10 }
0x1740   :  { %v2534_v13 = vpop.f32.mrf.mxu1 }
0x1741   :  { %v2539_v26 = vmul.f32 0.5, %v2537_v48  ;;  %v2593_v60 = vpop.f32.mrf.mxu0  ;;  %v2538_v38 = vadd.f32 %v2533_v20, %v4167_v24 }
0x1742   :  { %v2594_v63 = vadd.f32 %v2593_v60, %v230_v35  ;;  %v2535_v9 = vpop.f32.mrf.mxu1 }
0x1743   :  { %3714 = vtanh.f32 %v2539_v26  ;;  %v2595_v39 = vpop.f32.mrf.mxu0  ;;  %v2544_v10 = vmul.f32 0.5, %v2538_v38 }
0x1744   :  { %v2600_v15 = vmul.f32 0.5, %v2594_v63  ;;  %v2596_v55 = vadd.f32 %v2595_v39, %v232_v61 }
0x1745   :  { %v2597_v31 = vpop.f32.mrf.mxu0 }
0x1746   :  { %3716 = vtanh.f32 %v2600_v15  ;;  %v2605_v47 = vmul.f32 0.5, %v2596_v55 }
0x1747   :  { %3718 = vtanh.f32 %v2538_v38  ;;  %v2598_v1 = vpop.f32.mrf.mxu0 }
0x1748   :  { %3720 = vtanh.f32 %v2596_v55 }
0x1749   :  { %3722 = vtanh.f32 %v2544_v10  ;;  %v5195_v10 = vld [vmem:[#allocation19_spill] sm:$0xff] }
0x174a   :  { %3724 = vtanh.f32 %v2605_v47  ;;  %v234_v47 = vadd.f32 %v5195_v10, %v4039_v18 }
0x1750   :  { %v3715_v49 = vpop.eup %3714 }
0x1751   :  { %v2541_v3 = vmul.f32 0.5, %v3715_v49 }
0x1753   :  { %v3717_v27 = vpop.eup %3716  ;;  %v2542_v23 = vadd.f32 0.5, %v2541_v3 }
0x1754   :  { %v3719_v2 = vpop.eup %3718  ;;  %v2602_v62 = vmul.f32 0.5, %v3717_v27 }
0x1755   :  { %v2549_v6 = vmul.f32 %v3719_v2, %v2542_v23  ;;  %v3721_v42 = vpop.eup %3720  ;;  %v2548_v29 = vmul.f32 %v2542_v23, %v4898_v30 }
0x1756   :  { %v2603_v50 = vadd.f32 0.5, %v2602_v62  ;;  %v3723_v43 = vpop.eup %3722 }
0x1757   :  { %2551 = vrot.lane.b32.xlu0 %v2549_v6, %s3905_s2  ;;  %v3725_v35 = vpop.eup %3724  ;;  %v2546_v13 = vmul.f32 0.5, %v3723_v43 }
0x1758   :  { %v2610_v46 = vmul.f32 %v3721_v42, %v2603_v50  ;;  %v2609_v33 = vmul.f32 %v2603_v50, %v4902_v7  ;;  %v2607_v26 = vmul.f32 0.5, %v3725_v35 }
0x1759   :  { %v2547_v60 = vadd.f32 0.5, %v2546_v13 }
0x175a   :  { %2612 = vrot.lane.b32.xlu1 %v2610_v46, %s3905_s2  ;;  %v2608_v30 = vadd.f32 0.5, %v2607_v26 }
0x17c9   :  { %v2552_v17 = vpop.permute.xlu0 %2551 }
0x17ca   :  { %v5000_v36 = vadd.f32 %v2552_v17, %v2548_v29 }
0x17cc   :  { %3726 = vtanh.f32 %v5000_v36  ;;  %v2613_v48 = vpop.permute.xlu1 %2612 }
0x17cd   :  { %v5004_v20 = vadd.f32 %v2613_v48, %v2609_v33  ;;  %v5196_v48 = vld [vmem:[#allocation20_spill] sm:$0xff] }
0x17ce   :  { %v236_v43 = vadd.f32 %v5196_v48, %v4045_v22 }
0x17cf   :  { %3728 = vtanh.f32 %v5004_v20 }
0x17d9   :  { %v3727_v63 = vpop.eup %3726 }
0x17da   :  { %v2556_v9 = vmul.f32 %v3727_v63, %v2547_v60 }
0x17dc   :  { %v3729_v38 = vpop.eup %3728  ;;  %v2619_v39 = vpack.c.bf16 %v2556_v9, %v2556_v9 }
0x17dd   :  { %v2617_v40 = vmul.f32 %v3729_v38, %v2608_v30 }
0x17de   :  { %2621 = vrot.lane.b32.xlu0 %v2619_v39, %s3905_s2 }
0x17df   :  { %v2618_v7 = vpack.c.bf16 %v2617_v40, %v2617_v40 }
0x17e1   :  { %2668 = vrot.lane.b32.xlu1 %v2618_v7, %s3905_s2 }
0x1850   :  { %v2622_v61 = vpop.permute.xlu0 %2621 }
0x1851   :  { %3441 = vmatmul.mubr.msk.bf16.vlgmr.msra.gmra.mxu1 %vm342_vm1, %v2622_v61 }
0x1852   :  { %2745 = vmatpush1.bf16.msra.mxu1 %v4821_v41  ;;  %2768 = vmatprep.mubr.bf16.mxu1 %v5187_v59 }
0x1853   :  { %v2669_v15 = vpop.permute.xlu1 %2668  ;;  %2746 = vmatprep.subr.bf16.mxu1 %v4828_v28 }
0x1854   :  { %3442 = vmatmul.mubr.msk.bf16.vlgmr.msra.gmra.mxu0 %vm342_vm1, %v2669_v15 }
0x1855   :  { %2812 = vmatpush1.bf16.msra.mxu0 %v4916_v16  ;;  %2835 = vmatprep.mubr.bf16.mxu0 %v5187_v59 }
0x1856   :  { %2747 = vmatpush1.bf16.msra.mxu1 %v4837_v34  ;;  %2813 = vmatprep.subr.bf16.mxu0 %v4921_v54 }
0x1857   :  { %2748 = vmatprep.subr.bf16.mxu1 %v4844_v58 }
0x1859   :  { %2814 = vmatpush1.bf16.msra.mxu0 %v4931_v32 }
0x185a   :  { %2749 = vmatpush1.bf16.msra.mxu1 %v4851_v21  ;;  %2815 = vmatprep.subr.bf16.mxu0 %v4940_v8 }
0x185b   :  { %2750 = vmatprep.subr.bf16.mxu1 %v4858_v51 }
0x185d   :  { %2816 = vmatpush1.bf16.msra.mxu0 %v4950_v25 }
0x185e   :  { %2751 = vmatpush1.bf16.msra.mxu1 %v4865_v56  ;;  %2817 = vmatprep.subr.bf16.mxu0 %v4959_v5 }
0x185f   :  { %2858 = vmatprep.subr.bf16.mxu1 %v4927_v4 }
0x1861   :  { %3443 = vmatmul.mubr.msk.bf16.vlgmr.msra.gmra.mxu1 %vm342_vm1, %v2669_v15  ;;  %2818 = vmatpush1.bf16.msra.mxu0 %v4968_v0 }
0x1862   :  { %2859 = vmatpush1.bf16.msra.mxu1 %v4937_v11  ;;  %2921 = vmatprep.subr.bf16.mxu0 %v4876_v53 }
0x1863   :  { %2860 = vmatprep.subr.bf16.mxu1 %v4946_v12  ;;  %2882 = vmatprep.mubr.bf16.mxu1 %v5187_v59 }
0x1866   :  { %2861 = vmatpush1.bf16.msra.mxu1 %v4956_v37 }
0x1867   :  { %2862 = vmatprep.subr.bf16.mxu1 %v4965_v57 }
0x186a   :  { %2863 = vmatpush1.bf16.msra.mxu1 %v4974_v19 }
0x186b   :  { %2864 = vmatprep.subr.bf16.mxu1 %v4981_v44 }
0x186e   :  { %2865 = vmatpush1.bf16.msra.mxu1 %v4987_v45 }
0x186f   :  { %2988 = vmatprep.subr.bf16.mxu1 %v4886_v52 }
0x1911   :  { %v2660_v31 = vpop.f32.mrf.mxu1 }
0x1913   :  { %v2662_v55 = vpop.f32.mrf.mxu1 }
0x1914   :  { %v2707_v1 = vpop.f32.mrf.mxu0 }
0x1915   :  { %v2708_v49 = vadd.f32 %v2707_v1, %v2660_v31  ;;  %v2664_v3 = vpop.f32.mrf.mxu1 }
0x1916   :  { %v2709_v27 = vpop.f32.mrf.mxu0 }
0x1917   :  { %v2714_v23 = vadd.f32 %v2708_v49, %v4162_v14  ;;  %v2710_v2 = vadd.f32 %v2709_v27, %v2662_v55  ;;  %v2665_v62 = vpop.f32.mrf.mxu1 }
0x1918   :  { %v2711_v6 = vpop.f32.mrf.mxu0 }
0x1919   :  { %v2716_v50 = vmul.f32 0.5, %v2714_v23  ;;  %v2715_v46 = vadd.f32 %v2710_v2, %v4167_v24 }
0x191a   :  { %v2712_v42 = vpop.f32.mrf.mxu0 }
0x191b   :  { %3730 = vtanh.f32 %v2716_v50  ;;  %v2721_v55 = vmul.f32 0.5, %v2715_v46 }
0x191c   :  { %3732 = vtanh.f32 %v2715_v46 }
0x1921   :  { %v2770_v29 = vpop.f32.mrf.mxu1 }
0x1922   :  { %v2771_v17 = vadd.f32 %v2770_v29, %v234_v47 }
0x1923   :  { %v2772_v33 = vpop.f32.mrf.mxu1 }
0x1924   :  { %v2777_v35 = vmul.f32 0.5, %v2771_v17  ;;  %v2773_v26 = vadd.f32 %v2772_v33, %v236_v43 }
0x1925   :  { %v2774_v13 = vpop.f32.mrf.mxu1 }
0x1926   :  { %3734 = vtanh.f32 %v2777_v35  ;;  %v2782_v27 = vmul.f32 0.5, %v2773_v26 }
0x1927   :  { %v2775_v60 = vpop.f32.mrf.mxu1  ;;  %3736 = vtanh.f32 %v2773_v26 }
0x1928   :  { %v3731_v63 = vpop.eup %3730  ;;  %3738 = vtanh.f32 %v2721_v55 }
0x1929   :  { %v2718_v9 = vmul.f32 0.5, %v3731_v63  ;;  %v3733_v38 = vpop.eup %3732 }
0x192b   :  { %v2719_v30 = vadd.f32 0.5, %v2718_v9 }
0x192d   :  { %v2726_v39 = vmul.f32 %v3733_v38, %v2719_v30  ;;  %v2725_v1 = vmul.f32 %v2719_v30, %v5000_v36 }
0x192f   :  { %2728 = vrot.lane.b32.xlu0 %v2726_v39, %s3905_s2 }
0x1933   :  { %v3735_v40 = vpop.eup %3734 }
0x1934   :  { %v2779_v7 = vmul.f32 0.5, %v3735_v40  ;;  %v3737_v15 = vpop.eup %3736 }
0x1935   :  { %v3739_v23 = vpop.eup %3738 }
0x1936   :  { %v2780_v61 = vadd.f32 0.5, %v2779_v7  ;;  %v2723_v6 = vmul.f32 0.5, %v3739_v23  ;;  %v5197_v7 = vld [vmem:[#allocation21_spill] sm:$0xff] }
0x1938   :  { %v2787_v31 = vmul.f32 %v3737_v15, %v2780_v61  ;;  %v2786_v2 = vmul.f32 %v2780_v61, %v5004_v20  ;;  %v2724_v42 = vadd.f32 0.5, %v2723_v6  ;;  %v240_v61 = vadd.f32 %v5197_v7, %v4039_v18 }
0x193a   :  { %2789 = vrot.lane.b32.xlu1 %v2787_v31, %s3905_s2 }
0x19a1   :  { %v2729_v49 = vpop.permute.xlu0 %2728 }
0x19a2   :  { %v5048_v3 = vadd.f32 %v2729_v49, %v2725_v1 }
0x19a4   :  { %3740 = vtanh.f32 %v5048_v3 }
0x19a5   :  { %3742 = vtanh.f32 %v2782_v27  ;;  %v5198_v27 = vld [vmem:[#allocation22_spill] sm:$0xff] }
0x19a6   :  { %v242_v23 = vadd.f32 %v5198_v27, %v4045_v22 }
0x19ac   :  { %v2790_v62 = vpop.permute.xlu1 %2789 }
0x19ad   :  { %v5052_v50 = vadd.f32 %v2790_v62, %v2786_v2 }
0x19af   :  { %3744 = vtanh.f32 %v5052_v50 }
0x19b1   :  { %v3741_v46 = vpop.eup %3740 }
0x19b2   :  { %v2733_v10 = vmul.f32 %v3741_v46, %v2724_v42  ;;  %v3743_v36 = vpop.eup %3742 }
0x19b3   :  { %v2784_v29 = vmul.f32 0.5, %v3743_v36 }
0x19b4   :  { %v2796_v47 = vpack.c.bf16 %v2733_v10, %v2733_v10 }
0x19b5   :  { %v2785_v17 = vadd.f32 0.5, %v2784_v29 }
0x19b6   :  { %2798 = vrot.lane.b32.xlu0 %v2796_v47, %s3905_s2 }
0x19bc   :  { %v3745_v33 = vpop.eup %3744 }
0x19bd   :  { %v2794_v48 = vmul.f32 %v3745_v33, %v2785_v17 }
0x19bf   :  { %v2795_v43 = vpack.c.bf16 %v2794_v48, %v2794_v48 }
0x19c1   :  { %2845 = vrot.lane.b32.xlu1 %v2795_v43, %s3905_s2 }
0x1a28   :  { %v2799_v20 = vpop.permute.xlu0 %2798 }
0x1a29   :  { %3444 = vmatmul.mubr.msk.bf16.vlgmr.msra.gmra.mxu0 %vm342_vm1, %v2799_v20 }
0x1a2a   :  { %2922 = vmatpush1.bf16.msra.mxu0 %v4821_v41  ;;  %2945 = vmatprep.mubr.bf16.mxu0 %v5187_v59 }
0x1a2b   :  { %2923 = vmatprep.subr.bf16.mxu0 %v4828_v28 }
0x1a2e   :  { %2924 = vmatpush1.bf16.msra.mxu0 %v4837_v34 }
0x1a2f   :  { %2925 = vmatprep.subr.bf16.mxu0 %v4844_v58 }
0x1a32   :  { %2926 = vmatpush1.bf16.msra.mxu0 %v4851_v21 }
0x1a33   :  { %2927 = vmatprep.subr.bf16.mxu0 %v4858_v51  ;;  %v2846_v35 = vpop.permute.xlu1 %2845 }
0x1a34   :  { %3445 = vmatmul.mubr.msk.bf16.vlgmr.msra.gmra.mxu1 %vm342_vm1, %v2846_v35 }
0x1a35   :  { %2989 = vmatpush1.bf16.msra.mxu1 %v4916_v16  ;;  %3012 = vmatprep.mubr.bf16.mxu1 %v5187_v59 }
0x1a36   :  { %2928 = vmatpush1.bf16.msra.mxu0 %v4865_v56  ;;  %2990 = vmatprep.subr.bf16.mxu1 %v4921_v54 }
0x1a37   :  { %3035 = vmatprep.subr.bf16.mxu0 %v4927_v4 }
0x1a39   :  { %3446 = vmatmul.mubr.msk.bf16.vlgmr.msra.gmra.mxu0 %vm342_vm1, %v2846_v35  ;;  %2991 = vmatpush1.bf16.msra.mxu1 %v4931_v32 }
0x1a3a   :  { %3036 = vmatpush1.bf16.msra.mxu0 %v4937_v11  ;;  %2992 = vmatprep.subr.bf16.mxu1 %v4940_v8 }
0x1a3b   :  { %3037 = vmatprep.subr.bf16.mxu0 %v4946_v12  ;;  %3059 = vmatprep.mubr.bf16.mxu0 %v5187_v59 }
0x1a3d   :  { %2993 = vmatpush1.bf16.msra.mxu1 %v4950_v25 }
0x1a3e   :  { %3038 = vmatpush1.bf16.msra.mxu0 %v4956_v37  ;;  %2994 = vmatprep.subr.bf16.mxu1 %v4959_v5 }
0x1a3f   :  { %3039 = vmatprep.subr.bf16.mxu0 %v4965_v57 }
0x1a41   :  { %2995 = vmatpush1.bf16.msra.mxu1 %v4968_v0 }
0x1a42   :  { %3040 = vmatpush1.bf16.msra.mxu0 %v4974_v19  ;;  %3098 = vmatprep.subr.bf16.mxu1 %v4876_v53 }
0x1a43   :  { %3041 = vmatprep.subr.bf16.mxu0 %v4981_v44 }
0x1a46   :  { %3042 = vmatpush1.bf16.msra.mxu0 %v4987_v45 }
0x1a47   :  { %3165 = vmatprep.subr.bf16.mxu0 %v4886_v52 }
0x1ae9   :  { %v2837_v13 = vpop.f32.mrf.mxu0 }
0x1aeb   :  { %v2839_v26 = vpop.f32.mrf.mxu0 }
0x1aed   :  { %v2841_v60 = vpop.f32.mrf.mxu0 }
0x1aef   :  { %v2842_v63 = vpop.f32.mrf.mxu0 }
0x1af4   :  { %v2884_v9 = vpop.f32.mrf.mxu1 }
0x1af5   :  { %v2885_v30 = vadd.f32 %v2884_v9, %v2837_v13 }
0x1af6   :  { %v2886_v38 = vpop.f32.mrf.mxu1 }
0x1af7   :  { %v2891_v39 = vadd.f32 %v2885_v30, %v4162_v14  ;;  %v2887_v40 = vadd.f32 %v2886_v38, %v2839_v26 }
0x1af8   :  { %v2888_v53 = vpop.f32.mrf.mxu1 }
0x1af9   :  { %v2893_v15 = vmul.f32 0.5, %v2891_v39  ;;  %v2947_v31 = vpop.f32.mrf.mxu0  ;;  %v2892_v52 = vadd.f32 %v2887_v40, %v4167_v24 }
0x1afa   :  { %v2948_v55 = vadd.f32 %v2947_v31, %v240_v61  ;;  %v2889_v1 = vpop.f32.mrf.mxu1 }
0x1afb   :  { %3746 = vtanh.f32 %v2893_v15  ;;  %v2949_v49 = vpop.f32.mrf.mxu0  ;;  %v2898_v35 = vmul.f32 0.5, %v2892_v52 }
0x1afc   :  { %v2954_v2 = vmul.f32 0.5, %v2948_v55  ;;  %v2950_v6 = vadd.f32 %v2949_v49, %v242_v23 }
0x1afd   :  { %v2951_v62 = vpop.f32.mrf.mxu0 }
0x1afe   :  { %3748 = vtanh.f32 %v2954_v2  ;;  %v2959_v13 = vmul.f32 0.5, %v2950_v6 }
0x1aff   :  { %3750 = vtanh.f32 %v2892_v52  ;;  %v2952_v42 = vpop.f32.mrf.mxu0 }
0x1b00   :  { %3752 = vtanh.f32 %v2950_v6 }
0x1b01   :  { %3754 = vtanh.f32 %v2898_v35 }
0x1b02   :  { %3756 = vtanh.f32 %v2959_v13 }
0x1b08   :  { %v3747_v46 = vpop.eup %3746 }
0x1b09   :  { %v2895_v10 = vmul.f32 0.5, %v3747_v46 }
0x1b0b   :  { %v3749_v36 = vpop.eup %3748  ;;  %v2896_v47 = vadd.f32 0.5, %v2895_v10 }
0x1b0c   :  { %v3751_v29 = vpop.eup %3750  ;;  %v2956_v17 = vmul.f32 0.5, %v3749_v36 }
0x1b0d   :  { %v2903_v33 = vmul.f32 %v3751_v29, %v2896_v47  ;;  %v3753_v43 = vpop.eup %3752  ;;  %v2902_v26 = vmul.f32 %v2896_v47, %v5048_v3 }
0x1b0e   :  { %v2957_v48 = vadd.f32 0.5, %v2956_v17  ;;  %v3755_v39 = vpop.eup %3754 }
0x1b0f   :  { %2905 = vrot.lane.b32.xlu0 %v2903_v33, %s3905_s2  ;;  %v3757_v40 = vpop.eup %3756  ;;  %v2900_v7 = vmul.f32 0.5, %v3755_v39 }
0x1b10   :  { %v2964_v20 = vmul.f32 %v3753_v43, %v2957_v48  ;;  %v2963_v9 = vmul.f32 %v2957_v48, %v5052_v50  ;;  %v2961_v61 = vmul.f32 0.5, %v3757_v40 }
0x1b11   :  { %v2901_v53 = vadd.f32 0.5, %v2900_v7 }
0x1b12   :  { %2966 = vrot.lane.b32.xlu1 %v2964_v20, %s3905_s2  ;;  %v2962_v3 = vadd.f32 0.5, %v2961_v61 }
0x1b81   :  { %v2906_v60 = vpop.permute.xlu0 %2905 }
0x1b82   :  { %v5096_v63 = vadd.f32 %v2906_v60, %v2902_v26 }
0x1b84   :  { %3758 = vtanh.f32 %v5096_v63  ;;  %v2967_v30 = vpop.permute.xlu1 %2966 }
0x1b85   :  { %v5100_v38 = vadd.f32 %v2967_v30, %v2963_v9 }
0x1b87   :  { %3760 = vtanh.f32 %v5100_v38 }
0x1b91   :  { %v3759_v15 = vpop.eup %3758 }
0x1b92   :  { %v2910_v31 = vmul.f32 %v3759_v15, %v2901_v53 }
0x1b94   :  { %v3761_v55 = vpop.eup %3760  ;;  %v2973_v1 = vpack.c.bf16 %v2910_v31, %v2910_v31 }
0x1b95   :  { %v2971_v52 = vmul.f32 %v3761_v55, %v2962_v3 }
0x1b96   :  { %2975 = vrot.lane.b32.xlu0 %v2973_v1, %s3905_s2 }
0x1b97   :  { %v2972_v50 = vpack.c.bf16 %v2971_v52, %v2971_v52 }
0x1b99   :  { %3022 = vrot.lane.b32.xlu1 %v2972_v50, %s3905_s2 }
0x1c08   :  { %v2976_v49 = vpop.permute.xlu0 %2975 }
0x1c09   :  { %3447 = vmatmul.mubr.msk.bf16.vlgmr.msra.gmra.mxu1 %vm342_vm1, %v2976_v49 }
0x1c0a   :  { %3099 = vmatpush1.bf16.msra.mxu1 %v4821_v41  ;;  %3122 = vmatprep.mubr.bf16.mxu1 %v5187_v59 }
0x1c0b   :  { %v3023_v27 = vpop.permute.xlu1 %3022  ;;  %3100 = vmatprep.subr.bf16.mxu1 %v4828_v28 }
0x1c0c   :  { %3448 = vmatmul.mubr.msk.bf16.vlgmr.msra.gmra.mxu0 %vm342_vm1, %v3023_v27 }
0x1c0d   :  { %3166 = vmatpush1.bf16.msra.mxu0 %v4916_v16  ;;  %3189 = vmatprep.mubr.bf16.mxu0 %v5187_v59 }
0x1c0e   :  { %3101 = vmatpush1.bf16.msra.mxu1 %v4837_v34  ;;  %3167 = vmatprep.subr.bf16.mxu0 %v4921_v54 }
0x1c0f   :  { %3102 = vmatprep.subr.bf16.mxu1 %v4844_v58 }
0x1c11   :  { %3168 = vmatpush1.bf16.msra.mxu0 %v4931_v32 }
0x1c12   :  { %3103 = vmatpush1.bf16.msra.mxu1 %v4851_v21  ;;  %3169 = vmatprep.subr.bf16.mxu0 %v4940_v8  ;;  %v5199_v8 = vld [vmem:[#allocation23_spill] sm:$0xff] }
0x1c13   :  { %3104 = vmatprep.subr.bf16.mxu1 %v4858_v51 }
0x1c15   :  { %3170 = vmatpush1.bf16.msra.mxu0 %v4950_v25 }
0x1c16   :  { %3105 = vmatpush1.bf16.msra.mxu1 %v4865_v56  ;;  %3171 = vmatprep.subr.bf16.mxu0 %v4959_v5 }
0x1c17   :  { %3212 = vmatprep.subr.bf16.mxu1 %v4927_v4 }
0x1c19   :  { %3449 = vmatmul.mubr.msk.bf16.vlgmr.msra.gmra.mxu1 %vm342_vm1, %v3023_v27  ;;  %3172 = vmatpush1.bf16.msra.mxu0 %v4968_v0 }
0x1c1a   :  { %3213 = vmatpush1.bf16.msra.mxu1 %v4937_v11  ;;  %3236 = vmatprep.mubr.bf16.mxu1 %v5187_v59 }
0x1c1b   :  { %3214 = vmatprep.subr.bf16.mxu1 %v4946_v12  ;;  %v244_v12 = vadd.f32 %v5199_v8, %v4039_v18  ;;  %v3906_v8 = vmov 0.0  }
0x1c1c   :  { %3463 = vmatprep.subr.mxu0 %v3906_v8 }
0x1c1e   :  { %3215 = vmatpush1.bf16.msra.mxu1 %v4956_v37 }
0x1c1f   :  { %3216 = vmatprep.subr.bf16.mxu1 %v4965_v57  ;;  %v5200_v57 = vld [vmem:[#allocation24_spill] sm:$0xff] }
0x1c20   :  { %v246_v0 = vadd.f32 %v5200_v57, %v4045_v22  ;;  %v3265_v57 = vld [vmem:[#allocation6] sm:$0xff] }
0x1c22   :  { %3217 = vmatpush1.bf16.msra.mxu1 %v4974_v19 }
0x1c23   :  { %3218 = vmatprep.subr.bf16.mxu1 %v4981_v44 }
0x1c26   :  { %3219 = vmatpush1.bf16.msra.mxu1 %v4987_v45 }
0x1cc9   :  { %v3014_v41 = vpop.f32.mrf.mxu1 }
0x1ccb   :  { %v3016_v28 = vpop.f32.mrf.mxu1 }
0x1ccc   :  { %v3061_v34 = vpop.f32.mrf.mxu0 }
0x1ccd   :  { %v3062_v58 = vadd.f32 %v3061_v34, %v3014_v41  ;;  %v3018_v21 = vpop.f32.mrf.mxu1 }
0x1cce   :  { %v3063_v51 = vpop.f32.mrf.mxu0 }
0x1ccf   :  { %v3068_v59 = vadd.f32 %v3062_v58, %v4162_v14  ;;  %v3064_v56 = vadd.f32 %v3063_v51, %v3016_v28  ;;  %v3019_v16 = vpop.f32.mrf.mxu1 }
0x1cd0   :  { %v3065_v54 = vpop.f32.mrf.mxu0 }
0x1cd1   :  { %v3070_v4 = vmul.f32 0.5, %v3068_v59  ;;  %v3069_v11 = vadd.f32 %v3064_v56, %v4167_v24 }
0x1cd2   :  { %v3066_v32 = vpop.f32.mrf.mxu0 }
0x1cd3   :  { %3762 = vtanh.f32 %v3070_v4  ;;  %v3075_v22 = vmul.f32 0.5, %v3069_v11 }
0x1cd4   :  { %3764 = vtanh.f32 %v3069_v11  ;;  %v3272_v11 = vld [vmem:[#allocation6 + $0x38] sm:$0xff] }
0x1cd9   :  { %v3124_v25 = vpop.f32.mrf.mxu1 }
0x1cda   :  { %v3125_v37 = vadd.f32 %v3124_v25, %v244_v12  ;;  %v3271_v12 = vld [vmem:[#allocation6 + $0x30] sm:$0xff]  ;;  %v3268_v25 = vld [vmem:[#allocation6 + $0x18] sm:$0xff] }
0x1cdb   :  { %v3126_v5 = vpop.f32.mrf.mxu1 }
0x1cdc   :  { %v3131_v19 = vmul.f32 0.5, %v3125_v37  ;;  %v3127_v45 = vadd.f32 %v3126_v5, %v246_v0  ;;  %v3267_v37 = vld [vmem:[#allocation6 + $0x10] sm:$0xff]  ;;  %v3266_v5 = vld [vmem:[#allocation6 + $0x8] sm:$0xff] }
0x1cdd   :  { %v3128_v44 = vpop.f32.mrf.mxu1 }
0x1cde   :  { %3766 = vtanh.f32 %v3131_v19  ;;  %v3136_v43 = vmul.f32 0.5, %v3127_v45 }
0x1cdf   :  { %v3129_v23 = vpop.f32.mrf.mxu1  ;;  %3768 = vtanh.f32 %v3127_v45 }
0x1ce0   :  { %v3763_v2 = vpop.eup %3762  ;;  %3770 = vtanh.f32 %v3075_v22 }
0x1ce1   :  { %v3072_v62 = vmul.f32 0.5, %v3763_v2  ;;  %v3765_v42 = vpop.eup %3764 }
0x1ce3   :  { %v3073_v6 = vadd.f32 0.5, %v3072_v62 }
0x1ce5   :  { %v3080_v46 = vmul.f32 %v3765_v42, %v3073_v6  ;;  %v3079_v17 = vmul.f32 %v3073_v6, %v5096_v63 }
0x1ce7   :  { %3082 = vrot.lane.b32.xlu0 %v3080_v46, %s3905_s2 }
0x1ceb   :  { %v3767_v18 = vpop.eup %3766 }
0x1cec   :  { %v3133_v10 = vmul.f32 0.5, %v3767_v18  ;;  %v3769_v47 = vpop.eup %3768  ;;  %v3452_v18 = vld [vmem:[%s5170_s8] ss:$0 sm:$0xff] }
0x1ced   :  { %v3771_v20 = vpop.eup %3770 }
0x1cee   :  { %v3134_v36 = vadd.f32 0.5, %v3133_v10  ;;  %v3077_v26 = vmul.f32 0.5, %v3771_v20 }
0x1cf0   :  { %v3141_v29 = vmul.f32 %v3769_v47, %v3134_v36  ;;  %v3140_v35 = vmul.f32 %v3134_v36, %v5100_v38  ;;  %v3078_v9 = vadd.f32 0.5, %v3077_v26 }
0x1cf2   :  { %3143 = vrot.lane.b32.xlu1 %v3141_v29, %s3905_s2 }
0x1d59   :  { %v3083_v33 = vpop.permute.xlu0 %3082 }
0x1d5a   :  { %v5142_v48 = vadd.f32 %v3083_v33, %v3079_v17 }
0x1d5c   :  { %3772 = vtanh.f32 %v5142_v48 }
0x1d5d   :  { %3774 = vtanh.f32 %v3136_v43 }
0x1d64   :  { %v3144_v13 = vpop.permute.xlu1 %3143 }
0x1d65   :  { %v3146_v60 = vadd.f32 %v3144_v13, %v3140_v35 }
0x1d67   :  { %3776 = vtanh.f32 %v3146_v60 }
0x1d69   :  { %v3773_v30 = vpop.eup %3772 }
0x1d6a   :  { %v3087_v39 = vmul.f32 %v3773_v30, %v3078_v9  ;;  %v3775_v40 = vpop.eup %3774 }
0x1d6b   :  { %v3138_v63 = vmul.f32 0.5, %v3775_v40 }
0x1d6c   :  { %v3150_v7 = vpack.c.bf16 %v3087_v39, %v3087_v39 }
0x1d6d   :  { %v3139_v61 = vadd.f32 0.5, %v3138_v63 }
0x1d6e   :  { %3152 = vrot.lane.b32.xlu0 %v3150_v7, %s3905_s2 }
0x1d74   :  { %v3777_v53 = vpop.eup %3776 }
0x1d75   :  { %v3148_v15 = vmul.f32 %v3777_v53, %v3139_v61 }
0x1d77   :  { %v3149_v31 = vpack.c.bf16 %v3148_v15, %v3148_v15 }
0x1d79   :  { %3199 = vrot.lane.b32.xlu1 %v3149_v31, %s3905_s2 }
0x1de0   :  { %v3153_v3 = vpop.permute.xlu0 %3152 }
0x1de1   :  { %3450 = vmatmul.mubr.msk.bf16.vlgmr.msra.gmra.mxu0 %vm342_vm1, %v3153_v3 }
0x1de2   :  { %3479 = vmatprep.mubr.msk.f32.mxu0 %vm3907_vm2, %v3906_v8  ;;  %3464 = vmatpush3.msra.mxu0 %v3272_v11 }
0x1de3   :  { %3465 = vmatprep.subr.mxu0 %v3906_v8 }
0x1de4   :  { %3466 = vmatpush3.msra.mxu0 %v3271_v12 }
0x1de5   :  { %3467 = vmatprep.subr.mxu0 %v3906_v8 }
0x1deb   :  { %v3200_v38 = vpop.permute.xlu1 %3199 }
0x1dec   :  { %3451 = vmatmul.mubr.msk.bf16.vlgmr.msra.gmra.mxu1 %vm342_vm1, %v3200_v38 }
0x1ea1   :  { %v3191_v55 = vpop.f32.mrf.mxu0 }
0x1ea3   :  { %v3193_v1 = vpop.f32.mrf.mxu0 }
0x1ea5   :  { %v3195_v52 = vpop.f32.mrf.mxu0 }
0x1ea7   :  { %v3196_v50 = vpop.f32.mrf.mxu0 }
0x1eac   :  { %v3238_v49 = vpop.f32.mrf.mxu1 }
0x1ead   :  { %v3239_v27 = vadd.f32 %v3238_v49, %v3191_v55 }
0x1eae   :  { %v3240_v41 = vpop.f32.mrf.mxu1 }
0x1eaf   :  { %v3245_v28 = vadd.f32 %v3239_v27, %v4162_v14  ;;  %v3241_v34 = vadd.f32 %v3240_v41, %v3193_v1  ;;  %v3270_v14 = vld [vmem:[#allocation6 + $0x28] sm:$0xff] }
0x1eb0   :  { %v3242_v58 = vpop.f32.mrf.mxu1  ;;  %3468 = vmatpush3.msra.mxu0 %v3270_v14 }
0x1eb1   :  { %v3247_v21 = vmul.f32 0.5, %v3245_v28  ;;  %v3246_v59 = vadd.f32 %v3241_v34, %v4167_v24  ;;  %v3269_v24 = vld [vmem:[#allocation6 + $0x20] sm:$0xff]  ;;  %3469 = vmatprep.subr.mxu0 %v3906_v8 }
0x1eb2   :  { %v3243_v51 = vpop.f32.mrf.mxu1  ;;  %3470 = vmatpush3.msra.mxu0 %v3269_v24 }
0x1eb3   :  { %3778 = vtanh.f32 %v3247_v21  ;;  %3471 = vmatprep.subr.mxu0 %v3906_v8  ;;  %v3252_v0 = vmul.f32 0.5, %v3246_v59 }
0x1eb4   :  { %3780 = vtanh.f32 %v3246_v59  ;;  %3472 = vmatpush3.msra.mxu0 %v3268_v25 }
0x1eb5   :  { %3473 = vmatprep.subr.mxu0 %v3906_v8  ;;  %3782 = vtanh.f32 %v3252_v0 }
0x1eb6   :  { %3474 = vmatpush3.msra.mxu0 %v3267_v37 }
0x1eb7   :  { %3475 = vmatprep.subr.mxu0 %v3906_v8 }
0x1eb8   :  { %3476 = vmatpush3.msra.mxu0 %v3266_v5 }
0x1eb9   :  { %3477 = vmatprep.subr.mxu0 %v3906_v8 }
0x1eba   :  { %3478 = vmatpush3.msra.mxu0 %v3265_v57 }
0x1ec0   :  { %v3779_v56 = vpop.eup %3778 }
0x1ec1   :  { %v3249_v16 = vmul.f32 0.5, %v3779_v56  ;;  %v3781_v4 = vpop.eup %3780 }
0x1ec2   :  { %v3783_v23 = vpop.eup %3782 }
0x1ec3   :  { %v3250_v54 = vadd.f32 0.5, %v3249_v16  ;;  %v3254_v2 = vmul.f32 0.5, %v3783_v23 }
0x1ec5   :  { %v3257_v32 = vmul.f32 %v3781_v4, %v3250_v54  ;;  %v3256_v19 = vmul.f32 %v3250_v54, %v5142_v48  ;;  %v3255_v62 = vadd.f32 0.5, %v3254_v2 }
0x1ec7   :  { %3259 = vrot.lane.b32.xlu0 %v3257_v32, %s3905_s2 }
0x1f39   :  { %v3260_v44 = vpop.permute.xlu0 %3259 }
0x1f3a   :  { %v3262_v45 = vadd.f32 %v3260_v44, %v3256_v19 }
0x1f3c   :  { %3784 = vtanh.f32 %v3262_v45 }
0x1f49   :  { %v3785_v6 = vpop.eup %3784 }
0x1f4a   :  { %v3264_v42 = vmul.f32 %v3785_v6, %v3255_v62 }
0x1f4c   :  { %3281 = vrot.lane.b32.xlu1 %v3264_v42, %s3905_s2 }
0x1fbe   :  { %v3282_v46 = vpop.permute.xlu1 %3281 }
0x1fbf   :  { %3480 = vmatmul.mubr.msk.f32.vlgmr.msra.gmra.mxu0 %vm342_vm1, %v3282_v46 }
0x207f   :  { %v3351_v10 = vpop.f32.mrf.mxu0 }
0x2080   :  { %v3352_v36 = vadd.f32 %v3452_v18, %v3351_v10 }
0x2081   :  { %v3481_v47 = vpop.f32.mrf.mxu0 }
0x2082   :  { %3355 = vst [vmem:[#allocation8] sm:$0xff] %v3352_v36 }
0x2083   :  { %3885 = shalt.err (!%p3882_p0)
}
0x2084   :  { %3365 = dma.vmem_to_hbm [thread:$0]  %s3363_s29, 128, %s5171_s9, [#allocation5]  }
0x2085   :  { %3898 = dma.done.wait [#allocation5], 128  }
0x2086   :  { %3899 = vsyncadd [#allocation5], 4294967168 }
0x2087   :  { %3369 = vsyncpa [#allocation4], 1 }
0x2088   :  { %3370 = vsyncpa [#allocation7], 1 }
0x2089   :  { %3371 = vsyncpa [#allocation5], 1 }

</bundles_post_ra>
